<compile_context>
chip_gen: v7x
topology: tpu7x:2x2x1
jax: 0.10.0
libtpu: 0.0.40
codegen_flags: <defaults>
</compile_context>

<pallas_src>
import functools

import jax
import jax.numpy as jnp
from jax import lax
from jax.experimental import pallas as pl
from jax.experimental.pallas import tpu as pltpu


# ----------------------------------------------------------------------------
# Fused Pallas kernel
# ----------------------------------------------------------------------------
def _pvconv_fused_kernel(feats_ref, idx_ref, cidx_ref, cw_ref, mask_ref,
                         w1_ref, b1_ref, g1_ref, be1_ref,
                         w2_ref, b2_ref, g2_ref, be2_ref,
                         wp_ref, bp_ref, gp_ref, bep_ref,
                         out_ref, *, R, eps3d, eps1d, alpha):
    f32 = jnp.float32
    feats = feats_ref[...]                          # [C_in, B*N]
    mask = mask_ref[...]                            # [27,  B*V]
    BN = feats.shape[1]
    BV = mask.shape[1]

    # ---- average voxelization: scatter-mean via in-kernel one-hot matmul ----
    idx = idx_ref[...]                              # [B*N, 1] global voxel id
    lane_v = lax.broadcasted_iota(jnp.int32, (BN, BV), 1)
    scat = (lane_v == idx).astype(f32)              # [B*N, B*V] block-diagonal
    sums = jnp.dot(feats, scat, preferred_element_type=f32)      # [C, B*V]
    cnt = jnp.sum(scat, axis=0, keepdims=True)                   # [1, B*V]
    inv_cnt = pl.reciprocal(jnp.maximum(cnt, 1.0), approx=True)
    grid0 = sums * inv_cnt                                       # mean (0 if empty)

    # ---- Conv3d(3x3x3, pad=1) as 27 accumulated matmuls on rolled views ----
    def conv3(grid, w_all, b_col):
        o = b_col.shape[0]
        acc = jnp.zeros((o, grid.shape[1]), f32)
        k = 0
        for ox in (-1, 0, 1):
            for oy in (-1, 0, 1):
                for oz in (-1, 0, 1):
                    s = ox * R * R + oy * R + oz
                    if s == 0:
                        sh = grid
                    else:
                        sh = pltpu.roll(grid, (-s) % grid.shape[1], 1)
                    sh = sh * mask[k:k + 1, :]      # zero out-of-bounds taps
                    acc = acc + jnp.dot(w_all[k * o:(k + 1) * o, :], sh,
                                        preferred_element_type=f32)
                    k += 1
        return acc + b_col

    # ---- BatchNorm (batch stats, biased var) in one pass ----
    def bn(y, g_col, be_col, eps):
        inv_n = 1.0 / y.shape[1]
        mean = jnp.sum(y, axis=1, keepdims=True) * inv_n
        var = jnp.sum(y * y, axis=1, keepdims=True) * inv_n - mean * mean
        return (y - mean) * (lax.rsqrt(var + eps) * g_col) + be_col

    def lrelu(y):
        return jnp.where(y >= 0, y, alpha * y)

    y1 = lrelu(bn(conv3(grid0, w1_ref[...], b1_ref[...]),
                  g1_ref[...], be1_ref[...], eps3d))
    y2 = lrelu(bn(conv3(y1, w2_ref[...], b2_ref[...]),
                  g2_ref[...], be2_ref[...], eps3d))

    # ---- trilinear devoxelize: build [B*V, B*N] interp matrix in-kernel ----
    cidx = cidx_ref[...]                            # [8, B*N] global corner ids
    cw = cw_ref[...]                                # [8, B*N] corner weights
    sub_v = lax.broadcasted_iota(jnp.int32, (BV, BN), 0)
    t = jnp.zeros((BV, BN), f32)
    for k in range(8):
        t = t + jnp.where(sub_v == cidx[k:k + 1, :], cw[k:k + 1, :], 0.0)
    devox = jnp.dot(y2, t, preferred_element_type=f32)            # [O, B*N]

    # ---- point branch: SharedMLP (1x1 conv + BN1d + ReLU), then fuse ----
    pt = jnp.dot(wp_ref[...], feats, preferred_element_type=f32) + bp_ref[...]
    ptn = jnp.maximum(bn(pt, gp_ref[...], bep_ref[...], eps1d), 0.0)
    out_ref[...] = (devox + ptn).astype(out_ref.dtype)


# ----------------------------------------------------------------------------
# Host-side glue
# ----------------------------------------------------------------------------
def normalize_coords(coords, R, eps=0.0):
    # Voxelization(resolution, normalize=True, eps=0) coordinate normalization
    c = coords - coords.mean(axis=2, keepdims=True)
    nrm = jnp.linalg.norm(c, axis=1, keepdims=True)                  # [B, 1, N]
    c = c / (jnp.max(nrm, axis=2, keepdims=True) * 2.0 + eps) + 0.5
    return jnp.clip(c * R, 0.0, R - 1)                               # in [0, R-1]


def _full_spec(shape):
    nd = len(shape)
    return pl.BlockSpec(shape, lambda *_: (0,) * nd)


def pvconv_forward(features, coords, params, resolution=4, kernel_size=3):
    assert kernel_size == 3
    B, C, N = features.shape
    R = resolution
    V = R ** 3
    O = params["w1"].shape[0]
    BN, BV = B * N, B * V
    dt = features.dtype

    nc = normalize_coords(coords, R)                          # [B, 3, N]
    batch_off = (jnp.arange(B, dtype=jnp.int32) * V)[:, None]

    # scatter-mean voxel index (global id: b*V + x*R^2 + y*R + z)
    vidx = jnp.round(nc).astype(jnp.int32)
    flat = vidx[:, 0] * R * R + vidx[:, 1] * R + vidx[:, 2] + batch_off
    idx_col = flat.reshape(BN, 1)

    # trilinear corner indices / weights (8 per point)
    lo = jnp.floor(nc)
    frac = nc - lo
    lo_i = lo.astype(jnp.int32)
    hi_i = jnp.minimum(lo_i + 1, R - 1)
    cidx_rows, cw_rows = [], []
    for cx in range(2):
        xi = lo_i[:, 0] if cx == 0 else hi_i[:, 0]
        wx = (1.0 - frac[:, 0]) if cx == 0 else frac[:, 0]
        for cy in range(2):
            yi = lo_i[:, 1] if cy == 0 else hi_i[:, 1]
            wy = (1.0 - frac[:, 1]) if cy == 0 else frac[:, 1]
            for cz in range(2):
                zi = lo_i[:, 2] if cz == 0 else hi_i[:, 2]
                wz = (1.0 - frac[:, 2]) if cz == 0 else frac[:, 2]
                cidx_rows.append(xi * R * R + yi * R + zi + batch_off)
                cw_rows.append(wx * wy * wz)
    cidx = jnp.stack(cidx_rows).reshape(8, BN)
    cw = jnp.stack(cw_rows).astype(dt).reshape(8, BN)

    # conv boundary masks: one [B*V] row per 3x3x3 offset (same for all batches)
    l = jnp.arange(V, dtype=jnp.int32)
    vx, vy, vz = l // (R * R), (l // R) % R, l % R
    rows = []
    for ox in (-1, 0, 1):
        for oy in (-1, 0, 1):
            for oz in (-1, 0, 1):
                ok = ((vx + ox >= 0) & (vx + ox < R) &
                      (vy + oy >= 0) & (vy + oy < R) &
                      (vz + oz >= 0) & (vz + oz < R))
                rows.append(ok)
    mask = jnp.tile(jnp.stack(rows).astype(dt), (1, B))       # [27, B*V]

    # fold batch into lanes; reorder conv weights to [27*O, C_in] (k-major)
    feats_f = jnp.transpose(features, (1, 0, 2)).reshape(C, BN)
    w1r = jnp.transpose(params["w1"].reshape(O, C, 27), (2, 0, 1)).reshape(27 * O, C)
    w2r = jnp.transpose(params["w2"].reshape(O, O, 27), (2, 0, 1)).reshape(27 * O, O)
    col = lambda v: v.reshape(-1, 1).astype(dt)

    kern = functools.partial(_pvconv_fused_kernel, R=R,
                             eps3d=1e-4, eps1d=1e-5, alpha=0.1)
    ins = (feats_f, idx_col, cidx, cw, mask,
           w1r, col(params["b1"]), col(params["g1"]), col(params["be1"]),
           w2r, col(params["b2"]), col(params["g2"]), col(params["be2"]),
           params["wp"], col(params["bp"]), col(params["gp"]), col(params["bep"]))

    out = pl.pallas_call(
        kern,
        out_shape=jax.ShapeDtypeStruct((O, BN), dt),
        grid=(1,),
        in_specs=[_full_spec(a.shape) for a in ins],
        out_specs=_full_spec((O, BN)),
        compiler_params=pltpu.CompilerParams(
            dimension_semantics=("arbitrary",)),
    )(*ins)

    fused = jnp.transpose(out.reshape(O, B, N), (1, 0, 2))    # [B, O, N]
    return fused, coords


# ----------------------------------------------------------------------------
# Pure-JAX reference (for a sanity check)
# ----------------------------------------------------------------------------
def trilinear_matrix(nc, R):
    B, _, N = nc.shape
    V = R ** 3
    lo = jnp.floor(nc)
    frac = nc - lo
    lo_i = lo.astype(jnp.int32)
    hi_i = jnp.minimum(lo_i + 1, R - 1)
    corners = [[(lo_i[:, ax], 1.0 - frac[:, ax]), (hi_i[:, ax], frac[:, ax])]
               for ax in range(3)]
    T = jnp.zeros((B, N, V), dtype=nc.dtype)
    for xi, wx in corners[0]:
        for yi, wy in corners[1]:
            for zi, wz in corners[2]:
                idx = xi * R * R + yi * R + zi
                w = wx * wy * wz
                T = T + jax.nn.one_hot(idx, V, dtype=nc.dtype) * w[..., None]
    return jnp.transpose(T, (0, 2, 1))                        # [B, V, N]


def reference_forward(features, coords, params, resolution=4, kernel_size=3):
    B, C, N = features.shape
    R = resolution
    V = R ** 3
    C_OUT = params["w1"].shape[0]

    nc = normalize_coords(coords, R)
    vidx = jnp.round(nc).astype(jnp.int32)
    flat = vidx[:, 0] * R * R + vidx[:, 1] * R + vidx[:, 2]
    oh = jax.nn.one_hot(flat, V, dtype=features.dtype)
    sums = jnp.einsum("bcn,bnv->bcv", features, oh)
    cnt = jnp.sum(oh, axis=1)
    avg = sums / jnp.maximum(cnt, 1.0)[:, None, :]
    x = avg.reshape(B, C, R, R, R)

    def block(x, w, b, g, be):
        pad = kernel_size // 2
        y = lax.conv_general_dilated(
            x, w, (1, 1, 1), [(pad, pad)] * 3,
            dimension_numbers=("NCDHW", "OIDHW", "NCDHW"))
        y = y + b[None, :, None, None, None]
        m = jnp.mean(y, axis=(0, 2, 3, 4), keepdims=True)
        v = jnp.mean((y - m) ** 2, axis=(0, 2, 3, 4), keepdims=True)
        yn = (y - m) / jnp.sqrt(v + 1e-4) * g[None, :, None, None, None] \
             + be[None, :, None, None, None]
        return jnp.where(yn >= 0, yn, 0.1 * yn)

    y = block(x, params["w1"], params["b1"], params["g1"], params["be1"])
    y = block(y, params["w2"], params["b2"], params["g2"], params["be2"])

    T = trilinear_matrix(nc, R)
    devox = jnp.einsum("bov,bvn->bon", y.reshape(B, C_OUT, V), T)

    pt = jnp.einsum("oc,bcn->bon", params["wp"], features) + params["bp"][None, :, None]
    m = jnp.mean(pt, axis=(0, 2), keepdims=True)
    v = jnp.mean((pt - m) ** 2, axis=(0, 2), keepdims=True)
    ptn = (pt - m) / jnp.sqrt(v + 1e-5) * params["gp"][None, :, None] \
          + params["bep"][None, :, None]
    ptn = jnp.maximum(ptn, 0.0)
    return devox + ptn, coords


# ----------------------------------------------------------------------------
# main
# ----------------------------------------------------------------------------
if __name__ == "__main__":
    B, C_IN, C_OUT, N, R, K = 2, 4, 8, 64, 4, 3

    key = jax.random.PRNGKey(0)
    ks = jax.random.split(key, 16)
    f32 = jnp.float32
    params = dict(
        w1=0.2 * jax.random.normal(ks[0], (C_OUT, C_IN, K, K, K), f32),
        b1=0.1 * jax.random.normal(ks[1], (C_OUT,), f32),
        g1=1.0 + 0.1 * jax.random.normal(ks[2], (C_OUT,), f32),
        be1=0.1 * jax.random.normal(ks[3], (C_OUT,), f32),
        w2=0.2 * jax.random.normal(ks[4], (C_OUT, C_OUT, K, K, K), f32),
        b2=0.1 * jax.random.normal(ks[5], (C_OUT,), f32),
        g2=1.0 + 0.1 * jax.random.normal(ks[6], (C_OUT,), f32),
        be2=0.1 * jax.random.normal(ks[7], (C_OUT,), f32),
        wp=0.2 * jax.random.normal(ks[8], (C_OUT, C_IN), f32),
        bp=0.1 * jax.random.normal(ks[9], (C_OUT,), f32),
        gp=1.0 + 0.1 * jax.random.normal(ks[10], (C_OUT,), f32),
        bep=0.1 * jax.random.normal(ks[11], (C_OUT,), f32),
    )
    features = jax.random.normal(ks[12], (B, C_IN, N), f32)
    coords = jax.random.uniform(ks[13], (B, 3, N), f32, minval=-1.0, maxval=1.0)

    fused, out_coords = jax.jit(pvconv_forward)(features, coords, params)
    jax.block_until_ready(fused)

    ref, _ = reference_forward(features, coords, params)
    assert fused.shape == (B, C_OUT, N)
    assert bool(jnp.all(jnp.isfinite(fused)))
    max_err = float(jnp.max(jnp.abs(fused - ref)))
    assert max_err < 5e-2, f"max abs err vs reference: {max_err}"

    print("KERNEL_OK")
</pallas_src>

<mosaic_0001>
module attributes {stable_mosaic.version = 11 : i64} {
  func.func @_pvconv_fused_kernel(%arg0: i32, %arg1: memref<4x128xf32, #tpu.memory_space<vmem>>, %arg2: memref<128x1xi32, #tpu.memory_space<vmem>>, %arg3: memref<8x128xi32, #tpu.memory_space<vmem>>, %arg4: memref<8x128xf32, #tpu.memory_space<vmem>>, %arg5: memref<27x128xf32, #tpu.memory_space<vmem>>, %arg6: memref<216x4xf32, #tpu.memory_space<vmem>>, %arg7: memref<8x1xf32, #tpu.memory_space<vmem>>, %arg8: memref<8x1xf32, #tpu.memory_space<vmem>>, %arg9: memref<8x1xf32, #tpu.memory_space<vmem>>, %arg10: memref<216x8xf32, #tpu.memory_space<vmem>>, %arg11: memref<8x1xf32, #tpu.memory_space<vmem>>, %arg12: memref<8x1xf32, #tpu.memory_space<vmem>>, %arg13: memref<8x1xf32, #tpu.memory_space<vmem>>, %arg14: memref<8x4xf32, #tpu.memory_space<vmem>>, %arg15: memref<8x1xf32, #tpu.memory_space<vmem>>, %arg16: memref<8x1xf32, #tpu.memory_space<vmem>>, %arg17: memref<8x1xf32, #tpu.memory_space<vmem>>, %arg18: memref<8x128xf32, #tpu.memory_space<vmem>>) attributes {dimension_semantics = [#tpu.dimension_semantics<arbitrary>], iteration_bounds = array<i64: 1>, scalar_prefetch = 0 : i64, scratch_operands = 0 : i64, tpu.core_type = #tpu.core_type<tc>, window_params = [{pipeline_mode = #tpu.pipeline_mode<synchronous>, transform_indices = @transform_0, window_bounds = array<i64: 4, 128>}, {pipeline_mode = #tpu.pipeline_mode<synchronous>, transform_indices = @transform_1, window_bounds = array<i64: 128, 1>}, {pipeline_mode = #tpu.pipeline_mode<synchronous>, transform_indices = @transform_2, window_bounds = array<i64: 8, 128>}, {pipeline_mode = #tpu.pipeline_mode<synchronous>, transform_indices = @transform_3, window_bounds = array<i64: 8, 128>}, {pipeline_mode = #tpu.pipeline_mode<synchronous>, transform_indices = @transform_4, window_bounds = array<i64: 27, 128>}, {pipeline_mode = #tpu.pipeline_mode<synchronous>, transform_indices = @transform_5, window_bounds = array<i64: 216, 4>}, {pipeline_mode = #tpu.pipeline_mode<synchronous>, transform_indices = @transform_6, window_bounds = array<i64: 8, 1>}, {pipeline_mode = #tpu.pipeline_mode<synchronous>, transform_indices = @transform_7, window_bounds = array<i64: 8, 1>}, {pipeline_mode = #tpu.pipeline_mode<synchronous>, transform_indices = @transform_8, window_bounds = array<i64: 8, 1>}, {pipeline_mode = #tpu.pipeline_mode<synchronous>, transform_indices = @transform_9, window_bounds = array<i64: 216, 8>}, {pipeline_mode = #tpu.pipeline_mode<synchronous>, transform_indices = @transform_10, window_bounds = array<i64: 8, 1>}, {pipeline_mode = #tpu.pipeline_mode<synchronous>, transform_indices = @transform_11, window_bounds = array<i64: 8, 1>}, {pipeline_mode = #tpu.pipeline_mode<synchronous>, transform_indices = @transform_12, window_bounds = array<i64: 8, 1>}, {pipeline_mode = #tpu.pipeline_mode<synchronous>, transform_indices = @transform_13, window_bounds = array<i64: 8, 4>}, {pipeline_mode = #tpu.pipeline_mode<synchronous>, transform_indices = @transform_14, window_bounds = array<i64: 8, 1>}, {pipeline_mode = #tpu.pipeline_mode<synchronous>, transform_indices = @transform_15, window_bounds = array<i64: 8, 1>}, {pipeline_mode = #tpu.pipeline_mode<synchronous>, transform_indices = @transform_16, window_bounds = array<i64: 8, 1>}, {pipeline_mode = #tpu.pipeline_mode<synchronous>, transform_indices = @transform_17, window_bounds = array<i64: 8, 128>}]} {
    %c0 = arith.constant 0 : index
    %c0_0 = arith.constant 0 : index
    %0 = vector.load %arg1[%c0, %c0_0] : memref<4x128xf32, #tpu.memory_space<vmem>>, vector<4x128xf32>
    %c0_1 = arith.constant 0 : index
    %c0_2 = arith.constant 0 : index
    %1 = vector.load %arg5[%c0_1, %c0_2] : memref<27x128xf32, #tpu.memory_space<vmem>>, vector<27x128xf32>
    %c0_3 = arith.constant 0 : index
    %c0_4 = arith.constant 0 : index
    %2 = vector.load %arg2[%c0_3, %c0_4] : memref<128x1xi32, #tpu.memory_space<vmem>>, vector<128x1xi32>
    %3 = tpu.iota {dimensions = array<i32: 1>} : vector<128x128xi32>
    %4 = vector.broadcast %2 : vector<128x1xi32> to vector<128x128xi32>
    %5 = arith.cmpi eq, %3, %4 : vector<128x128xi32>
    %6 = arith.extui %5 : vector<128x128xi1> to vector<128x128xi32>
    %7 = arith.sitofp %6 : vector<128x128xi32> to vector<128x128xf32>
    %cst = arith.constant dense<0.000000e+00> : vector<4x128xf32>
    %8 = tpu.matmul %0, %7, %cst {dimension_numbers = #tpu.dot_dimension_numbers<[1], [0], [0], [1], [0, 0, 1, 1], [], []>} : vector<4x128xf32>, vector<128x128xf32>, vector<4x128xf32> -> vector<4x128xf32>
    %cst_5 = arith.constant dense<0.000000e+00> : vector<128xf32>
    %9 = vector.multi_reduction <add>, %7, %cst_5 [0] : vector<128x128xf32> to vector<128xf32>
    %10 = vector.shape_cast %9 : vector<128xf32> to vector<1x128xf32>
    %cst_6 = arith.constant 1.000000e+00 : f32
    %11 = vector.broadcast %cst_6 : f32 to vector<1x128xf32>
    %12 = arith.maximumf %10, %11 : vector<1x128xf32>
    %13 = tpu.reciprocal %12 {approx = true} : vector<1x128xf32> -> vector<1x128xf32>
    %14 = vector.broadcast %13 : vector<1x128xf32> to vector<4x128xf32>
    %15 = arith.mulf %8, %14 : vector<4x128xf32>
    %c0_7 = arith.constant 0 : index
    %c0_8 = arith.constant 0 : index
    %16 = vector.load %arg6[%c0_7, %c0_8] : memref<216x4xf32, #tpu.memory_space<vmem>>, vector<216x4xf32>
    %c0_9 = arith.constant 0 : index
    %c0_10 = arith.constant 0 : index
    %17 = vector.load %arg7[%c0_9, %c0_10] : memref<8x1xf32, #tpu.memory_space<vmem>>, vector<8x1xf32>
    %cst_11 = arith.constant 0.000000e+00 : f32
    %18 = vector.broadcast %cst_11 : f32 to vector<8x128xf32>
    %c21_i32 = arith.constant 21 : i32
    %19 = tpu.dynamic_rotate %15 by %c21_i32 dim 1 : vector<4x128xf32>, i32 -> vector<4x128xf32>
    %20 = vector.extract_strided_slice %1 {offsets = [0, 0], sizes = [1, 128], strides = [1, 1]} : vector<27x128xf32> to vector<1x128xf32>
    %21 = vector.broadcast %20 : vector<1x128xf32> to vector<4x128xf32>
    %22 = arith.mulf %19, %21 : vector<4x128xf32>
    %23 = vector.extract_strided_slice %16 {offsets = [0, 0], sizes = [8, 4], strides = [1, 1]} : vector<216x4xf32> to vector<8x4xf32>
    %cst_12 = arith.constant dense<0.000000e+00> : vector<8x128xf32>
    %24 = tpu.matmul %23, %22, %cst_12 {dimension_numbers = #tpu.dot_dimension_numbers<[1], [0], [0], [1], [0, 0, 1, 1], [], []>} : vector<8x4xf32>, vector<4x128xf32>, vector<8x128xf32> -> vector<8x128xf32>
    %25 = arith.addf %18, %24 : vector<8x128xf32>
    %c20_i32 = arith.constant 20 : i32
    %26 = tpu.dynamic_rotate %15 by %c20_i32 dim 1 : vector<4x128xf32>, i32 -> vector<4x128xf32>
    %27 = vector.extract_strided_slice %1 {offsets = [1, 0], sizes = [1, 128], strides = [1, 1]} : vector<27x128xf32> to vector<1x128xf32>
    %28 = vector.broadcast %27 : vector<1x128xf32> to vector<4x128xf32>
    %29 = arith.mulf %26, %28 : vector<4x128xf32>
    %30 = vector.extract_strided_slice %16 {offsets = [8, 0], sizes = [8, 4], strides = [1, 1]} : vector<216x4xf32> to vector<8x4xf32>
    %cst_13 = arith.constant dense<0.000000e+00> : vector<8x128xf32>
    %31 = tpu.matmul %30, %29, %cst_13 {dimension_numbers = #tpu.dot_dimension_numbers<[1], [0], [0], [1], [0, 0, 1, 1], [], []>} : vector<8x4xf32>, vector<4x128xf32>, vector<8x128xf32> -> vector<8x128xf32>
    %32 = arith.addf %25, %31 : vector<8x128xf32>
    %c19_i32 = arith.constant 19 : i32
    %33 = tpu.dynamic_rotate %15 by %c19_i32 dim 1 : vector<4x128xf32>, i32 -> vector<4x128xf32>
    %34 = vector.extract_strided_slice %1 {offsets = [2, 0], sizes = [1, 128], strides = [1, 1]} : vector<27x128xf32> to vector<1x128xf32>
    %35 = vector.broadcast %34 : vector<1x128xf32> to vector<4x128xf32>
    %36 = arith.mulf %33, %35 : vector<4x128xf32>
    %37 = vector.extract_strided_slice %16 {offsets = [16, 0], sizes = [8, 4], strides = [1, 1]} : vector<216x4xf32> to vector<8x4xf32>
    %cst_14 = arith.constant dense<0.000000e+00> : vector<8x128xf32>
    %38 = tpu.matmul %37, %36, %cst_14 {dimension_numbers = #tpu.dot_dimension_numbers<[1], [0], [0], [1], [0, 0, 1, 1], [], []>} : vector<8x4xf32>, vector<4x128xf32>, vector<8x128xf32> -> vector<8x128xf32>
    %39 = arith.addf %32, %38 : vector<8x128xf32>
    %c17_i32 = arith.constant 17 : i32
    %40 = tpu.dynamic_rotate %15 by %c17_i32 dim 1 : vector<4x128xf32>, i32 -> vector<4x128xf32>
    %41 = vector.extract_strided_slice %1 {offsets = [3, 0], sizes = [1, 128], strides = [1, 1]} : vector<27x128xf32> to vector<1x128xf32>
    %42 = vector.broadcast %41 : vector<1x128xf32> to vector<4x128xf32>
    %43 = arith.mulf %40, %42 : vector<4x128xf32>
    %44 = vector.extract_strided_slice %16 {offsets = [24, 0], sizes = [8, 4], strides = [1, 1]} : vector<216x4xf32> to vector<8x4xf32>
    %cst_15 = arith.constant dense<0.000000e+00> : vector<8x128xf32>
    %45 = tpu.matmul %44, %43, %cst_15 {dimension_numbers = #tpu.dot_dimension_numbers<[1], [0], [0], [1], [0, 0, 1, 1], [], []>} : vector<8x4xf32>, vector<4x128xf32>, vector<8x128xf32> -> vector<8x128xf32>
    %46 = arith.addf %39, %45 : vector<8x128xf32>
    %c16_i32 = arith.constant 16 : i32
    %47 = tpu.dynamic_rotate %15 by %c16_i32 dim 1 : vector<4x128xf32>, i32 -> vector<4x128xf32>
    %48 = vector.extract_strided_slice %1 {offsets = [4, 0], sizes = [1, 128], strides = [1, 1]} : vector<27x128xf32> to vector<1x128xf32>
    %49 = vector.broadcast %48 : vector<1x128xf32> to vector<4x128xf32>
    %50 = arith.mulf %47, %49 : vector<4x128xf32>
    %51 = vector.extract_strided_slice %16 {offsets = [32, 0], sizes = [8, 4], strides = [1, 1]} : vector<216x4xf32> to vector<8x4xf32>
    %cst_16 = arith.constant dense<0.000000e+00> : vector<8x128xf32>
    %52 = tpu.matmul %51, %50, %cst_16 {dimension_numbers = #tpu.dot_dimension_numbers<[1], [0], [0], [1], [0, 0, 1, 1], [], []>} : vector<8x4xf32>, vector<4x128xf32>, vector<8x128xf32> -> vector<8x128xf32>
    %53 = arith.addf %46, %52 : vector<8x128xf32>
    %c15_i32 = arith.constant 15 : i32
    %54 = tpu.dynamic_rotate %15 by %c15_i32 dim 1 : vector<4x128xf32>, i32 -> vector<4x128xf32>
    %55 = vector.extract_strided_slice %1 {offsets = [5, 0], sizes = [1, 128], strides = [1, 1]} : vector<27x128xf32> to vector<1x128xf32>
    %56 = vector.broadcast %55 : vector<1x128xf32> to vector<4x128xf32>
    %57 = arith.mulf %54, %56 : vector<4x128xf32>
    %58 = vector.extract_strided_slice %16 {offsets = [40, 0], sizes = [8, 4], strides = [1, 1]} : vector<216x4xf32> to vector<8x4xf32>
    %cst_17 = arith.constant dense<0.000000e+00> : vector<8x128xf32>
    %59 = tpu.matmul %58, %57, %cst_17 {dimension_numbers = #tpu.dot_dimension_numbers<[1], [0], [0], [1], [0, 0, 1, 1], [], []>} : vector<8x4xf32>, vector<4x128xf32>, vector<8x128xf32> -> vector<8x128xf32>
    %60 = arith.addf %53, %59 : vector<8x128xf32>
    %c13_i32 = arith.constant 13 : i32
    %61 = tpu.dynamic_rotate %15 by %c13_i32 dim 1 : vector<4x128xf32>, i32 -> vector<4x128xf32>
    %62 = vector.extract_strided_slice %1 {offsets = [6, 0], sizes = [1, 128], strides = [1, 1]} : vector<27x128xf32> to vector<1x128xf32>
    %63 = vector.broadcast %62 : vector<1x128xf32> to vector<4x128xf32>
    %64 = arith.mulf %61, %63 : vector<4x128xf32>
    %65 = vector.extract_strided_slice %16 {offsets = [48, 0], sizes = [8, 4], strides = [1, 1]} : vector<216x4xf32> to vector<8x4xf32>
    %cst_18 = arith.constant dense<0.000000e+00> : vector<8x128xf32>
    %66 = tpu.matmul %65, %64, %cst_18 {dimension_numbers = #tpu.dot_dimension_numbers<[1], [0], [0], [1], [0, 0, 1, 1], [], []>} : vector<8x4xf32>, vector<4x128xf32>, vector<8x128xf32> -> vector<8x128xf32>
    %67 = arith.addf %60, %66 : vector<8x128xf32>
    %c12_i32 = arith.constant 12 : i32
    %68 = tpu.dynamic_rotate %15 by %c12_i32 dim 1 : vector<4x128xf32>, i32 -> vector<4x128xf32>
    %69 = vector.extract_strided_slice %1 {offsets = [7, 0], sizes = [1, 128], strides = [1, 1]} : vector<27x128xf32> to vector<1x128xf32>
    %70 = vector.broadcast %69 : vector<1x128xf32> to vector<4x128xf32>
    %71 = arith.mulf %68, %70 : vector<4x128xf32>
    %72 = vector.extract_strided_slice %16 {offsets = [56, 0], sizes = [8, 4], strides = [1, 1]} : vector<216x4xf32> to vector<8x4xf32>
    %cst_19 = arith.constant dense<0.000000e+00> : vector<8x128xf32>
    %73 = tpu.matmul %72, %71, %cst_19 {dimension_numbers = #tpu.dot_dimension_numbers<[1], [0], [0], [1], [0, 0, 1, 1], [], []>} : vector<8x4xf32>, vector<4x128xf32>, vector<8x128xf32> -> vector<8x128xf32>
    %74 = arith.addf %67, %73 : vector<8x128xf32>
    %c11_i32 = arith.constant 11 : i32
    %75 = tpu.dynamic_rotate %15 by %c11_i32 dim 1 : vector<4x128xf32>, i32 -> vector<4x128xf32>
    %76 = vector.extract_strided_slice %1 {offsets = [8, 0], sizes = [1, 128], strides = [1, 1]} : vector<27x128xf32> to vector<1x128xf32>
    %77 = vector.broadcast %76 : vector<1x128xf32> to vector<4x128xf32>
    %78 = arith.mulf %75, %77 : vector<4x128xf32>
    %79 = vector.extract_strided_slice %16 {offsets = [64, 0], sizes = [8, 4], strides = [1, 1]} : vector<216x4xf32> to vector<8x4xf32>
    %cst_20 = arith.constant dense<0.000000e+00> : vector<8x128xf32>
    %80 = tpu.matmul %79, %78, %cst_20 {dimension_numbers = #tpu.dot_dimension_numbers<[1], [0], [0], [1], [0, 0, 1, 1], [], []>} : vector<8x4xf32>, vector<4x128xf32>, vector<8x128xf32> -> vector<8x128xf32>
    %81 = arith.addf %74, %80 : vector<8x128xf32>
    %c5_i32 = arith.constant 5 : i32
    %82 = tpu.dynamic_rotate %15 by %c5_i32 dim 1 : vector<4x128xf32>, i32 -> vector<4x128xf32>
    %83 = vector.extract_strided_slice %1 {offsets = [9, 0], sizes = [1, 128], strides = [1, 1]} : vector<27x128xf32> to vector<1x128xf32>
    %84 = vector.broadcast %83 : vector<1x128xf32> to vector<4x128xf32>
    %85 = arith.mulf %82, %84 : vector<4x128xf32>
    %86 = vector.extract_strided_slice %16 {offsets = [72, 0], sizes = [8, 4], strides = [1, 1]} : vector<216x4xf32> to vector<8x4xf32>
    %cst_21 = arith.constant dense<0.000000e+00> : vector<8x128xf32>
    %87 = tpu.matmul %86, %85, %cst_21 {dimension_numbers = #tpu.dot_dimension_numbers<[1], [0], [0], [1], [0, 0, 1, 1], [], []>} : vector<8x4xf32>, vector<4x128xf32>, vector<8x128xf32> -> vector<8x128xf32>
    %88 = arith.addf %81, %87 : vector<8x128xf32>
    %c4_i32 = arith.constant 4 : i32
    %89 = tpu.dynamic_rotate %15 by %c4_i32 dim 1 : vector<4x128xf32>, i32 -> vector<4x128xf32>
    %90 = vector.extract_strided_slice %1 {offsets = [10, 0], sizes = [1, 128], strides = [1, 1]} : vector<27x128xf32> to vector<1x128xf32>
    %91 = vector.broadcast %90 : vector<1x128xf32> to vector<4x128xf32>
    %92 = arith.mulf %89, %91 : vector<4x128xf32>
    %93 = vector.extract_strided_slice %16 {offsets = [80, 0], sizes = [8, 4], strides = [1, 1]} : vector<216x4xf32> to vector<8x4xf32>
    %cst_22 = arith.constant dense<0.000000e+00> : vector<8x128xf32>
    %94 = tpu.matmul %93, %92, %cst_22 {dimension_numbers = #tpu.dot_dimension_numbers<[1], [0], [0], [1], [0, 0, 1, 1], [], []>} : vector<8x4xf32>, vector<4x128xf32>, vector<8x128xf32> -> vector<8x128xf32>
    %95 = arith.addf %88, %94 : vector<8x128xf32>
    %c3_i32 = arith.constant 3 : i32
    %96 = tpu.dynamic_rotate %15 by %c3_i32 dim 1 : vector<4x128xf32>, i32 -> vector<4x128xf32>
    %97 = vector.extract_strided_slice %1 {offsets = [11, 0], sizes = [1, 128], strides = [1, 1]} : vector<27x128xf32> to vector<1x128xf32>
    %98 = vector.broadcast %97 : vector<1x128xf32> to vector<4x128xf32>
    %99 = arith.mulf %96, %98 : vector<4x128xf32>
    %100 = vector.extract_strided_slice %16 {offsets = [88, 0], sizes = [8, 4], strides = [1, 1]} : vector<216x4xf32> to vector<8x4xf32>
    %cst_23 = arith.constant dense<0.000000e+00> : vector<8x128xf32>
    %101 = tpu.matmul %100, %99, %cst_23 {dimension_numbers = #tpu.dot_dimension_numbers<[1], [0], [0], [1], [0, 0, 1, 1], [], []>} : vector<8x4xf32>, vector<4x128xf32>, vector<8x128xf32> -> vector<8x128xf32>
    %102 = arith.addf %95, %101 : vector<8x128xf32>
    %c1_i32 = arith.constant 1 : i32
    %103 = tpu.dynamic_rotate %15 by %c1_i32 dim 1 : vector<4x128xf32>, i32 -> vector<4x128xf32>
    %104 = vector.extract_strided_slice %1 {offsets = [12, 0], sizes = [1, 128], strides = [1, 1]} : vector<27x128xf32> to vector<1x128xf32>
    %105 = vector.broadcast %104 : vector<1x128xf32> to vector<4x128xf32>
    %106 = arith.mulf %103, %105 : vector<4x128xf32>
    %107 = vector.extract_strided_slice %16 {offsets = [96, 0], sizes = [8, 4], strides = [1, 1]} : vector<216x4xf32> to vector<8x4xf32>
    %cst_24 = arith.constant dense<0.000000e+00> : vector<8x128xf32>
    %108 = tpu.matmul %107, %106, %cst_24 {dimension_numbers = #tpu.dot_dimension_numbers<[1], [0], [0], [1], [0, 0, 1, 1], [], []>} : vector<8x4xf32>, vector<4x128xf32>, vector<8x128xf32> -> vector<8x128xf32>
    %109 = arith.addf %102, %108 : vector<8x128xf32>
    %110 = vector.extract_strided_slice %1 {offsets = [13, 0], sizes = [1, 128], strides = [1, 1]} : vector<27x128xf32> to vector<1x128xf32>
    %111 = vector.broadcast %110 : vector<1x128xf32> to vector<4x128xf32>
    %112 = arith.mulf %15, %111 : vector<4x128xf32>
    %113 = vector.extract_strided_slice %16 {offsets = [104, 0], sizes = [8, 4], strides = [1, 1]} : vector<216x4xf32> to vector<8x4xf32>
    %cst_25 = arith.constant dense<0.000000e+00> : vector<8x128xf32>
    %114 = tpu.matmul %113, %112, %cst_25 {dimension_numbers = #tpu.dot_dimension_numbers<[1], [0], [0], [1], [0, 0, 1, 1], [], []>} : vector<8x4xf32>, vector<4x128xf32>, vector<8x128xf32> -> vector<8x128xf32>
    %115 = arith.addf %109, %114 : vector<8x128xf32>
    %c127_i32 = arith.constant 127 : i32
    %116 = tpu.dynamic_rotate %15 by %c127_i32 dim 1 : vector<4x128xf32>, i32 -> vector<4x128xf32>
    %117 = vector.extract_strided_slice %1 {offsets = [14, 0], sizes = [1, 128], strides = [1, 1]} : vector<27x128xf32> to vector<1x128xf32>
    %118 = vector.broadcast %117 : vector<1x128xf32> to vector<4x128xf32>
    %119 = arith.mulf %116, %118 : vector<4x128xf32>
    %120 = vector.extract_strided_slice %16 {offsets = [112, 0], sizes = [8, 4], strides = [1, 1]} : vector<216x4xf32> to vector<8x4xf32>
    %cst_26 = arith.constant dense<0.000000e+00> : vector<8x128xf32>
    %121 = tpu.matmul %120, %119, %cst_26 {dimension_numbers = #tpu.dot_dimension_numbers<[1], [0], [0], [1], [0, 0, 1, 1], [], []>} : vector<8x4xf32>, vector<4x128xf32>, vector<8x128xf32> -> vector<8x128xf32>
    %122 = arith.addf %115, %121 : vector<8x128xf32>
    %c125_i32 = arith.constant 125 : i32
    %123 = tpu.dynamic_rotate %15 by %c125_i32 dim 1 : vector<4x128xf32>, i32 -> vector<4x128xf32>
    %124 = vector.extract_strided_slice %1 {offsets = [15, 0], sizes = [1, 128], strides = [1, 1]} : vector<27x128xf32> to vector<1x128xf32>
    %125 = vector.broadcast %124 : vector<1x128xf32> to vector<4x128xf32>
    %126 = arith.mulf %123, %125 : vector<4x128xf32>
    %127 = vector.extract_strided_slice %16 {offsets = [120, 0], sizes = [8, 4], strides = [1, 1]} : vector<216x4xf32> to vector<8x4xf32>
    %cst_27 = arith.constant dense<0.000000e+00> : vector<8x128xf32>
    %128 = tpu.matmul %127, %126, %cst_27 {dimension_numbers = #tpu.dot_dimension_numbers<[1], [0], [0], [1], [0, 0, 1, 1], [], []>} : vector<8x4xf32>, vector<4x128xf32>, vector<8x128xf32> -> vector<8x128xf32>
    %129 = arith.addf %122, %128 : vector<8x128xf32>
    %c124_i32 = arith.constant 124 : i32
    %130 = tpu.dynamic_rotate %15 by %c124_i32 dim 1 : vector<4x128xf32>, i32 -> vector<4x128xf32>
    %131 = vector.extract_strided_slice %1 {offsets = [16, 0], sizes = [1, 128], strides = [1, 1]} : vector<27x128xf32> to vector<1x128xf32>
    %132 = vector.broadcast %131 : vector<1x128xf32> to vector<4x128xf32>
    %133 = arith.mulf %130, %132 : vector<4x128xf32>
    %134 = vector.extract_strided_slice %16 {offsets = [128, 0], sizes = [8, 4], strides = [1, 1]} : vector<216x4xf32> to vector<8x4xf32>
    %cst_28 = arith.constant dense<0.000000e+00> : vector<8x128xf32>
    %135 = tpu.matmul %134, %133, %cst_28 {dimension_numbers = #tpu.dot_dimension_numbers<[1], [0], [0], [1], [0, 0, 1, 1], [], []>} : vector<8x4xf32>, vector<4x128xf32>, vector<8x128xf32> -> vector<8x128xf32>
    %136 = arith.addf %129, %135 : vector<8x128xf32>
    %c123_i32 = arith.constant 123 : i32
    %137 = tpu.dynamic_rotate %15 by %c123_i32 dim 1 : vector<4x128xf32>, i32 -> vector<4x128xf32>
    %138 = vector.extract_strided_slice %1 {offsets = [17, 0], sizes = [1, 128], strides = [1, 1]} : vector<27x128xf32> to vector<1x128xf32>
    %139 = vector.broadcast %138 : vector<1x128xf32> to vector<4x128xf32>
    %140 = arith.mulf %137, %139 : vector<4x128xf32>
    %141 = vector.extract_strided_slice %16 {offsets = [136, 0], sizes = [8, 4], strides = [1, 1]} : vector<216x4xf32> to vector<8x4xf32>
    %cst_29 = arith.constant dense<0.000000e+00> : vector<8x128xf32>
    %142 = tpu.matmul %141, %140, %cst_29 {dimension_numbers = #tpu.dot_dimension_numbers<[1], [0], [0], [1], [0, 0, 1, 1], [], []>} : vector<8x4xf32>, vector<4x128xf32>, vector<8x128xf32> -> vector<8x128xf32>
    %143 = arith.addf %136, %142 : vector<8x128xf32>
    %c117_i32 = arith.constant 117 : i32
    %144 = tpu.dynamic_rotate %15 by %c117_i32 dim 1 : vector<4x128xf32>, i32 -> vector<4x128xf32>
    %145 = vector.extract_strided_slice %1 {offsets = [18, 0], sizes = [1, 128], strides = [1, 1]} : vector<27x128xf32> to vector<1x128xf32>
    %146 = vector.broadcast %145 : vector<1x128xf32> to vector<4x128xf32>
    %147 = arith.mulf %144, %146 : vector<4x128xf32>
    %148 = vector.extract_strided_slice %16 {offsets = [144, 0], sizes = [8, 4], strides = [1, 1]} : vector<216x4xf32> to vector<8x4xf32>
    %cst_30 = arith.constant dense<0.000000e+00> : vector<8x128xf32>
    %149 = tpu.matmul %148, %147, %cst_30 {dimension_numbers = #tpu.dot_dimension_numbers<[1], [0], [0], [1], [0, 0, 1, 1], [], []>} : vector<8x4xf32>, vector<4x128xf32>, vector<8x128xf32> -> vector<8x128xf32>
    %150 = arith.addf %143, %149 : vector<8x128xf32>
    %c116_i32 = arith.constant 116 : i32
    %151 = tpu.dynamic_rotate %15 by %c116_i32 dim 1 : vector<4x128xf32>, i32 -> vector<4x128xf32>
    %152 = vector.extract_strided_slice %1 {offsets = [19, 0], sizes = [1, 128], strides = [1, 1]} : vector<27x128xf32> to vector<1x128xf32>
    %153 = vector.broadcast %152 : vector<1x128xf32> to vector<4x128xf32>
    %154 = arith.mulf %151, %153 : vector<4x128xf32>
    %155 = vector.extract_strided_slice %16 {offsets = [152, 0], sizes = [8, 4], strides = [1, 1]} : vector<216x4xf32> to vector<8x4xf32>
    %cst_31 = arith.constant dense<0.000000e+00> : vector<8x128xf32>
    %156 = tpu.matmul %155, %154, %cst_31 {dimension_numbers = #tpu.dot_dimension_numbers<[1], [0], [0], [1], [0, 0, 1, 1], [], []>} : vector<8x4xf32>, vector<4x128xf32>, vector<8x128xf32> -> vector<8x128xf32>
    %157 = arith.addf %150, %156 : vector<8x128xf32>
    %c115_i32 = arith.constant 115 : i32
    %158 = tpu.dynamic_rotate %15 by %c115_i32 dim 1 : vector<4x128xf32>, i32 -> vector<4x128xf32>
    %159 = vector.extract_strided_slice %1 {offsets = [20, 0], sizes = [1, 128], strides = [1, 1]} : vector<27x128xf32> to vector<1x128xf32>
    %160 = vector.broadcast %159 : vector<1x128xf32> to vector<4x128xf32>
    %161 = arith.mulf %158, %160 : vector<4x128xf32>
    %162 = vector.extract_strided_slice %16 {offsets = [160, 0], sizes = [8, 4], strides = [1, 1]} : vector<216x4xf32> to vector<8x4xf32>
    %cst_32 = arith.constant dense<0.000000e+00> : vector<8x128xf32>
    %163 = tpu.matmul %162, %161, %cst_32 {dimension_numbers = #tpu.dot_dimension_numbers<[1], [0], [0], [1], [0, 0, 1, 1], [], []>} : vector<8x4xf32>, vector<4x128xf32>, vector<8x128xf32> -> vector<8x128xf32>
    %164 = arith.addf %157, %163 : vector<8x128xf32>
    %c113_i32 = arith.constant 113 : i32
    %165 = tpu.dynamic_rotate %15 by %c113_i32 dim 1 : vector<4x128xf32>, i32 -> vector<4x128xf32>
    %166 = vector.extract_strided_slice %1 {offsets = [21, 0], sizes = [1, 128], strides = [1, 1]} : vector<27x128xf32> to vector<1x128xf32>
    %167 = vector.broadcast %166 : vector<1x128xf32> to vector<4x128xf32>
    %168 = arith.mulf %165, %167 : vector<4x128xf32>
    %169 = vector.extract_strided_slice %16 {offsets = [168, 0], sizes = [8, 4], strides = [1, 1]} : vector<216x4xf32> to vector<8x4xf32>
    %cst_33 = arith.constant dense<0.000000e+00> : vector<8x128xf32>
    %170 = tpu.matmul %169, %168, %cst_33 {dimension_numbers = #tpu.dot_dimension_numbers<[1], [0], [0], [1], [0, 0, 1, 1], [], []>} : vector<8x4xf32>, vector<4x128xf32>, vector<8x128xf32> -> vector<8x128xf32>
    %171 = arith.addf %164, %170 : vector<8x128xf32>
    %c112_i32 = arith.constant 112 : i32
    %172 = tpu.dynamic_rotate %15 by %c112_i32 dim 1 : vector<4x128xf32>, i32 -> vector<4x128xf32>
    %173 = vector.extract_strided_slice %1 {offsets = [22, 0], sizes = [1, 128], strides = [1, 1]} : vector<27x128xf32> to vector<1x128xf32>
    %174 = vector.broadcast %173 : vector<1x128xf32> to vector<4x128xf32>
    %175 = arith.mulf %172, %174 : vector<4x128xf32>
    %176 = vector.extract_strided_slice %16 {offsets = [176, 0], sizes = [8, 4], strides = [1, 1]} : vector<216x4xf32> to vector<8x4xf32>
    %cst_34 = arith.constant dense<0.000000e+00> : vector<8x128xf32>
    %177 = tpu.matmul %176, %175, %cst_34 {dimension_numbers = #tpu.dot_dimension_numbers<[1], [0], [0], [1], [0, 0, 1, 1], [], []>} : vector<8x4xf32>, vector<4x128xf32>, vector<8x128xf32> -> vector<8x128xf32>
    %178 = arith.addf %171, %177 : vector<8x128xf32>
    %c111_i32 = arith.constant 111 : i32
    %179 = tpu.dynamic_rotate %15 by %c111_i32 dim 1 : vector<4x128xf32>, i32 -> vector<4x128xf32>
    %180 = vector.extract_strided_slice %1 {offsets = [23, 0], sizes = [1, 128], strides = [1, 1]} : vector<27x128xf32> to vector<1x128xf32>
    %181 = vector.broadcast %180 : vector<1x128xf32> to vector<4x128xf32>
    %182 = arith.mulf %179, %181 : vector<4x128xf32>
    %183 = vector.extract_strided_slice %16 {offsets = [184, 0], sizes = [8, 4], strides = [1, 1]} : vector<216x4xf32> to vector<8x4xf32>
    %cst_35 = arith.constant dense<0.000000e+00> : vector<8x128xf32>
    %184 = tpu.matmul %183, %182, %cst_35 {dimension_numbers = #tpu.dot_dimension_numbers<[1], [0], [0], [1], [0, 0, 1, 1], [], []>} : vector<8x4xf32>, vector<4x128xf32>, vector<8x128xf32> -> vector<8x128xf32>
    %185 = arith.addf %178, %184 : vector<8x128xf32>
    %c109_i32 = arith.constant 109 : i32
    %186 = tpu.dynamic_rotate %15 by %c109_i32 dim 1 : vector<4x128xf32>, i32 -> vector<4x128xf32>
    %187 = vector.extract_strided_slice %1 {offsets = [24, 0], sizes = [1, 128], strides = [1, 1]} : vector<27x128xf32> to vector<1x128xf32>
    %188 = vector.broadcast %187 : vector<1x128xf32> to vector<4x128xf32>
    %189 = arith.mulf %186, %188 : vector<4x128xf32>
    %190 = vector.extract_strided_slice %16 {offsets = [192, 0], sizes = [8, 4], strides = [1, 1]} : vector<216x4xf32> to vector<8x4xf32>
    %cst_36 = arith.constant dense<0.000000e+00> : vector<8x128xf32>
    %191 = tpu.matmul %190, %189, %cst_36 {dimension_numbers = #tpu.dot_dimension_numbers<[1], [0], [0], [1], [0, 0, 1, 1], [], []>} : vector<8x4xf32>, vector<4x128xf32>, vector<8x128xf32> -> vector<8x128xf32>
    %192 = arith.addf %185, %191 : vector<8x128xf32>
    %c108_i32 = arith.constant 108 : i32
    %193 = tpu.dynamic_rotate %15 by %c108_i32 dim 1 : vector<4x128xf32>, i32 -> vector<4x128xf32>
    %194 = vector.extract_strided_slice %1 {offsets = [25, 0], sizes = [1, 128], strides = [1, 1]} : vector<27x128xf32> to vector<1x128xf32>
    %195 = vector.broadcast %194 : vector<1x128xf32> to vector<4x128xf32>
    %196 = arith.mulf %193, %195 : vector<4x128xf32>
    %197 = vector.extract_strided_slice %16 {offsets = [200, 0], sizes = [8, 4], strides = [1, 1]} : vector<216x4xf32> to vector<8x4xf32>
    %cst_37 = arith.constant dense<0.000000e+00> : vector<8x128xf32>
    %198 = tpu.matmul %197, %196, %cst_37 {dimension_numbers = #tpu.dot_dimension_numbers<[1], [0], [0], [1], [0, 0, 1, 1], [], []>} : vector<8x4xf32>, vector<4x128xf32>, vector<8x128xf32> -> vector<8x128xf32>
    %199 = arith.addf %192, %198 : vector<8x128xf32>
    %c107_i32 = arith.constant 107 : i32
    %200 = tpu.dynamic_rotate %15 by %c107_i32 dim 1 : vector<4x128xf32>, i32 -> vector<4x128xf32>
    %201 = vector.extract_strided_slice %1 {offsets = [26, 0], sizes = [1, 128], strides = [1, 1]} : vector<27x128xf32> to vector<1x128xf32>
    %202 = vector.broadcast %201 : vector<1x128xf32> to vector<4x128xf32>
    %203 = arith.mulf %200, %202 : vector<4x128xf32>
    %204 = vector.extract_strided_slice %16 {offsets = [208, 0], sizes = [8, 4], strides = [1, 1]} : vector<216x4xf32> to vector<8x4xf32>
    %cst_38 = arith.constant dense<0.000000e+00> : vector<8x128xf32>
    %205 = tpu.matmul %204, %203, %cst_38 {dimension_numbers = #tpu.dot_dimension_numbers<[1], [0], [0], [1], [0, 0, 1, 1], [], []>} : vector<8x4xf32>, vector<4x128xf32>, vector<8x128xf32> -> vector<8x128xf32>
    %206 = arith.addf %199, %205 : vector<8x128xf32>
    %207 = vector.broadcast %17 : vector<8x1xf32> to vector<8x128xf32>
    %208 = arith.addf %206, %207 : vector<8x128xf32>
    %c0_39 = arith.constant 0 : index
    %c0_40 = arith.constant 0 : index
    %209 = vector.load %arg8[%c0_39, %c0_40] : memref<8x1xf32, #tpu.memory_space<vmem>>, vector<8x1xf32>
    %c0_41 = arith.constant 0 : index
    %c0_42 = arith.constant 0 : index
    %210 = vector.load %arg9[%c0_41, %c0_42] : memref<8x1xf32, #tpu.memory_space<vmem>>, vector<8x1xf32>
    %cst_43 = arith.constant dense<0.000000e+00> : vector<8xf32>
    %211 = vector.multi_reduction <add>, %208, %cst_43 [1] : vector<8x128xf32> to vector<8xf32>
    %212 = vector.shape_cast %211 : vector<8xf32> to vector<8x1xf32>
    %cst_44 = arith.constant 7.812500e-03 : f32
    %213 = vector.broadcast %cst_44 : f32 to vector<8x1xf32>
    %214 = arith.mulf %212, %213 : vector<8x1xf32>
    %215 = arith.mulf %208, %208 : vector<8x128xf32>
    %cst_45 = arith.constant dense<0.000000e+00> : vector<8xf32>
    %216 = vector.multi_reduction <add>, %215, %cst_45 [1] : vector<8x128xf32> to vector<8xf32>
    %217 = vector.shape_cast %216 : vector<8xf32> to vector<8x1xf32>
    %cst_46 = arith.constant 7.812500e-03 : f32
    %218 = vector.broadcast %cst_46 : f32 to vector<8x1xf32>
    %219 = arith.mulf %217, %218 : vector<8x1xf32>
    %220 = arith.mulf %214, %214 : vector<8x1xf32>
    %221 = arith.subf %219, %220 : vector<8x1xf32>
    %222 = vector.broadcast %214 : vector<8x1xf32> to vector<8x128xf32>
    %223 = arith.subf %208, %222 : vector<8x128xf32>
    %cst_47 = arith.constant 9.99999974E-5 : f32
    %224 = vector.broadcast %cst_47 : f32 to vector<8x1xf32>
    %225 = arith.addf %221, %224 : vector<8x1xf32>
    %226 = math.rsqrt %225 : vector<8x1xf32>
    %227 = arith.mulf %226, %209 : vector<8x1xf32>
    %228 = vector.broadcast %227 : vector<8x1xf32> to vector<8x128xf32>
    %229 = arith.mulf %223, %228 : vector<8x128xf32>
    %230 = vector.broadcast %210 : vector<8x1xf32> to vector<8x128xf32>
    %231 = arith.addf %229, %230 : vector<8x128xf32>
    %cst_48 = arith.constant 0.000000e+00 : f32
    %232 = vector.broadcast %cst_48 : f32 to vector<8x128xf32>
    %233 = arith.cmpf oge, %231, %232 : vector<8x128xf32>
    %cst_49 = arith.constant 1.000000e-01 : f32
    %234 = vector.broadcast %cst_49 : f32 to vector<8x128xf32>
    %235 = arith.mulf %234, %231 : vector<8x128xf32>
    %236 = arith.select %233, %231, %235 : vector<8x128xi1>, vector<8x128xf32>
    %c0_50 = arith.constant 0 : index
    %c0_51 = arith.constant 0 : index
    %237 = vector.load %arg10[%c0_50, %c0_51] : memref<216x8xf32, #tpu.memory_space<vmem>>, vector<216x8xf32>
    %c0_52 = arith.constant 0 : index
    %c0_53 = arith.constant 0 : index
    %238 = vector.load %arg11[%c0_52, %c0_53] : memref<8x1xf32, #tpu.memory_space<vmem>>, vector<8x1xf32>
    %cst_54 = arith.constant 0.000000e+00 : f32
    %239 = vector.broadcast %cst_54 : f32 to vector<8x128xf32>
    %c21_i32_55 = arith.constant 21 : i32
    %240 = tpu.dynamic_rotate %236 by %c21_i32_55 dim 1 : vector<8x128xf32>, i32 -> vector<8x128xf32>
    %241 = vector.extract_strided_slice %1 {offsets = [0, 0], sizes = [1, 128], strides = [1, 1]} : vector<27x128xf32> to vector<1x128xf32>
    %242 = vector.broadcast %241 : vector<1x128xf32> to vector<8x128xf32>
    %243 = arith.mulf %240, %242 : vector<8x128xf32>
    %244 = vector.extract_strided_slice %237 {offsets = [0, 0], sizes = [8, 8], strides = [1, 1]} : vector<216x8xf32> to vector<8x8xf32>
    %cst_56 = arith.constant dense<0.000000e+00> : vector<8x128xf32>
    %245 = tpu.matmul %244, %243, %cst_56 {dimension_numbers = #tpu.dot_dimension_numbers<[1], [0], [0], [1], [0, 0, 1, 1], [], []>} : vector<8x8xf32>, vector<8x128xf32>, vector<8x128xf32> -> vector<8x128xf32>
    %246 = arith.addf %239, %245 : vector<8x128xf32>
    %c20_i32_57 = arith.constant 20 : i32
    %247 = tpu.dynamic_rotate %236 by %c20_i32_57 dim 1 : vector<8x128xf32>, i32 -> vector<8x128xf32>
    %248 = vector.extract_strided_slice %1 {offsets = [1, 0], sizes = [1, 128], strides = [1, 1]} : vector<27x128xf32> to vector<1x128xf32>
    %249 = vector.broadcast %248 : vector<1x128xf32> to vector<8x128xf32>
    %250 = arith.mulf %247, %249 : vector<8x128xf32>
    %251 = vector.extract_strided_slice %237 {offsets = [8, 0], sizes = [8, 8], strides = [1, 1]} : vector<216x8xf32> to vector<8x8xf32>
    %cst_58 = arith.constant dense<0.000000e+00> : vector<8x128xf32>
    %252 = tpu.matmul %251, %250, %cst_58 {dimension_numbers = #tpu.dot_dimension_numbers<[1], [0], [0], [1], [0, 0, 1, 1], [], []>} : vector<8x8xf32>, vector<8x128xf32>, vector<8x128xf32> -> vector<8x128xf32>
    %253 = arith.addf %246, %252 : vector<8x128xf32>
    %c19_i32_59 = arith.constant 19 : i32
    %254 = tpu.dynamic_rotate %236 by %c19_i32_59 dim 1 : vector<8x128xf32>, i32 -> vector<8x128xf32>
    %255 = vector.extract_strided_slice %1 {offsets = [2, 0], sizes = [1, 128], strides = [1, 1]} : vector<27x128xf32> to vector<1x128xf32>
    %256 = vector.broadcast %255 : vector<1x128xf32> to vector<8x128xf32>
    %257 = arith.mulf %254, %256 : vector<8x128xf32>
    %258 = vector.extract_strided_slice %237 {offsets = [16, 0], sizes = [8, 8], strides = [1, 1]} : vector<216x8xf32> to vector<8x8xf32>
    %cst_60 = arith.constant dense<0.000000e+00> : vector<8x128xf32>
    %259 = tpu.matmul %258, %257, %cst_60 {dimension_numbers = #tpu.dot_dimension_numbers<[1], [0], [0], [1], [0, 0, 1, 1], [], []>} : vector<8x8xf32>, vector<8x128xf32>, vector<8x128xf32> -> vector<8x128xf32>
    %260 = arith.addf %253, %259 : vector<8x128xf32>
    %c17_i32_61 = arith.constant 17 : i32
    %261 = tpu.dynamic_rotate %236 by %c17_i32_61 dim 1 : vector<8x128xf32>, i32 -> vector<8x128xf32>
    %262 = vector.extract_strided_slice %1 {offsets = [3, 0], sizes = [1, 128], strides = [1, 1]} : vector<27x128xf32> to vector<1x128xf32>
    %263 = vector.broadcast %262 : vector<1x128xf32> to vector<8x128xf32>
    %264 = arith.mulf %261, %263 : vector<8x128xf32>
    %265 = vector.extract_strided_slice %237 {offsets = [24, 0], sizes = [8, 8], strides = [1, 1]} : vector<216x8xf32> to vector<8x8xf32>
    %cst_62 = arith.constant dense<0.000000e+00> : vector<8x128xf32>
    %266 = tpu.matmul %265, %264, %cst_62 {dimension_numbers = #tpu.dot_dimension_numbers<[1], [0], [0], [1], [0, 0, 1, 1], [], []>} : vector<8x8xf32>, vector<8x128xf32>, vector<8x128xf32> -> vector<8x128xf32>
    %267 = arith.addf %260, %266 : vector<8x128xf32>
    %c16_i32_63 = arith.constant 16 : i32
    %268 = tpu.dynamic_rotate %236 by %c16_i32_63 dim 1 : vector<8x128xf32>, i32 -> vector<8x128xf32>
    %269 = vector.extract_strided_slice %1 {offsets = [4, 0], sizes = [1, 128], strides = [1, 1]} : vector<27x128xf32> to vector<1x128xf32>
    %270 = vector.broadcast %269 : vector<1x128xf32> to vector<8x128xf32>
    %271 = arith.mulf %268, %270 : vector<8x128xf32>
    %272 = vector.extract_strided_slice %237 {offsets = [32, 0], sizes = [8, 8], strides = [1, 1]} : vector<216x8xf32> to vector<8x8xf32>
    %cst_64 = arith.constant dense<0.000000e+00> : vector<8x128xf32>
    %273 = tpu.matmul %272, %271, %cst_64 {dimension_numbers = #tpu.dot_dimension_numbers<[1], [0], [0], [1], [0, 0, 1, 1], [], []>} : vector<8x8xf32>, vector<8x128xf32>, vector<8x128xf32> -> vector<8x128xf32>
    %274 = arith.addf %267, %273 : vector<8x128xf32>
    %c15_i32_65 = arith.constant 15 : i32
    %275 = tpu.dynamic_rotate %236 by %c15_i32_65 dim 1 : vector<8x128xf32>, i32 -> vector<8x128xf32>
    %276 = vector.extract_strided_slice %1 {offsets = [5, 0], sizes = [1, 128], strides = [1, 1]} : vector<27x128xf32> to vector<1x128xf32>
    %277 = vector.broadcast %276 : vector<1x128xf32> to vector<8x128xf32>
    %278 = arith.mulf %275, %277 : vector<8x128xf32>
    %279 = vector.extract_strided_slice %237 {offsets = [40, 0], sizes = [8, 8], strides = [1, 1]} : vector<216x8xf32> to vector<8x8xf32>
    %cst_66 = arith.constant dense<0.000000e+00> : vector<8x128xf32>
    %280 = tpu.matmul %279, %278, %cst_66 {dimension_numbers = #tpu.dot_dimension_numbers<[1], [0], [0], [1], [0, 0, 1, 1], [], []>} : vector<8x8xf32>, vector<8x128xf32>, vector<8x128xf32> -> vector<8x128xf32>
    %281 = arith.addf %274, %280 : vector<8x128xf32>
    %c13_i32_67 = arith.constant 13 : i32
    %282 = tpu.dynamic_rotate %236 by %c13_i32_67 dim 1 : vector<8x128xf32>, i32 -> vector<8x128xf32>
    %283 = vector.extract_strided_slice %1 {offsets = [6, 0], sizes = [1, 128], strides = [1, 1]} : vector<27x128xf32> to vector<1x128xf32>
    %284 = vector.broadcast %283 : vector<1x128xf32> to vector<8x128xf32>
    %285 = arith.mulf %282, %284 : vector<8x128xf32>
    %286 = vector.extract_strided_slice %237 {offsets = [48, 0], sizes = [8, 8], strides = [1, 1]} : vector<216x8xf32> to vector<8x8xf32>
    %cst_68 = arith.constant dense<0.000000e+00> : vector<8x128xf32>
    %287 = tpu.matmul %286, %285, %cst_68 {dimension_numbers = #tpu.dot_dimension_numbers<[1], [0], [0], [1], [0, 0, 1, 1], [], []>} : vector<8x8xf32>, vector<8x128xf32>, vector<8x128xf32> -> vector<8x128xf32>
    %288 = arith.addf %281, %287 : vector<8x128xf32>
    %c12_i32_69 = arith.constant 12 : i32
    %289 = tpu.dynamic_rotate %236 by %c12_i32_69 dim 1 : vector<8x128xf32>, i32 -> vector<8x128xf32>
    %290 = vector.extract_strided_slice %1 {offsets = [7, 0], sizes = [1, 128], strides = [1, 1]} : vector<27x128xf32> to vector<1x128xf32>
    %291 = vector.broadcast %290 : vector<1x128xf32> to vector<8x128xf32>
    %292 = arith.mulf %289, %291 : vector<8x128xf32>
    %293 = vector.extract_strided_slice %237 {offsets = [56, 0], sizes = [8, 8], strides = [1, 1]} : vector<216x8xf32> to vector<8x8xf32>
    %cst_70 = arith.constant dense<0.000000e+00> : vector<8x128xf32>
    %294 = tpu.matmul %293, %292, %cst_70 {dimension_numbers = #tpu.dot_dimension_numbers<[1], [0], [0], [1], [0, 0, 1, 1], [], []>} : vector<8x8xf32>, vector<8x128xf32>, vector<8x128xf32> -> vector<8x128xf32>
    %295 = arith.addf %288, %294 : vector<8x128xf32>
    %c11_i32_71 = arith.constant 11 : i32
    %296 = tpu.dynamic_rotate %236 by %c11_i32_71 dim 1 : vector<8x128xf32>, i32 -> vector<8x128xf32>
    %297 = vector.extract_strided_slice %1 {offsets = [8, 0], sizes = [1, 128], strides = [1, 1]} : vector<27x128xf32> to vector<1x128xf32>
    %298 = vector.broadcast %297 : vector<1x128xf32> to vector<8x128xf32>
    %299 = arith.mulf %296, %298 : vector<8x128xf32>
    %300 = vector.extract_strided_slice %237 {offsets = [64, 0], sizes = [8, 8], strides = [1, 1]} : vector<216x8xf32> to vector<8x8xf32>
    %cst_72 = arith.constant dense<0.000000e+00> : vector<8x128xf32>
    %301 = tpu.matmul %300, %299, %cst_72 {dimension_numbers = #tpu.dot_dimension_numbers<[1], [0], [0], [1], [0, 0, 1, 1], [], []>} : vector<8x8xf32>, vector<8x128xf32>, vector<8x128xf32> -> vector<8x128xf32>
    %302 = arith.addf %295, %301 : vector<8x128xf32>
    %c5_i32_73 = arith.constant 5 : i32
    %303 = tpu.dynamic_rotate %236 by %c5_i32_73 dim 1 : vector<8x128xf32>, i32 -> vector<8x128xf32>
    %304 = vector.extract_strided_slice %1 {offsets = [9, 0], sizes = [1, 128], strides = [1, 1]} : vector<27x128xf32> to vector<1x128xf32>
    %305 = vector.broadcast %304 : vector<1x128xf32> to vector<8x128xf32>
    %306 = arith.mulf %303, %305 : vector<8x128xf32>
    %307 = vector.extract_strided_slice %237 {offsets = [72, 0], sizes = [8, 8], strides = [1, 1]} : vector<216x8xf32> to vector<8x8xf32>
    %cst_74 = arith.constant dense<0.000000e+00> : vector<8x128xf32>
    %308 = tpu.matmul %307, %306, %cst_74 {dimension_numbers = #tpu.dot_dimension_numbers<[1], [0], [0], [1], [0, 0, 1, 1], [], []>} : vector<8x8xf32>, vector<8x128xf32>, vector<8x128xf32> -> vector<8x128xf32>
    %309 = arith.addf %302, %308 : vector<8x128xf32>
    %c4_i32_75 = arith.constant 4 : i32
    %310 = tpu.dynamic_rotate %236 by %c4_i32_75 dim 1 : vector<8x128xf32>, i32 -> vector<8x128xf32>
    %311 = vector.extract_strided_slice %1 {offsets = [10, 0], sizes = [1, 128], strides = [1, 1]} : vector<27x128xf32> to vector<1x128xf32>
    %312 = vector.broadcast %311 : vector<1x128xf32> to vector<8x128xf32>
    %313 = arith.mulf %310, %312 : vector<8x128xf32>
    %314 = vector.extract_strided_slice %237 {offsets = [80, 0], sizes = [8, 8], strides = [1, 1]} : vector<216x8xf32> to vector<8x8xf32>
    %cst_76 = arith.constant dense<0.000000e+00> : vector<8x128xf32>
    %315 = tpu.matmul %314, %313, %cst_76 {dimension_numbers = #tpu.dot_dimension_numbers<[1], [0], [0], [1], [0, 0, 1, 1], [], []>} : vector<8x8xf32>, vector<8x128xf32>, vector<8x128xf32> -> vector<8x128xf32>
    %316 = arith.addf %309, %315 : vector<8x128xf32>
    %c3_i32_77 = arith.constant 3 : i32
    %317 = tpu.dynamic_rotate %236 by %c3_i32_77 dim 1 : vector<8x128xf32>, i32 -> vector<8x128xf32>
    %318 = vector.extract_strided_slice %1 {offsets = [11, 0], sizes = [1, 128], strides = [1, 1]} : vector<27x128xf32> to vector<1x128xf32>
    %319 = vector.broadcast %318 : vector<1x128xf32> to vector<8x128xf32>
    %320 = arith.mulf %317, %319 : vector<8x128xf32>
    %321 = vector.extract_strided_slice %237 {offsets = [88, 0], sizes = [8, 8], strides = [1, 1]} : vector<216x8xf32> to vector<8x8xf32>
    %cst_78 = arith.constant dense<0.000000e+00> : vector<8x128xf32>
    %322 = tpu.matmul %321, %320, %cst_78 {dimension_numbers = #tpu.dot_dimension_numbers<[1], [0], [0], [1], [0, 0, 1, 1], [], []>} : vector<8x8xf32>, vector<8x128xf32>, vector<8x128xf32> -> vector<8x128xf32>
    %323 = arith.addf %316, %322 : vector<8x128xf32>
    %c1_i32_79 = arith.constant 1 : i32
    %324 = tpu.dynamic_rotate %236 by %c1_i32_79 dim 1 : vector<8x128xf32>, i32 -> vector<8x128xf32>
    %325 = vector.extract_strided_slice %1 {offsets = [12, 0], sizes = [1, 128], strides = [1, 1]} : vector<27x128xf32> to vector<1x128xf32>
    %326 = vector.broadcast %325 : vector<1x128xf32> to vector<8x128xf32>
    %327 = arith.mulf %324, %326 : vector<8x128xf32>
    %328 = vector.extract_strided_slice %237 {offsets = [96, 0], sizes = [8, 8], strides = [1, 1]} : vector<216x8xf32> to vector<8x8xf32>
    %cst_80 = arith.constant dense<0.000000e+00> : vector<8x128xf32>
    %329 = tpu.matmul %328, %327, %cst_80 {dimension_numbers = #tpu.dot_dimension_numbers<[1], [0], [0], [1], [0, 0, 1, 1], [], []>} : vector<8x8xf32>, vector<8x128xf32>, vector<8x128xf32> -> vector<8x128xf32>
    %330 = arith.addf %323, %329 : vector<8x128xf32>
    %331 = vector.extract_strided_slice %1 {offsets = [13, 0], sizes = [1, 128], strides = [1, 1]} : vector<27x128xf32> to vector<1x128xf32>
    %332 = vector.broadcast %331 : vector<1x128xf32> to vector<8x128xf32>
    %333 = arith.mulf %236, %332 : vector<8x128xf32>
    %334 = vector.extract_strided_slice %237 {offsets = [104, 0], sizes = [8, 8], strides = [1, 1]} : vector<216x8xf32> to vector<8x8xf32>
    %cst_81 = arith.constant dense<0.000000e+00> : vector<8x128xf32>
    %335 = tpu.matmul %334, %333, %cst_81 {dimension_numbers = #tpu.dot_dimension_numbers<[1], [0], [0], [1], [0, 0, 1, 1], [], []>} : vector<8x8xf32>, vector<8x128xf32>, vector<8x128xf32> -> vector<8x128xf32>
    %336 = arith.addf %330, %335 : vector<8x128xf32>
    %c127_i32_82 = arith.constant 127 : i32
    %337 = tpu.dynamic_rotate %236 by %c127_i32_82 dim 1 : vector<8x128xf32>, i32 -> vector<8x128xf32>
    %338 = vector.extract_strided_slice %1 {offsets = [14, 0], sizes = [1, 128], strides = [1, 1]} : vector<27x128xf32> to vector<1x128xf32>
    %339 = vector.broadcast %338 : vector<1x128xf32> to vector<8x128xf32>
    %340 = arith.mulf %337, %339 : vector<8x128xf32>
    %341 = vector.extract_strided_slice %237 {offsets = [112, 0], sizes = [8, 8], strides = [1, 1]} : vector<216x8xf32> to vector<8x8xf32>
    %cst_83 = arith.constant dense<0.000000e+00> : vector<8x128xf32>
    %342 = tpu.matmul %341, %340, %cst_83 {dimension_numbers = #tpu.dot_dimension_numbers<[1], [0], [0], [1], [0, 0, 1, 1], [], []>} : vector<8x8xf32>, vector<8x128xf32>, vector<8x128xf32> -> vector<8x128xf32>
    %343 = arith.addf %336, %342 : vector<8x128xf32>
    %c125_i32_84 = arith.constant 125 : i32
    %344 = tpu.dynamic_rotate %236 by %c125_i32_84 dim 1 : vector<8x128xf32>, i32 -> vector<8x128xf32>
    %345 = vector.extract_strided_slice %1 {offsets = [15, 0], sizes = [1, 128], strides = [1, 1]} : vector<27x128xf32> to vector<1x128xf32>
    %346 = vector.broadcast %345 : vector<1x128xf32> to vector<8x128xf32>
    %347 = arith.mulf %344, %346 : vector<8x128xf32>
    %348 = vector.extract_strided_slice %237 {offsets = [120, 0], sizes = [8, 8], strides = [1, 1]} : vector<216x8xf32> to vector<8x8xf32>
    %cst_85 = arith.constant dense<0.000000e+00> : vector<8x128xf32>
    %349 = tpu.matmul %348, %347, %cst_85 {dimension_numbers = #tpu.dot_dimension_numbers<[1], [0], [0], [1], [0, 0, 1, 1], [], []>} : vector<8x8xf32>, vector<8x128xf32>, vector<8x128xf32> -> vector<8x128xf32>
    %350 = arith.addf %343, %349 : vector<8x128xf32>
    %c124_i32_86 = arith.constant 124 : i32
    %351 = tpu.dynamic_rotate %236 by %c124_i32_86 dim 1 : vector<8x128xf32>, i32 -> vector<8x128xf32>
    %352 = vector.extract_strided_slice %1 {offsets = [16, 0], sizes = [1, 128], strides = [1, 1]} : vector<27x128xf32> to vector<1x128xf32>
    %353 = vector.broadcast %352 : vector<1x128xf32> to vector<8x128xf32>
    %354 = arith.mulf %351, %353 : vector<8x128xf32>
    %355 = vector.extract_strided_slice %237 {offsets = [128, 0], sizes = [8, 8], strides = [1, 1]} : vector<216x8xf32> to vector<8x8xf32>
    %cst_87 = arith.constant dense<0.000000e+00> : vector<8x128xf32>
    %356 = tpu.matmul %355, %354, %cst_87 {dimension_numbers = #tpu.dot_dimension_numbers<[1], [0], [0], [1], [0, 0, 1, 1], [], []>} : vector<8x8xf32>, vector<8x128xf32>, vector<8x128xf32> -> vector<8x128xf32>
    %357 = arith.addf %350, %356 : vector<8x128xf32>
    %c123_i32_88 = arith.constant 123 : i32
    %358 = tpu.dynamic_rotate %236 by %c123_i32_88 dim 1 : vector<8x128xf32>, i32 -> vector<8x128xf32>
    %359 = vector.extract_strided_slice %1 {offsets = [17, 0], sizes = [1, 128], strides = [1, 1]} : vector<27x128xf32> to vector<1x128xf32>
    %360 = vector.broadcast %359 : vector<1x128xf32> to vector<8x128xf32>
    %361 = arith.mulf %358, %360 : vector<8x128xf32>
    %362 = vector.extract_strided_slice %237 {offsets = [136, 0], sizes = [8, 8], strides = [1, 1]} : vector<216x8xf32> to vector<8x8xf32>
    %cst_89 = arith.constant dense<0.000000e+00> : vector<8x128xf32>
    %363 = tpu.matmul %362, %361, %cst_89 {dimension_numbers = #tpu.dot_dimension_numbers<[1], [0], [0], [1], [0, 0, 1, 1], [], []>} : vector<8x8xf32>, vector<8x128xf32>, vector<8x128xf32> -> vector<8x128xf32>
    %364 = arith.addf %357, %363 : vector<8x128xf32>
    %c117_i32_90 = arith.constant 117 : i32
    %365 = tpu.dynamic_rotate %236 by %c117_i32_90 dim 1 : vector<8x128xf32>, i32 -> vector<8x128xf32>
    %366 = vector.extract_strided_slice %1 {offsets = [18, 0], sizes = [1, 128], strides = [1, 1]} : vector<27x128xf32> to vector<1x128xf32>
    %367 = vector.broadcast %366 : vector<1x128xf32> to vector<8x128xf32>
    %368 = arith.mulf %365, %367 : vector<8x128xf32>
    %369 = vector.extract_strided_slice %237 {offsets = [144, 0], sizes = [8, 8], strides = [1, 1]} : vector<216x8xf32> to vector<8x8xf32>
    %cst_91 = arith.constant dense<0.000000e+00> : vector<8x128xf32>
    %370 = tpu.matmul %369, %368, %cst_91 {dimension_numbers = #tpu.dot_dimension_numbers<[1], [0], [0], [1], [0, 0, 1, 1], [], []>} : vector<8x8xf32>, vector<8x128xf32>, vector<8x128xf32> -> vector<8x128xf32>
    %371 = arith.addf %364, %370 : vector<8x128xf32>
    %c116_i32_92 = arith.constant 116 : i32
    %372 = tpu.dynamic_rotate %236 by %c116_i32_92 dim 1 : vector<8x128xf32>, i32 -> vector<8x128xf32>
    %373 = vector.extract_strided_slice %1 {offsets = [19, 0], sizes = [1, 128], strides = [1, 1]} : vector<27x128xf32> to vector<1x128xf32>
    %374 = vector.broadcast %373 : vector<1x128xf32> to vector<8x128xf32>
    %375 = arith.mulf %372, %374 : vector<8x128xf32>
    %376 = vector.extract_strided_slice %237 {offsets = [152, 0], sizes = [8, 8], strides = [1, 1]} : vector<216x8xf32> to vector<8x8xf32>
    %cst_93 = arith.constant dense<0.000000e+00> : vector<8x128xf32>
    %377 = tpu.matmul %376, %375, %cst_93 {dimension_numbers = #tpu.dot_dimension_numbers<[1], [0], [0], [1], [0, 0, 1, 1], [], []>} : vector<8x8xf32>, vector<8x128xf32>, vector<8x128xf32> -> vector<8x128xf32>
    %378 = arith.addf %371, %377 : vector<8x128xf32>
    %c115_i32_94 = arith.constant 115 : i32
    %379 = tpu.dynamic_rotate %236 by %c115_i32_94 dim 1 : vector<8x128xf32>, i32 -> vector<8x128xf32>
    %380 = vector.extract_strided_slice %1 {offsets = [20, 0], sizes = [1, 128], strides = [1, 1]} : vector<27x128xf32> to vector<1x128xf32>
    %381 = vector.broadcast %380 : vector<1x128xf32> to vector<8x128xf32>
    %382 = arith.mulf %379, %381 : vector<8x128xf32>
    %383 = vector.extract_strided_slice %237 {offsets = [160, 0], sizes = [8, 8], strides = [1, 1]} : vector<216x8xf32> to vector<8x8xf32>
    %cst_95 = arith.constant dense<0.000000e+00> : vector<8x128xf32>
    %384 = tpu.matmul %383, %382, %cst_95 {dimension_numbers = #tpu.dot_dimension_numbers<[1], [0], [0], [1], [0, 0, 1, 1], [], []>} : vector<8x8xf32>, vector<8x128xf32>, vector<8x128xf32> -> vector<8x128xf32>
    %385 = arith.addf %378, %384 : vector<8x128xf32>
    %c113_i32_96 = arith.constant 113 : i32
    %386 = tpu.dynamic_rotate %236 by %c113_i32_96 dim 1 : vector<8x128xf32>, i32 -> vector<8x128xf32>
    %387 = vector.extract_strided_slice %1 {offsets = [21, 0], sizes = [1, 128], strides = [1, 1]} : vector<27x128xf32> to vector<1x128xf32>
    %388 = vector.broadcast %387 : vector<1x128xf32> to vector<8x128xf32>
    %389 = arith.mulf %386, %388 : vector<8x128xf32>
    %390 = vector.extract_strided_slice %237 {offsets = [168, 0], sizes = [8, 8], strides = [1, 1]} : vector<216x8xf32> to vector<8x8xf32>
    %cst_97 = arith.constant dense<0.000000e+00> : vector<8x128xf32>
    %391 = tpu.matmul %390, %389, %cst_97 {dimension_numbers = #tpu.dot_dimension_numbers<[1], [0], [0], [1], [0, 0, 1, 1], [], []>} : vector<8x8xf32>, vector<8x128xf32>, vector<8x128xf32> -> vector<8x128xf32>
    %392 = arith.addf %385, %391 : vector<8x128xf32>
    %c112_i32_98 = arith.constant 112 : i32
    %393 = tpu.dynamic_rotate %236 by %c112_i32_98 dim 1 : vector<8x128xf32>, i32 -> vector<8x128xf32>
    %394 = vector.extract_strided_slice %1 {offsets = [22, 0], sizes = [1, 128], strides = [1, 1]} : vector<27x128xf32> to vector<1x128xf32>
    %395 = vector.broadcast %394 : vector<1x128xf32> to vector<8x128xf32>
    %396 = arith.mulf %393, %395 : vector<8x128xf32>
    %397 = vector.extract_strided_slice %237 {offsets = [176, 0], sizes = [8, 8], strides = [1, 1]} : vector<216x8xf32> to vector<8x8xf32>
    %cst_99 = arith.constant dense<0.000000e+00> : vector<8x128xf32>
    %398 = tpu.matmul %397, %396, %cst_99 {dimension_numbers = #tpu.dot_dimension_numbers<[1], [0], [0], [1], [0, 0, 1, 1], [], []>} : vector<8x8xf32>, vector<8x128xf32>, vector<8x128xf32> -> vector<8x128xf32>
    %399 = arith.addf %392, %398 : vector<8x128xf32>
    %c111_i32_100 = arith.constant 111 : i32
    %400 = tpu.dynamic_rotate %236 by %c111_i32_100 dim 1 : vector<8x128xf32>, i32 -> vector<8x128xf32>
    %401 = vector.extract_strided_slice %1 {offsets = [23, 0], sizes = [1, 128], strides = [1, 1]} : vector<27x128xf32> to vector<1x128xf32>
    %402 = vector.broadcast %401 : vector<1x128xf32> to vector<8x128xf32>
    %403 = arith.mulf %400, %402 : vector<8x128xf32>
    %404 = vector.extract_strided_slice %237 {offsets = [184, 0], sizes = [8, 8], strides = [1, 1]} : vector<216x8xf32> to vector<8x8xf32>
    %cst_101 = arith.constant dense<0.000000e+00> : vector<8x128xf32>
    %405 = tpu.matmul %404, %403, %cst_101 {dimension_numbers = #tpu.dot_dimension_numbers<[1], [0], [0], [1], [0, 0, 1, 1], [], []>} : vector<8x8xf32>, vector<8x128xf32>, vector<8x128xf32> -> vector<8x128xf32>
    %406 = arith.addf %399, %405 : vector<8x128xf32>
    %c109_i32_102 = arith.constant 109 : i32
    %407 = tpu.dynamic_rotate %236 by %c109_i32_102 dim 1 : vector<8x128xf32>, i32 -> vector<8x128xf32>
    %408 = vector.extract_strided_slice %1 {offsets = [24, 0], sizes = [1, 128], strides = [1, 1]} : vector<27x128xf32> to vector<1x128xf32>
    %409 = vector.broadcast %408 : vector<1x128xf32> to vector<8x128xf32>
    %410 = arith.mulf %407, %409 : vector<8x128xf32>
    %411 = vector.extract_strided_slice %237 {offsets = [192, 0], sizes = [8, 8], strides = [1, 1]} : vector<216x8xf32> to vector<8x8xf32>
    %cst_103 = arith.constant dense<0.000000e+00> : vector<8x128xf32>
    %412 = tpu.matmul %411, %410, %cst_103 {dimension_numbers = #tpu.dot_dimension_numbers<[1], [0], [0], [1], [0, 0, 1, 1], [], []>} : vector<8x8xf32>, vector<8x128xf32>, vector<8x128xf32> -> vector<8x128xf32>
    %413 = arith.addf %406, %412 : vector<8x128xf32>
    %c108_i32_104 = arith.constant 108 : i32
    %414 = tpu.dynamic_rotate %236 by %c108_i32_104 dim 1 : vector<8x128xf32>, i32 -> vector<8x128xf32>
    %415 = vector.extract_strided_slice %1 {offsets = [25, 0], sizes = [1, 128], strides = [1, 1]} : vector<27x128xf32> to vector<1x128xf32>
    %416 = vector.broadcast %415 : vector<1x128xf32> to vector<8x128xf32>
    %417 = arith.mulf %414, %416 : vector<8x128xf32>
    %418 = vector.extract_strided_slice %237 {offsets = [200, 0], sizes = [8, 8], strides = [1, 1]} : vector<216x8xf32> to vector<8x8xf32>
    %cst_105 = arith.constant dense<0.000000e+00> : vector<8x128xf32>
    %419 = tpu.matmul %418, %417, %cst_105 {dimension_numbers = #tpu.dot_dimension_numbers<[1], [0], [0], [1], [0, 0, 1, 1], [], []>} : vector<8x8xf32>, vector<8x128xf32>, vector<8x128xf32> -> vector<8x128xf32>
    %420 = arith.addf %413, %419 : vector<8x128xf32>
    %c107_i32_106 = arith.constant 107 : i32
    %421 = tpu.dynamic_rotate %236 by %c107_i32_106 dim 1 : vector<8x128xf32>, i32 -> vector<8x128xf32>
    %422 = vector.extract_strided_slice %1 {offsets = [26, 0], sizes = [1, 128], strides = [1, 1]} : vector<27x128xf32> to vector<1x128xf32>
    %423 = vector.broadcast %422 : vector<1x128xf32> to vector<8x128xf32>
    %424 = arith.mulf %421, %423 : vector<8x128xf32>
    %425 = vector.extract_strided_slice %237 {offsets = [208, 0], sizes = [8, 8], strides = [1, 1]} : vector<216x8xf32> to vector<8x8xf32>
    %cst_107 = arith.constant dense<0.000000e+00> : vector<8x128xf32>
    %426 = tpu.matmul %425, %424, %cst_107 {dimension_numbers = #tpu.dot_dimension_numbers<[1], [0], [0], [1], [0, 0, 1, 1], [], []>} : vector<8x8xf32>, vector<8x128xf32>, vector<8x128xf32> -> vector<8x128xf32>
    %427 = arith.addf %420, %426 : vector<8x128xf32>
    %428 = vector.broadcast %238 : vector<8x1xf32> to vector<8x128xf32>
    %429 = arith.addf %427, %428 : vector<8x128xf32>
    %c0_108 = arith.constant 0 : index
    %c0_109 = arith.constant 0 : index
    %430 = vector.load %arg12[%c0_108, %c0_109] : memref<8x1xf32, #tpu.memory_space<vmem>>, vector<8x1xf32>
    %c0_110 = arith.constant 0 : index
    %c0_111 = arith.constant 0 : index
    %431 = vector.load %arg13[%c0_110, %c0_111] : memref<8x1xf32, #tpu.memory_space<vmem>>, vector<8x1xf32>
    %cst_112 = arith.constant dense<0.000000e+00> : vector<8xf32>
    %432 = vector.multi_reduction <add>, %429, %cst_112 [1] : vector<8x128xf32> to vector<8xf32>
    %433 = vector.shape_cast %432 : vector<8xf32> to vector<8x1xf32>
    %cst_113 = arith.constant 7.812500e-03 : f32
    %434 = vector.broadcast %cst_113 : f32 to vector<8x1xf32>
    %435 = arith.mulf %433, %434 : vector<8x1xf32>
    %436 = arith.mulf %429, %429 : vector<8x128xf32>
    %cst_114 = arith.constant dense<0.000000e+00> : vector<8xf32>
    %437 = vector.multi_reduction <add>, %436, %cst_114 [1] : vector<8x128xf32> to vector<8xf32>
    %438 = vector.shape_cast %437 : vector<8xf32> to vector<8x1xf32>
    %cst_115 = arith.constant 7.812500e-03 : f32
    %439 = vector.broadcast %cst_115 : f32 to vector<8x1xf32>
    %440 = arith.mulf %438, %439 : vector<8x1xf32>
    %441 = arith.mulf %435, %435 : vector<8x1xf32>
    %442 = arith.subf %440, %441 : vector<8x1xf32>
    %443 = vector.broadcast %435 : vector<8x1xf32> to vector<8x128xf32>
    %444 = arith.subf %429, %443 : vector<8x128xf32>
    %cst_116 = arith.constant 9.99999974E-5 : f32
    %445 = vector.broadcast %cst_116 : f32 to vector<8x1xf32>
    %446 = arith.addf %442, %445 : vector<8x1xf32>
    %447 = math.rsqrt %446 : vector<8x1xf32>
    %448 = arith.mulf %447, %430 : vector<8x1xf32>
    %449 = vector.broadcast %448 : vector<8x1xf32> to vector<8x128xf32>
    %450 = arith.mulf %444, %449 : vector<8x128xf32>
    %451 = vector.broadcast %431 : vector<8x1xf32> to vector<8x128xf32>
    %452 = arith.addf %450, %451 : vector<8x128xf32>
    %cst_117 = arith.constant 0.000000e+00 : f32
    %453 = vector.broadcast %cst_117 : f32 to vector<8x128xf32>
    %454 = arith.cmpf oge, %452, %453 : vector<8x128xf32>
    %cst_118 = arith.constant 1.000000e-01 : f32
    %455 = vector.broadcast %cst_118 : f32 to vector<8x128xf32>
    %456 = arith.mulf %455, %452 : vector<8x128xf32>
    %457 = arith.select %454, %452, %456 : vector<8x128xi1>, vector<8x128xf32>
    %c0_119 = arith.constant 0 : index
    %c0_120 = arith.constant 0 : index
    %458 = vector.load %arg3[%c0_119, %c0_120] : memref<8x128xi32, #tpu.memory_space<vmem>>, vector<8x128xi32>
    %c0_121 = arith.constant 0 : index
    %c0_122 = arith.constant 0 : index
    %459 = vector.load %arg4[%c0_121, %c0_122] : memref<8x128xf32, #tpu.memory_space<vmem>>, vector<8x128xf32>
    %460 = tpu.iota {dimensions = array<i32: 0>} : vector<128x128xi32>
    %cst_123 = arith.constant 0.000000e+00 : f32
    %461 = vector.broadcast %cst_123 : f32 to vector<128x128xf32>
    %462 = vector.extract_strided_slice %458 {offsets = [0, 0], sizes = [1, 128], strides = [1, 1]} : vector<8x128xi32> to vector<1x128xi32>
    %463 = vector.broadcast %462 : vector<1x128xi32> to vector<128x128xi32>
    %464 = arith.cmpi eq, %460, %463 : vector<128x128xi32>
    %465 = vector.extract_strided_slice %459 {offsets = [0, 0], sizes = [1, 128], strides = [1, 1]} : vector<8x128xf32> to vector<1x128xf32>
    %cst_124 = arith.constant 0.000000e+00 : f32
    %466 = vector.shape_cast %465 : vector<1x128xf32> to vector<1x128xf32>
    %467 = vector.broadcast %466 : vector<1x128xf32> to vector<128x128xf32>
    %468 = vector.broadcast %cst_124 : f32 to vector<128x128xf32>
    %469 = arith.select %464, %467, %468 : vector<128x128xi1>, vector<128x128xf32>
    %470 = arith.addf %461, %469 : vector<128x128xf32>
    %471 = vector.extract_strided_slice %458 {offsets = [1, 0], sizes = [1, 128], strides = [1, 1]} : vector<8x128xi32> to vector<1x128xi32>
    %472 = vector.broadcast %471 : vector<1x128xi32> to vector<128x128xi32>
    %473 = arith.cmpi eq, %460, %472 : vector<128x128xi32>
    %474 = vector.extract_strided_slice %459 {offsets = [1, 0], sizes = [1, 128], strides = [1, 1]} : vector<8x128xf32> to vector<1x128xf32>
    %cst_125 = arith.constant 0.000000e+00 : f32
    %475 = vector.shape_cast %474 : vector<1x128xf32> to vector<1x128xf32>
    %476 = vector.broadcast %475 : vector<1x128xf32> to vector<128x128xf32>
    %477 = vector.broadcast %cst_125 : f32 to vector<128x128xf32>
    %478 = arith.select %473, %476, %477 : vector<128x128xi1>, vector<128x128xf32>
    %479 = arith.addf %470, %478 : vector<128x128xf32>
    %480 = vector.extract_strided_slice %458 {offsets = [2, 0], sizes = [1, 128], strides = [1, 1]} : vector<8x128xi32> to vector<1x128xi32>
    %481 = vector.broadcast %480 : vector<1x128xi32> to vector<128x128xi32>
    %482 = arith.cmpi eq, %460, %481 : vector<128x128xi32>
    %483 = vector.extract_strided_slice %459 {offsets = [2, 0], sizes = [1, 128], strides = [1, 1]} : vector<8x128xf32> to vector<1x128xf32>
    %cst_126 = arith.constant 0.000000e+00 : f32
    %484 = vector.shape_cast %483 : vector<1x128xf32> to vector<1x128xf32>
    %485 = vector.broadcast %484 : vector<1x128xf32> to vector<128x128xf32>
    %486 = vector.broadcast %cst_126 : f32 to vector<128x128xf32>
    %487 = arith.select %482, %485, %486 : vector<128x128xi1>, vector<128x128xf32>
    %488 = arith.addf %479, %487 : vector<128x128xf32>
    %489 = vector.extract_strided_slice %458 {offsets = [3, 0], sizes = [1, 128], strides = [1, 1]} : vector<8x128xi32> to vector<1x128xi32>
    %490 = vector.broadcast %489 : vector<1x128xi32> to vector<128x128xi32>
    %491 = arith.cmpi eq, %460, %490 : vector<128x128xi32>
    %492 = vector.extract_strided_slice %459 {offsets = [3, 0], sizes = [1, 128], strides = [1, 1]} : vector<8x128xf32> to vector<1x128xf32>
    %cst_127 = arith.constant 0.000000e+00 : f32
    %493 = vector.shape_cast %492 : vector<1x128xf32> to vector<1x128xf32>
    %494 = vector.broadcast %493 : vector<1x128xf32> to vector<128x128xf32>
    %495 = vector.broadcast %cst_127 : f32 to vector<128x128xf32>
    %496 = arith.select %491, %494, %495 : vector<128x128xi1>, vector<128x128xf32>
    %497 = arith.addf %488, %496 : vector<128x128xf32>
    %498 = vector.extract_strided_slice %458 {offsets = [4, 0], sizes = [1, 128], strides = [1, 1]} : vector<8x128xi32> to vector<1x128xi32>
    %499 = vector.broadcast %498 : vector<1x128xi32> to vector<128x128xi32>
    %500 = arith.cmpi eq, %460, %499 : vector<128x128xi32>
    %501 = vector.extract_strided_slice %459 {offsets = [4, 0], sizes = [1, 128], strides = [1, 1]} : vector<8x128xf32> to vector<1x128xf32>
    %cst_128 = arith.constant 0.000000e+00 : f32
    %502 = vector.shape_cast %501 : vector<1x128xf32> to vector<1x128xf32>
    %503 = vector.broadcast %502 : vector<1x128xf32> to vector<128x128xf32>
    %504 = vector.broadcast %cst_128 : f32 to vector<128x128xf32>
    %505 = arith.select %500, %503, %504 : vector<128x128xi1>, vector<128x128xf32>
    %506 = arith.addf %497, %505 : vector<128x128xf32>
    %507 = vector.extract_strided_slice %458 {offsets = [5, 0], sizes = [1, 128], strides = [1, 1]} : vector<8x128xi32> to vector<1x128xi32>
    %508 = vector.broadcast %507 : vector<1x128xi32> to vector<128x128xi32>
    %509 = arith.cmpi eq, %460, %508 : vector<128x128xi32>
    %510 = vector.extract_strided_slice %459 {offsets = [5, 0], sizes = [1, 128], strides = [1, 1]} : vector<8x128xf32> to vector<1x128xf32>
    %cst_129 = arith.constant 0.000000e+00 : f32
    %511 = vector.shape_cast %510 : vector<1x128xf32> to vector<1x128xf32>
    %512 = vector.broadcast %511 : vector<1x128xf32> to vector<128x128xf32>
    %513 = vector.broadcast %cst_129 : f32 to vector<128x128xf32>
    %514 = arith.select %509, %512, %513 : vector<128x128xi1>, vector<128x128xf32>
    %515 = arith.addf %506, %514 : vector<128x128xf32>
    %516 = vector.extract_strided_slice %458 {offsets = [6, 0], sizes = [1, 128], strides = [1, 1]} : vector<8x128xi32> to vector<1x128xi32>
    %517 = vector.broadcast %516 : vector<1x128xi32> to vector<128x128xi32>
    %518 = arith.cmpi eq, %460, %517 : vector<128x128xi32>
    %519 = vector.extract_strided_slice %459 {offsets = [6, 0], sizes = [1, 128], strides = [1, 1]} : vector<8x128xf32> to vector<1x128xf32>
    %cst_130 = arith.constant 0.000000e+00 : f32
    %520 = vector.shape_cast %519 : vector<1x128xf32> to vector<1x128xf32>
    %521 = vector.broadcast %520 : vector<1x128xf32> to vector<128x128xf32>
    %522 = vector.broadcast %cst_130 : f32 to vector<128x128xf32>
    %523 = arith.select %518, %521, %522 : vector<128x128xi1>, vector<128x128xf32>
    %524 = arith.addf %515, %523 : vector<128x128xf32>
    %525 = vector.extract_strided_slice %458 {offsets = [7, 0], sizes = [1, 128], strides = [1, 1]} : vector<8x128xi32> to vector<1x128xi32>
    %526 = vector.broadcast %525 : vector<1x128xi32> to vector<128x128xi32>
    %527 = arith.cmpi eq, %460, %526 : vector<128x128xi32>
    %528 = vector.extract_strided_slice %459 {offsets = [7, 0], sizes = [1, 128], strides = [1, 1]} : vector<8x128xf32> to vector<1x128xf32>
    %cst_131 = arith.constant 0.000000e+00 : f32
    %529 = vector.shape_cast %528 : vector<1x128xf32> to vector<1x128xf32>
    %530 = vector.broadcast %529 : vector<1x128xf32> to vector<128x128xf32>
    %531 = vector.broadcast %cst_131 : f32 to vector<128x128xf32>
    %532 = arith.select %527, %530, %531 : vector<128x128xi1>, vector<128x128xf32>
    %533 = arith.addf %524, %532 : vector<128x128xf32>
    %cst_132 = arith.constant dense<0.000000e+00> : vector<8x128xf32>
    %534 = tpu.matmul %457, %533, %cst_132 {dimension_numbers = #tpu.dot_dimension_numbers<[1], [0], [0], [1], [0, 0, 1, 1], [], []>} : vector<8x128xf32>, vector<128x128xf32>, vector<8x128xf32> -> vector<8x128xf32>
    %c0_133 = arith.constant 0 : index
    %c0_134 = arith.constant 0 : index
    %535 = vector.load %arg14[%c0_133, %c0_134] : memref<8x4xf32, #tpu.memory_space<vmem>>, vector<8x4xf32>
    %cst_135 = arith.constant dense<0.000000e+00> : vector<8x128xf32>
    %536 = tpu.matmul %535, %0, %cst_135 {dimension_numbers = #tpu.dot_dimension_numbers<[1], [0], [0], [1], [0, 0, 1, 1], [], []>} : vector<8x4xf32>, vector<4x128xf32>, vector<8x128xf32> -> vector<8x128xf32>
    %c0_136 = arith.constant 0 : index
    %c0_137 = arith.constant 0 : index
    %537 = vector.load %arg15[%c0_136, %c0_137] : memref<8x1xf32, #tpu.memory_space<vmem>>, vector<8x1xf32>
    %538 = vector.broadcast %537 : vector<8x1xf32> to vector<8x128xf32>
    %539 = arith.addf %536, %538 : vector<8x128xf32>
    %c0_138 = arith.constant 0 : index
    %c0_139 = arith.constant 0 : index
    %540 = vector.load %arg16[%c0_138, %c0_139] : memref<8x1xf32, #tpu.memory_space<vmem>>, vector<8x1xf32>
    %c0_140 = arith.constant 0 : index
    %c0_141 = arith.constant 0 : index
    %541 = vector.load %arg17[%c0_140, %c0_141] : memref<8x1xf32, #tpu.memory_space<vmem>>, vector<8x1xf32>
    %cst_142 = arith.constant dense<0.000000e+00> : vector<8xf32>
    %542 = vector.multi_reduction <add>, %539, %cst_142 [1] : vector<8x128xf32> to vector<8xf32>
    %543 = vector.shape_cast %542 : vector<8xf32> to vector<8x1xf32>
    %cst_143 = arith.constant 7.812500e-03 : f32
    %544 = vector.broadcast %cst_143 : f32 to vector<8x1xf32>
    %545 = arith.mulf %543, %544 : vector<8x1xf32>
    %546 = arith.mulf %539, %539 : vector<8x128xf32>
    %cst_144 = arith.constant dense<0.000000e+00> : vector<8xf32>
    %547 = vector.multi_reduction <add>, %546, %cst_144 [1] : vector<8x128xf32> to vector<8xf32>
    %548 = vector.shape_cast %547 : vector<8xf32> to vector<8x1xf32>
    %cst_145 = arith.constant 7.812500e-03 : f32
    %549 = vector.broadcast %cst_145 : f32 to vector<8x1xf32>
    %550 = arith.mulf %548, %549 : vector<8x1xf32>
    %551 = arith.mulf %545, %545 : vector<8x1xf32>
    %552 = arith.subf %550, %551 : vector<8x1xf32>
    %553 = vector.broadcast %545 : vector<8x1xf32> to vector<8x128xf32>
    %554 = arith.subf %539, %553 : vector<8x128xf32>
    %cst_146 = arith.constant 9.99999974E-6 : f32
    %555 = vector.broadcast %cst_146 : f32 to vector<8x1xf32>
    %556 = arith.addf %552, %555 : vector<8x1xf32>
    %557 = math.rsqrt %556 : vector<8x1xf32>
    %558 = arith.mulf %557, %540 : vector<8x1xf32>
    %559 = vector.broadcast %558 : vector<8x1xf32> to vector<8x128xf32>
    %560 = arith.mulf %554, %559 : vector<8x128xf32>
    %561 = vector.broadcast %541 : vector<8x1xf32> to vector<8x128xf32>
    %562 = arith.addf %560, %561 : vector<8x128xf32>
    %cst_147 = arith.constant 0.000000e+00 : f32
    %563 = vector.broadcast %cst_147 : f32 to vector<8x128xf32>
    %564 = arith.maximumf %562, %563 : vector<8x128xf32>
    %565 = arith.addf %534, %564 : vector<8x128xf32>
    %c0_148 = arith.constant 0 : index
    %c0_149 = arith.constant 0 : index
    %566 = vector.load %arg18[%c0_148, %c0_149] : memref<8x128xf32, #tpu.memory_space<vmem>>, vector<8x128xf32>
    tpu.vector_store %arg18[%c0_148, %c0_149], %565 {strides = array<i32>} : memref<8x128xf32, #tpu.memory_space<vmem>>, vector<8x128xf32>,
    return
  }
  func.func @transform_0(%arg0: i32) -> (i32, i32) {
    %c0_i32 = arith.constant 0 : i32
    %c0_i32_0 = arith.constant 0 : i32
    %c0_i32_1 = arith.constant 0 : i32
    return %c0_i32, %c0_i32_0 : i32, i32
  }
  func.func @transform_1(%arg0: i32) -> (i32, i32) {
    %c0_i32 = arith.constant 0 : i32
    %c0_i32_0 = arith.constant 0 : i32
    %c0_i32_1 = arith.constant 0 : i32
    return %c0_i32, %c0_i32_0 : i32, i32
  }
  func.func @transform_2(%arg0: i32) -> (i32, i32) {
    %c0_i32 = arith.constant 0 : i32
    %c0_i32_0 = arith.constant 0 : i32
    %c0_i32_1 = arith.constant 0 : i32
    return %c0_i32, %c0_i32_0 : i32, i32
  }
  func.func @transform_3(%arg0: i32) -> (i32, i32) {
    %c0_i32 = arith.constant 0 : i32
    %c0_i32_0 = arith.constant 0 : i32
    %c0_i32_1 = arith.constant 0 : i32
    return %c0_i32, %c0_i32_0 : i32, i32
  }
  func.func @transform_4(%arg0: i32) -> (i32, i32) {
    %c0_i32 = arith.constant 0 : i32
    %c0_i32_0 = arith.constant 0 : i32
    %c0_i32_1 = arith.constant 0 : i32
    return %c0_i32, %c0_i32_0 : i32, i32
  }
  func.func @transform_5(%arg0: i32) -> (i32, i32) {
    %c0_i32 = arith.constant 0 : i32
    %c0_i32_0 = arith.constant 0 : i32
    %c0_i32_1 = arith.constant 0 : i32
    return %c0_i32, %c0_i32_0 : i32, i32
  }
  func.func @transform_6(%arg0: i32) -> (i32, i32) {
    %c0_i32 = arith.constant 0 : i32
    %c0_i32_0 = arith.constant 0 : i32
    %c0_i32_1 = arith.constant 0 : i32
    return %c0_i32, %c0_i32_0 : i32, i32
  }
  func.func @transform_7(%arg0: i32) -> (i32, i32) {
    %c0_i32 = arith.constant 0 : i32
    %c0_i32_0 = arith.constant 0 : i32
    %c0_i32_1 = arith.constant 0 : i32
    return %c0_i32, %c0_i32_0 : i32, i32
  }
  func.func @transform_8(%arg0: i32) -> (i32, i32) {
    %c0_i32 = arith.constant 0 : i32
    %c0_i32_0 = arith.constant 0 : i32
    %c0_i32_1 = arith.constant 0 : i32
    return %c0_i32, %c0_i32_0 : i32, i32
  }
  func.func @transform_9(%arg0: i32) -> (i32, i32) {
    %c0_i32 = arith.constant 0 : i32
    %c0_i32_0 = arith.constant 0 : i32
    %c0_i32_1 = arith.constant 0 : i32
    return %c0_i32, %c0_i32_0 : i32, i32
  }
  func.func @transform_10(%arg0: i32) -> (i32, i32) {
    %c0_i32 = arith.constant 0 : i32
    %c0_i32_0 = arith.constant 0 : i32
    %c0_i32_1 = arith.constant 0 : i32
    return %c0_i32, %c0_i32_0 : i32, i32
  }
  func.func @transform_11(%arg0: i32) -> (i32, i32) {
    %c0_i32 = arith.constant 0 : i32
    %c0_i32_0 = arith.constant 0 : i32
    %c0_i32_1 = arith.constant 0 : i32
    return %c0_i32, %c0_i32_0 : i32, i32
  }
  func.func @transform_12(%arg0: i32) -> (i32, i32) {
    %c0_i32 = arith.constant 0 : i32
    %c0_i32_0 = arith.constant 0 : i32
    %c0_i32_1 = arith.constant 0 : i32
    return %c0_i32, %c0_i32_0 : i32, i32
  }
  func.func @transform_13(%arg0: i32) -> (i32, i32) {
    %c0_i32 = arith.constant 0 : i32
    %c0_i32_0 = arith.constant 0 : i32
    %c0_i32_1 = arith.constant 0 : i32
    return %c0_i32, %c0_i32_0 : i32, i32
  }
  func.func @transform_14(%arg0: i32) -> (i32, i32) {
    %c0_i32 = arith.constant 0 : i32
    %c0_i32_0 = arith.constant 0 : i32
    %c0_i32_1 = arith.constant 0 : i32
    return %c0_i32, %c0_i32_0 : i32, i32
  }
  func.func @transform_15(%arg0: i32) -> (i32, i32) {
    %c0_i32 = arith.constant 0 : i32
    %c0_i32_0 = arith.constant 0 : i32
    %c0_i32_1 = arith.constant 0 : i32
    return %c0_i32, %c0_i32_0 : i32, i32
  }
  func.func @transform_16(%arg0: i32) -> (i32, i32) {
    %c0_i32 = arith.constant 0 : i32
    %c0_i32_0 = arith.constant 0 : i32
    %c0_i32_1 = arith.constant 0 : i32
    return %c0_i32, %c0_i32_0 : i32, i32
  }
  func.func @transform_17(%arg0: i32) -> (i32, i32) {
    %c0_i32 = arith.constant 0 : i32
    %c0_i32_0 = arith.constant 0 : i32
    %c0_i32_1 = arith.constant 0 : i32
    return %c0_i32, %c0_i32_0 : i32, i32
  }
}

</mosaic_0001>

<bundles_post_ra>
// kernel: tile.9
= control target key start
LH: loop header
LB: loop body
LE: loop exit
PB: predicated region body
PF: predicated region fallthrough
CT: control target
= control target key end

     0   :  { %vm137_vm0 = vcmask 1047556   ;;  %vm139_vm1 = vcmask 523264   ;;  %vm172_vm2 = vcmask 1048064   ;;  %s387_s0 = inlined_call_operand.vmem [shape: f32[27,2,64], index: 0, kind: input, shape index: {}]   ;;  %s388_s1 = inlined_call_operand.vmem [shape: f32[27,128], index: 1, kind: output, shape index: {}]  }
   0x1   :  { %v247_v0 = vld [vmem:[%s387_s0 + $0xe] sm:$0x3]  ;;  %v248_v1 = vld [vmem:[%s387_s0 + $0xc] sm:$0x3]  ;;  %v249_v2 = vld [vmem:[%s387_s0 + $0xa] sm:$0x3] }
   0x2   :  { %103 = vst [vmem:[#allocation0 + $0x38] sm:$0x3] %v247_v0  ;;  %108 = vst [vmem:[#allocation0 + $0x30] sm:$0x3] %v248_v1  ;;  %v250_v3 = vld [vmem:[%s387_s0 + $0x8] sm:$0x3] }
   0x3   :  { %113 = vst [vmem:[#allocation0 + $0x28] sm:$0x3] %v249_v2  ;;  %v251_v4 = vld [vmem:[%s387_s0 + $0x6] sm:$0x3]  ;;  %v252_v5 = vld [vmem:[%s387_s0 + $0x4] sm:$0x3] }
   0x4   :  { %118 = vst [vmem:[#allocation0 + $0x20] sm:$0x3] %v250_v3  ;;  %123 = vst [vmem:[#allocation0 + $0x18] sm:$0x3] %v251_v4  ;;  %v253_v6 = vld [vmem:[%s387_s0 + $0x2] sm:$0x3] }
   0x5   :  { %128 = vst [vmem:[#allocation0 + $0x10] sm:$0x3] %v252_v5  ;;  %v133_v7 = vld [vmem:[%s387_s0] sm:$0x3]  ;;  %132 = vst [vmem:[#allocation0 + $0x8] sm:$0x3] %v253_v6 }
   0x6   :  { %134 = vst [vmem:[#allocation0] sm:$0x3] %v133_v7  ;;  %v231_v8 = vld [vmem:[%s387_s0 + $0x2e] sm:$0x3]  ;;  %v232_v9 = vld [vmem:[%s387_s0 + $0x2c] sm:$0x3] }
   0x7   :  { %v233_v10 = vld [vmem:[%s387_s0 + $0x2a] sm:$0x3]  ;;  %23 = vst [vmem:[#allocation0 + $0xb8] sm:$0x3] %v231_v8  ;;  %28 = vst [vmem:[#allocation0 + $0xb0] sm:$0x3] %v232_v9 }
   0x8   :  { %33 = vst [vmem:[#allocation0 + $0xa8] sm:$0x3] %v233_v10  ;;  %v234_v11 = vld [vmem:[%s387_s0 + $0x28] sm:$0x3]  ;;  %v235_v12 = vld [vmem:[%s387_s0 + $0x26] sm:$0x3] }
   0x9   :  { %v236_v13 = vld [vmem:[%s387_s0 + $0x24] sm:$0x3]  ;;  %38 = vst [vmem:[#allocation0 + $0xa0] sm:$0x3] %v234_v11  ;;  %43 = vst [vmem:[#allocation0 + $0x98] sm:$0x3] %v235_v12 }
   0xa   :  { %48 = vst [vmem:[#allocation0 + $0x90] sm:$0x3] %v236_v13  ;;  %v237_v14 = vld [vmem:[%s387_s0 + $0x22] sm:$0x3]  ;;  %v238_v15 = vld [vmem:[%s387_s0 + $0x20] sm:$0x3] }
   0xb   :  { %v239_v16 = vld [vmem:[%s387_s0 + $0x1e] sm:$0x3]  ;;  %53 = vst [vmem:[#allocation0 + $0x88] sm:$0x3] %v237_v14  ;;  %58 = vst [vmem:[#allocation0 + $0x80] sm:$0x3] %v238_v15 }
   0xc   :  { %63 = vst [vmem:[#allocation0 + $0x78] sm:$0x3] %v239_v16  ;;  %v240_v17 = vld [vmem:[%s387_s0 + $0x1c] sm:$0x3]  ;;  %v241_v18 = vld [vmem:[%s387_s0 + $0x1a] sm:$0x3] }
   0xd   :  { %v242_v19 = vld [vmem:[%s387_s0 + $0x18] sm:$0x3]  ;;  %68 = vst [vmem:[#allocation0 + $0x70] sm:$0x3] %v240_v17  ;;  %73 = vst [vmem:[#allocation0 + $0x68] sm:$0x3] %v241_v18 }
   0xe   :  { %78 = vst [vmem:[#allocation0 + $0x60] sm:$0x3] %v242_v19  ;;  %v243_v20 = vld [vmem:[%s387_s0 + $0x16] sm:$0x3]  ;;  %v244_v21 = vld [vmem:[%s387_s0 + $0x14] sm:$0x3] }
   0xf   :  { %v245_v22 = vld [vmem:[%s387_s0 + $0x12] sm:$0x3]  ;;  %83 = vst [vmem:[#allocation0 + $0x58] sm:$0x3] %v243_v20  ;;  %88 = vst [vmem:[#allocation0 + $0x50] sm:$0x3] %v244_v21 }
  0x10   :  { %93 = vst [vmem:[#allocation0 + $0x48] sm:$0x3] %v245_v22  ;;  %v246_v23 = vld [vmem:[%s387_s0 + $0x10] sm:$0x3]  ;;  %v228_v24 = vld [vmem:[%s387_s0 + $0x34] sm:$0x3] }
  0x11   :  { %v229_v25 = vld [vmem:[%s387_s0 + $0x32] sm:$0x3]  ;;  %v167_v26 = vld [vmem:[#allocation0 + $0x1] ss:$8 sm:$0xf0]  }
  0x12   :  { %98 = vst [vmem:[#allocation0 + $0x40] sm:$0x3] %v246_v23  ;;  %8 = vst [vmem:[#allocation0 + $0xd0] sm:$0x3] %v228_v24  ;;  %v230_v27 = vld [vmem:[%s387_s0 + $0x30] sm:$0x3] }
  0x13   :  { %13 = vst [vmem:[#allocation0 + $0xc8] sm:$0x3] %v229_v25  ;;  %v165_v28 = vld [vmem:[#allocation0 + $0x1] ss:$8 sm:$0xf]   ;;  %s261_s0 = smov 64  }
  0x14   :  { %18 = vst [vmem:[#allocation0 + $0xc0] sm:$0x3] %v230_v27  ;;  %v135_v29 = vld [vmem:[#allocation0] ss:$8 sm:$0xf]   ;;  %v169_v30 = vsel %vm137_vm0, %v167_v26, %v165_v28 }
  0x15   :  { %v136_v31 = vld [vmem:[#allocation0] ss:$8 sm:$0xf0]   ;;  %170 = vrot.lane.b32.xlu0 %v169_v30, %s261_s0  ;;  %v188_v32 = vld [vmem:[#allocation0 + $0x81] ss:$8 sm:$0xf0]  }
  0x16   :  { %v138_v33 = vsel %vm137_vm0, %v136_v31, %v135_v29  ;;  %v153_v34 = vld [vmem:[#allocation0 + $0x80] ss:$8 sm:$0xf0]   ;;  %v186_v35 = vld [vmem:[#allocation0 + $0x81] ss:$8 sm:$0xf]  }
  0x17   :  { %140 = vst.msk [vmem:[%s388_s1] sm:$0xff] %vm139_vm1, %v138_v33   ;;  %v151_v36 = vld [vmem:[#allocation0 + $0x80] ss:$8 sm:$0xf]   ;;  %v190_v37 = vsel %vm137_vm0, %v188_v32, %v186_v35 }
  0x18   :  { %v177_v38 = vld [vmem:[#allocation0 + $0x41] ss:$8 sm:$0xf0]   ;;  %v155_v39 = vsel %vm137_vm0, %v153_v34, %v151_v36  ;;  %v144_v40 = vld [vmem:[#allocation0 + $0x40] ss:$8 sm:$0xf0]   ;;  %191 = vrot.lane.b32.xlu1 %v190_v37, %s261_s0 }
  0x19   :  { %255 = vst.msk [vmem:[%s388_s1 + $0x10] sm:$0xff] %vm139_vm1, %v155_v39   ;;  %v175_v41 = vld [vmem:[#allocation0 + $0x41] ss:$8 sm:$0xf]  }
  0x1a   :  { %v142_v42 = vld [vmem:[#allocation0 + $0x40] ss:$8 sm:$0xf]   ;;  %v179_v43 = vsel %vm137_vm0, %v177_v38, %v175_v41 }
  0x1b   :  { %v197_v44 = vld [vmem:[#allocation0 + $0xc1] ss:$8 sm:$0x7]   ;;  %v146_v45 = vsel %vm137_vm0, %v144_v40, %v142_v42  ;;  %v160_v46 = vld [vmem:[#allocation0 + $0xc0] ss:$8 sm:$0x7]   ;;  %180 = vrot.lane.b32.xlu0 %v179_v43, %s261_s0 }
  0x1c   :  { %254 = vst.msk [vmem:[%s388_s1 + $0x8] sm:$0xff] %vm139_vm1, %v146_v45   ;;  %256 = vst.msk [vmem:[%s388_s1 + $0x18] sm:$0x7] %vm139_vm1, %v160_v46   ;;  %198 = vrot.lane.b32.xlu1 %v197_v44, %s261_s0 }
  0x87   :  { %v171_v47 = vpop.permute.xlu0 %170  }
  0x88   :  { %173 = vst.msk [vmem:[%s388_s1] sm:$0xff] %vm172_vm2, %v171_v47  }
  0x8a   :  { %v192_v48 = vpop.permute.xlu1 %191  }
  0x8b   :  { %258 = vst.msk [vmem:[%s388_s1 + $0x10] sm:$0xff] %vm172_vm2, %v192_v48  }
  0x8d   :  { %v181_v49 = vpop.permute.xlu0 %180  }
  0x8e   :  { %257 = vst.msk [vmem:[%s388_s1 + $0x8] sm:$0xff] %vm172_vm2, %v181_v49   ;;  %v199_v50 = vpop.permute.xlu1 %198  }
  0x8f   :  { %259 = vst.msk [vmem:[%s388_s1 + $0x18] sm:$0x7] %vm172_vm2, %v199_v50  }

// kernel: pvconv_forward.1
= control target key start
LH: loop header
LB: loop body
LE: loop exit
PB: predicated region body
PF: predicated region fallthrough
CT: control target
= control target key end

     0   :  { %v6086_v0 = vmov 0   ;;  %v6087_v5 = vmov 0.0   ;;  %v7527_v8 = vmov 0.0|0.0   ;;  %vm6089_vm0 = vmmov 0   ;;  %s6091_s30 = smov 21   ;;  %s6092_s18 = smov 20   ;;  %s7490_s1 = inlined_call_operand.vmem [shape: s32[128,1], index: 1, kind: input, shape index: {}]   ;;  %s7491_s0 = inlined_call_operand.vmem [shape: f32[4,128], index: 0, kind: input, shape index: {}]   ;;  %s7492_s6 = inlined_call_operand.vmem [shape: f32[8,1], index: 6, kind: input, shape index: {}]   ;;  %s7493_s4 = inlined_call_operand.vmem [shape: f32[27,128], index: 4, kind: input, shape index: {}]   ;;  %s7494_s5 = inlined_call_operand.vmem [shape: f32[216,4], index: 5, kind: input, shape index: {}]   ;;  %s7495_s8 = inlined_call_operand.vmem [shape: f32[8,1], index: 8, kind: input, shape index: {}]   ;;  %s7496_s7 = inlined_call_operand.vmem [shape: f32[8,1], index: 7, kind: input, shape index: {}]   ;;  %s7497_s10 = inlined_call_operand.vmem [shape: f32[8,1], index: 10, kind: input, shape index: {}]   ;;  %s7498_s9 = inlined_call_operand.vmem [shape: f32[216,8], index: 9, kind: input, shape index: {}]   ;;  %s7499_s13 = inlined_call_operand.vmem [shape: f32[8,4], index: 13, kind: input, shape index: {}]   ;;  %s7500_s12 = inlined_call_operand.vmem [shape: f32[8,1], index: 12, kind: input, shape index: {}]   ;;  %s7501_s2 = inlined_call_operand.vmem [shape: s32[8,128], index: 2, kind: input, shape index: {}]   ;;  %s7502_s3 = inlined_call_operand.vmem [shape: f32[8,128], index: 3, kind: input, shape index: {}]   ;;  %s7503_s11 = inlined_call_operand.vmem [shape: f32[8,1], index: 11, kind: input, shape index: {}]   ;;  %s7504_s14 = inlined_call_operand.vmem [shape: f32[8,1], index: 14, kind: input, shape index: {}]   ;;  %s7505_s16 = inlined_call_operand.vmem [shape: f32[8,1], index: 16, kind: input, shape index: {}]   ;;  %s7506_s15 = inlined_call_operand.vmem [shape: f32[8,1], index: 15, kind: input, shape index: {}]   ;;  %s7507_s17 = inlined_call_operand.vmem [shape: f32[8,128], index: 17, kind: output, shape index: {}]  }
   0x1   :  { %7529 = sst [smem:[#allocation2_spill]] %s7490_s1  ;;  %6076 = vset.pattern.permute.xlu1 %v6086_v0  ;;  %6075 = vset.pattern.permute.xlu0 %v6086_v0  ;;  %v77_v19 = vlaneseq  ;;  %v6090_v29 = vmov 1.0|1.0   ;;  %s6093_s19 = smov 17  }
   0x2   :  { %7530 = sst [smem:[#allocation3_spill]] %s7491_s0  ;;  %s7531_s26 = sld [smem:[#allocation2_spill]]  ;;  %5686 = vmatprep.subr.mxu1 %v6087_v5  ;;  %5996 = vmatprep.subr.bf16.mxu0 %v7527_v8 }
   0x3   :  { %5683 = vmatprep.mubr.msk.f32.mxu0 %vm6089_vm0, %v6087_v5  ;;  %5688 = vmatprep.mubr.msk.f32.mxu1 %vm6089_vm0, %v6087_v5  ;;  %v6262_v20 = vand.u32 127, %v77_v19  ;;  %s7532_s1 = sld [smem:[#allocation3_spill]]  ;;  %s6094_s0 = smov 19  }
   0x4   :  { %s6095_s20 = smov 15   ;;  %s6096_s21 = smov 16  }
   0x5   :  { %s6097_s22 = smov 12   ;;  %s7523_s23 = smov 13  }
   0x6   :  { %s7510_s24 = smov 5   ;;  %s7511_s25 = smov 11  }
   0x7   :  { %s7512_s27 = smov 3   ;;  %s7513_s28 = smov 4  }
   0x8   :  { %v63_v1 = vld [vmem:[%s7531_s26 + $0x10] sm:$0xff]  ;;  %v61_v2 = vld [vmem:[%s7531_s26] sm:$0xff]  ;;  %v64_v3 = vld [vmem:[%s7531_s26 + $0x18] sm:$0xff]  ;;  %s7515_s29 = smov 1  }
   0x9   :  { %86 = vperm.xlu1 %6076, %v63_v1   ;;  %80 = vperm.xlu0 %6075, %v61_v2   ;;  %v62_v4 = vld [vmem:[%s7531_s26 + $0x8] sm:$0xff]  ;;  %v65_v7 = vld [vmem:[%s7531_s26 + $0x20] sm:$0xff]  ;;  %v68_v9 = vld [vmem:[%s7531_s26 + $0x38] sm:$0xff] }
   0xa   :  { %v66_v6 = vld [vmem:[%s7531_s26 + $0x28] sm:$0xff]  ;;  %v67_v10 = vld [vmem:[%s7531_s26 + $0x30] sm:$0xff]  ;;  %v69_v12 = vld [vmem:[%s7531_s26 + $0x40] sm:$0xff] }
   0xb   :  { %v70_v11 = vld [vmem:[%s7531_s26 + $0x48] sm:$0xff]  ;;  %v72_v13 = vld [vmem:[%s7531_s26 + $0x58] sm:$0xff]  ;;  %v71_v14 = vld [vmem:[%s7531_s26 + $0x50] sm:$0xff] }
   0xc   :  { %v74_v15 = vld [vmem:[%s7531_s26 + $0x68] sm:$0xff]  ;;  %v73_v16 = vld [vmem:[%s7531_s26 + $0x60] sm:$0xff]  ;;  %v76_v17 = vld [vmem:[%s7531_s26 + $0x78] sm:$0xff] }
   0xd   :  { %89 = vperm.xlu1 %6076, %v64_v3   ;;  %83 = vperm.xlu0 %6075, %v62_v4   ;;  %v75_v18 = vld [vmem:[%s7531_s26 + $0x70] sm:$0xff]  ;;  %s7514_s26 = smov 127  }
  0x11   :  { %95 = vperm.xlu1 %6076, %v66_v6   ;;  %92 = vperm.xlu0 %6075, %v65_v7   ;;  %v56_v6 = vld [vmem:[%s7532_s1] sm:$0xf] }
  0x15   :  { %101 = vperm.xlu1 %6076, %v68_v9   ;;  %98 = vperm.xlu0 %6075, %v67_v10  }
  0x19   :  { %107 = vperm.xlu1 %6076, %v70_v11   ;;  %104 = vperm.xlu0 %6075, %v69_v12  }
  0x1d   :  { %113 = vperm.xlu1 %6076, %v72_v13   ;;  %110 = vperm.xlu0 %6075, %v71_v14  }
  0x21   :  { %119 = vperm.xlu1 %6076, %v74_v15   ;;  %116 = vperm.xlu0 %6075, %v73_v16  }
  0x25   :  { %125 = vperm.xlu1 %6076, %v76_v17   ;;  %122 = vperm.xlu0 %6075, %v75_v18  }
  0x88   :  { %v87_v21 = vpop.permute.xlu1 %86  ;;  %v81_v22 = vpop.permute.xlu0 %80 }
  0x89   :  { %vm127_vm1 = vcmp.eq.s32.totalorder %v6262_v20, %v81_v22  ;;  %vm129_vm2 = vcmp.eq.s32.totalorder %v6262_v20, %v87_v21  ;;  %v6379_v21 = vshrl.u32 %v77_v19, 7 }
  0x8a   :  { %v5392_v25 = vsel %vm127_vm1, 1.0, %v6087_v5  ;;  %v5394_v28 = vsel %vm129_vm2, 1.0, %v6087_v5 }
  0x8b   :  { %v6382_v22 = vsub.s32 1, %v6379_v21 }
  0x8c   :  { %v90_v23 = vpop.permute.xlu1 %89  ;;  %v84_v24 = vpop.permute.xlu0 %83 }
  0x8d   :  { %vm128_vm3 = vcmp.eq.s32.totalorder %v6262_v20, %v84_v24  ;;  %vm130_vm4 = vcmp.eq.s32.totalorder %v6262_v20, %v90_v23  ;;  %v57_v23 = vld [vmem:[%s7493_s4] sm:$0xff]  ;;  %v6388_v24 = vsub.s32 0, %v6379_v21 }
  0x8e   :  { %v5393_v26 = vsel %vm128_vm3, 1.0, %v6087_v5  ;;  %vm5997_vm5 = vmpackc.low %vm128_vm3, %vm127_vm1  ;;  %v5395_v33 = vsel %vm130_vm4, 1.0, %v6087_v5 }
  0x8f   :  { %v245_v27 = vadd.f32 %v5393_v26, %v5392_v25  ;;  %5998 = vmatpush3.bf16.msk.msra.mxu0 %vm5997_vm5, %v6090_v29  ;;  %vm6000_vm7 = vmpackc.low %vm130_vm4, %vm129_vm2  ;;  %v6391_v25 = vrot.slane %v57_v23, %v6382_v22  ;;  %v6394_v26 = vsub.s32 2, %v6379_v21 }
  0x90   :  { %v96_v30 = vpop.permute.xlu1 %95  ;;  %v93_v31 = vpop.permute.xlu0 %92  ;;  %5999 = vmatprep.subr.bf16.mxu0 %v7527_v8 }
  0x91   :  { %v246_v32 = vadd.f32 %v5394_v28, %v245_v27  ;;  %vm131_vm6 = vcmp.eq.s32.totalorder %v6262_v20, %v93_v31  ;;  %vm132_vm8 = vcmp.eq.s32.totalorder %v6262_v20, %v96_v30  ;;  %v6397_v27 = vrot.slane %v57_v23, %v6388_v24  ;;  %v270_v30 = vld [vmem:[%s7494_s5 + $0x8] sm:$0xff] }
  0x92   :  { %v5396_v35 = vsel %vm131_vm6, 1.0, %v6087_v5  ;;  %v5397_v39 = vsel %vm132_vm8, 1.0, %v6087_v5  ;;  %vm6003_vm10 = vmpackc.low %vm132_vm8, %vm131_vm6  ;;  %v6404_v31 = vrot.slane %v57_v23, %v6394_v26 }
  0x93   :  { %v247_v34 = vadd.f32 %v5395_v33, %v246_v32  ;;  %6001 = vmatpush3.bf16.msk.msra.mxu0 %vm6000_vm7, %v6090_v29  ;;  %v6409_v33 = vsub.s32 3, %v6379_v21 }
  0x94   :  { %v102_v36 = vpop.permute.xlu1 %101  ;;  %v99_v37 = vpop.permute.xlu0 %98  ;;  %6002 = vmatprep.subr.bf16.mxu0 %v7527_v8 }
  0x95   :  { %v248_v38 = vadd.f32 %v5396_v35, %v247_v34  ;;  %vm133_vm9 = vcmp.eq.s32.totalorder %v6262_v20, %v99_v37  ;;  %vm134_vm11 = vcmp.eq.s32.totalorder %v6262_v20, %v102_v36  ;;  %v269_v36 = vld [vmem:[%s7494_s5] sm:$0xff]  ;;  %v6422_v37 = vrot.slane %v57_v23, %v6409_v33 }
  0x96   :  { %v5398_v41 = vsel %vm133_vm9, 1.0, %v6087_v5  ;;  %v5399_v45 = vsel %vm134_vm11, 1.0, %v6087_v5  ;;  %vm6006_vm13 = vmpackc.low %vm134_vm11, %vm133_vm9  ;;  %vm311_vm11 = vcmask 31744  }
  0x97   :  { %v249_v40 = vadd.f32 %v5397_v39, %v248_v38  ;;  %6004 = vmatpush3.bf16.msk.msra.mxu0 %vm6003_vm10, %v6090_v29  ;;  %vm315_vm10 = vcmask 1043456   ;;  %v6425_v38 = vsub.s32 4, %v6379_v21 }
  0x98   :  { %v108_v42 = vpop.permute.xlu1 %107  ;;  %v105_v43 = vpop.permute.xlu0 %104  ;;  %6005 = vmatprep.subr.bf16.mxu0 %v7527_v8 }
  0x99   :  { %v250_v44 = vadd.f32 %v5398_v41, %v249_v40  ;;  %vm135_vm12 = vcmp.eq.s32.totalorder %v6262_v20, %v105_v43  ;;  %vm136_vm14 = vcmp.eq.s32.totalorder %v6262_v20, %v108_v42  ;;  %v271_v41 = vld [vmem:[%s7494_s5 + $0x10] sm:$0xff]  ;;  %v6437_v43 = vrot.slane %v57_v23, %v6425_v38 }
  0x9a   :  { %v5400_v47 = vsel %vm135_vm12, 1.0, %v6087_v5  ;;  %v5401_v51 = vsel %vm136_vm14, 1.0, %v6087_v5  ;;  %vm6009_vm1 = vmpackc.low %vm136_vm14, %vm135_vm12 }
  0x9b   :  { %v251_v46 = vadd.f32 %v5399_v45, %v250_v44  ;;  %6007 = vmatpush3.bf16.msk.msra.mxu0 %vm6006_vm13, %v6090_v29  ;;  %v6441_v45 = vsub.s32 5, %v6379_v21  ;;  %vm2633_vm13 = vcmask 64512  }
  0x9c   :  { %v114_v48 = vpop.permute.xlu1 %113  ;;  %v111_v49 = vpop.permute.xlu0 %110  ;;  %6008 = vmatprep.subr.bf16.mxu0 %v7527_v8 }
  0x9d   :  { %v252_v50 = vadd.f32 %v5400_v47, %v251_v46  ;;  %vm137_vm15 = vcmp.eq.s32.totalorder %v6262_v20, %v111_v49  ;;  %vm138_vm2 = vcmp.eq.s32.totalorder %v6262_v20, %v114_v48  ;;  %v272_v46 = vld [vmem:[%s7494_s5 + $0x18] sm:$0xff]  ;;  %v6451_v47 = vrot.slane %v57_v23, %v6441_v45 }
  0x9e   :  { %v5402_v53 = vsel %vm137_vm15, 1.0, %v6087_v5  ;;  %v5403_v57 = vsel %vm138_vm2, 1.0, %v6087_v5  ;;  %vm6012_vm4 = vmpackc.low %vm138_vm2, %vm137_vm15  ;;  %v6455_v49 = vsub.s32 6, %v6379_v21 }
  0x9f   :  { %v253_v52 = vadd.f32 %v5401_v51, %v252_v50  ;;  %6010 = vmatpush3.bf16.msk.msra.mxu0 %vm6009_vm1, %v6090_v29 }
  0xa0   :  { %v120_v54 = vpop.permute.xlu1 %119  ;;  %v117_v55 = vpop.permute.xlu0 %116  ;;  %6011 = vmatprep.subr.bf16.mxu0 %v7527_v8 }
  0xa1   :  { %v254_v56 = vadd.f32 %v5402_v53, %v253_v52  ;;  %vm139_vm3 = vcmp.eq.s32.totalorder %v6262_v20, %v117_v55  ;;  %vm140_vm5 = vcmp.eq.s32.totalorder %v6262_v20, %v120_v54  ;;  %v273_v52 = vld [vmem:[%s7494_s5 + $0x20] sm:$0xff]  ;;  %v6467_v54 = vsub.s32 7, %v6379_v21 }
  0xa2   :  { %v5404_v59 = vsel %vm139_vm3, 1.0, %v6087_v5  ;;  %v5405_v63 = vsel %vm140_vm5, 1.0, %v6087_v5  ;;  %vm6015_vm7 = vmpackc.low %vm140_vm5, %vm139_vm3  ;;  %v6470_v55 = vrot.slane %v57_v23, %v6455_v49 }
  0xa3   :  { %v255_v58 = vadd.f32 %v5403_v57, %v254_v56  ;;  %6013 = vmatpush3.bf16.msk.msra.mxu0 %vm6012_vm4, %v6090_v29  ;;  %v274_v57 = vld [vmem:[%s7494_s5 + $0x28] sm:$0xff] }
  0xa4   :  { %v126_v60 = vpop.permute.xlu1 %125  ;;  %v123_v61 = vpop.permute.xlu0 %122  ;;  %6014 = vmatprep.subr.bf16.mxu0 %v7527_v8 }
  0xa5   :  { %v256_v62 = vadd.f32 %v5404_v59, %v255_v58  ;;  %vm141_vm6 = vcmp.eq.s32.totalorder %v6262_v20, %v123_v61  ;;  %vm142_vm8 = vcmp.eq.s32.totalorder %v6262_v20, %v126_v60  ;;  %v296_v20 = vld [vmem:[%s7492_s6] sm:$0xff]  ;;  %v6481_v58 = vrot.slane %v57_v23, %v6467_v54  ;;  %s7549_s6 = smov 108  }
  0xa6   :  { %v5406_v1 = vsel %vm141_vm6, 1.0, %v6087_v5  ;;  %v5407_v3 = vsel %vm142_vm8, 1.0, %v6087_v5  ;;  %vm6018_vm9 = vmpackc.low %vm142_vm8, %vm141_vm6 }
  0xa7   :  { %v257_v0 = vadd.f32 %v5405_v63, %v256_v62  ;;  %6016 = vmatpush3.bf16.msk.msra.mxu0 %vm6015_vm7, %v6090_v29  ;;  %v275_v62 = vld [vmem:[%s7494_s5 + $0x30] sm:$0xff]  ;;  %v6496_v63 = vld [vmem:[%s7493_s4 + $0x8] sm:$0xff] }
  0xa8   :  { %6017 = vmatprep.subr.bf16.mxu0 %v7527_v8 }
  0xa9   :  { %v258_v2 = vadd.f32 %v5406_v1, %v257_v0  ;;  %v6502_v1 = vrot.slane %v6496_v63, %v6388_v24 }
  0xab   :  { %v259_v4 = vadd.f32 %v5407_v3, %v258_v2  ;;  %6019 = vmatpush3.bf16.msk.msra.mxu0 %vm6018_vm9, %v6090_v29  ;;  %v6507_v2 = vld [vmem:[%s7493_s4 + $0x10] sm:$0xff] }
  0xac   :  { %5771 = vmatprep.subr.mxu0 %v6087_v5 }
  0xad   :  { %v260_v7 = vrot.slane %v259_v4, 4 }
  0xae   :  { %5684 = vmatmul.mubr.f32.vlgmr.msra.gmra.mrb[0].mxu0 %v56_v6  ;;  %v6520_v6 = vrot.slane %v6507_v2, %v6382_v22 }
  0xaf   :  { %5773 = vmatprep.mubr.msk.f32.mxu0 %vm6089_vm0, %v6087_v5  ;;  %v261_v9 = vadd.f32 %v260_v7, %v259_v4  ;;  %v276_v4 = vld [vmem:[%s7494_s5 + $0x38] sm:$0xff]  ;;  %v6525_v7 = vrot.slane %v6496_v63, %v6382_v22 }
  0xb1   :  { %v262_v10 = vrot.slane %v261_v9, 2 }
  0xb3   :  { %v263_v11 = vadd.f32 %v262_v10, %v261_v9 }
  0xb5   :  { %v264_v12 = vrot.slane %v263_v11, 1 }
  0xb7   :  { %v265_v13 = vadd.f32 %v264_v12, %v263_v11 }
  0xb9   :  { %v266_v14 = vmax.f32 %v265_v13, 1.0  ;;  %v277_v13 = vld [vmem:[%s7494_s5 + $0x40] sm:$0xff] }
  0xbb   :  { %6077 = vrcp.f32 %v266_v14  ;;  %v6538_v14 = vrot.slane %v6507_v2, %v6409_v33 }
  0xc5   :  { %v6078_v15 = vpop.eup %6077 }
 0x181   :  { %v241_v16 = vpop.f32.mrb[0].mxu0 }
 0x182   :  { %v6321_v17 = vmul.f32 %v6078_v15, %v241_v16  ;;  %v5685_v18 = vpop.f32.mrb[1].mxu0  ;;  %v6544_v16 = vrot.slane %v6496_v63, %v6394_v26 }
 0x183   :  { %v286_v18 = vld [vmem:[%s7494_s5 + $0x88] sm:$0xff] }
 0x184   :  { %297 = vrot.lane.b32.xlu1 %v6321_v17, %s6091_s30  ;;  %304 = vrot.lane.b32.xlu0 %v6321_v17, %s6092_s18 }
 0x188   :  { %549 = vrot.lane.b32.xlu1 %v6321_v17, %s6093_s19  ;;  %465 = vrot.lane.b32.xlu0 %v6321_v17, %s6094_s0 }
 0x18c   :  { %717 = vrot.lane.b32.xlu1 %v6321_v17, %s6095_s20  ;;  %633 = vrot.lane.b32.xlu0 %v6321_v17, %s6096_s21 }
 0x190   :  { %885 = vrot.lane.b32.xlu1 %v6321_v17, %s6097_s22  ;;  %801 = vrot.lane.b32.xlu0 %v6321_v17, %s7523_s23  ;;  %s7542_s23 = smov 117  }
 0x194   :  { %1053 = vrot.lane.b32.xlu1 %v6321_v17, %s7510_s24  ;;  %969 = vrot.lane.b32.xlu0 %v6321_v17, %s7511_s25  ;;  %s7516_s24 = smov 124   ;;  %s7517_s25 = smov 125  }
 0x198   :  { %1221 = vrot.lane.b32.xlu1 %v6321_v17, %s7512_s27  ;;  %1137 = vrot.lane.b32.xlu0 %v6321_v17, %s7513_s28  ;;  %s7518_s27 = smov 117   ;;  %s7519_s28 = smov 123  }
 0x19c   :  { %1471 = vrot.lane.b32.xlu1 %v6321_v17, %s7514_s26  ;;  %1305 = vrot.lane.b32.xlu0 %v6321_v17, %s7515_s29  ;;  %s7520_s26 = smov 115   ;;  %s7521_s29 = smov 116  }
 0x1a0   :  { %1639 = vrot.lane.b32.xlu1 %v6321_v17, %s7516_s24  ;;  %1555 = vrot.lane.b32.xlu0 %v6321_v17, %s7517_s25  ;;  %s7522_s24 = smov 112   ;;  %s6112_s25 = smov 113  }
 0x1a4   :  { %1807 = vrot.lane.b32.xlu1 %v6321_v17, %s7518_s27  ;;  %1723 = vrot.lane.b32.xlu0 %v6321_v17, %s7519_s28  ;;  %s7525_s27 = smov 109   ;;  %s7524_s28 = smov 111  }
 0x1a8   :  { %1975 = vrot.lane.b32.xlu1 %v6321_v17, %s7520_s26  ;;  %1891 = vrot.lane.b32.xlu0 %v6321_v17, %s7521_s29  ;;  %s6115_s26 = smov 107   ;;  %s7526_s29 = smov 108  }
 0x1ac   :  { %2143 = vrot.lane.b32.xlu1 %v6321_v17, %s7522_s24  ;;  %2059 = vrot.lane.b32.xlu0 %v6321_v17, %s6112_s25  ;;  %s7544_s24 = smov 115  }
 0x1b0   :  { %2311 = vrot.lane.b32.xlu1 %v6321_v17, %s7525_s27  ;;  %2227 = vrot.lane.b32.xlu0 %v6321_v17, %s7524_s28  ;;  %s7545_s27 = smov 116   ;;  %s7548_s28 = smov 111  }
 0x1b4   :  { %2479 = vrot.lane.b32.xlu1 %v6321_v17, %s6115_s26  ;;  %2395 = vrot.lane.b32.xlu0 %v6321_v17, %s7526_s29  ;;  %s7547_s29 = smov 109  }
 0x1b8   :  { %2565 = vperm.xlu0 %6075, %v296_v20  }
 0x1f6   :  { %v298_v19 = vpop.permute.xlu1 %297  ;;  %v305_v28 = vpop.permute.xlu0 %304 }
 0x1f7   :  { %v310_v29 = vmul.f32 %v6391_v25, %v305_v28  ;;  %v303_v32 = vmul.f32 %v6397_v27, %v298_v19  ;;  %v278_v19 = vld [vmem:[%s7494_s5 + $0x48] sm:$0xff]  ;;  %v6561_v28 = vrot.slane %v6507_v2, %v6441_v45 }
 0x1f9   :  { %5687 = vmatpush3.msk.msra.mxu1 %vm315_vm10, %v310_v29 }
 0x1fa   :  { %5689 = vmatmul.mubr.msk.f32.vlgmr.msra.gmra.mrb[0].mxu1 %vm311_vm11, %v270_v30  ;;  %5691 = vmatprep.subr.mxu1 %v6087_v5  ;;  %v466_v34 = vpop.permute.xlu0 %465  ;;  %v550_v39 = vpop.permute.xlu1 %549  ;;  %v6567_v30 = vrot.slane %v6496_v63, %v6409_v33 }
 0x1fb   :  { %v471_v35 = vmul.f32 %v6404_v31, %v466_v34  ;;  %5692 = vmatpush3.msk.msra.mxu1 %vm315_vm10, %v303_v32  ;;  %5693 = vmatprep.mubr.msk.f32.mxu1 %vm6089_vm0, %v6087_v5  ;;  %v555_v42 = vmul.f32 %v6422_v37, %v550_v39  ;;  %v288_v34 = vld [vmem:[%s7494_s5 + $0x98] sm:$0xff]  ;;  %v279_v39 = vld [vmem:[%s7494_s5 + $0x50] sm:$0xff] }
 0x1fc   :  { %5696 = vmatprep.subr.mxu1 %v6087_v5 }
 0x1fe   :  { %5694 = vmatmul.mubr.msk.f32.vlgmr.msra.gmra.mrb[2].mxu1 %vm311_vm11, %v269_v36  ;;  %v634_v40 = vpop.permute.xlu0 %633  ;;  %v718_v50 = vpop.permute.xlu1 %717 }
 0x1ff   :  { %5697 = vmatpush3.msk.msra.mxu1 %vm315_vm10, %v471_v35  ;;  %5698 = vmatprep.mubr.msk.f32.mxu1 %vm6089_vm0, %v6087_v5  ;;  %v639_v48 = vmul.f32 %v6437_v43, %v634_v40  ;;  %v723_v53 = vmul.f32 %v6451_v47, %v718_v50  ;;  %v6587_v40 = vrot.slane %v6507_v2, %v6467_v54 }
 0x200   :  { %5701 = vmatprep.subr.mxu1 %v6087_v5 }
 0x202   :  { %5699 = vmatmul.mubr.msk.f32.vlgmr.msra.gmra.mrb[4].mxu1 %vm311_vm11, %v271_v41  ;;  %v802_v44 = vpop.permute.xlu0 %801  ;;  %v886_v60 = vpop.permute.xlu1 %885 }
 0x203   :  { %5702 = vmatpush3.msk.msra.mxu1 %vm315_vm10, %v555_v42  ;;  %5703 = vmatprep.mubr.msk.f32.mxu1 %vm6089_vm0, %v6087_v5  ;;  %v807_v59 = vmul.f32 %v6470_v55, %v802_v44  ;;  %v891_v0 = vmul.f32 %v6481_v58, %v886_v60  ;;  %v6594_v42 = vrot.slane %v6496_v63, %v6425_v38  ;;  %v290_v44 = vld [vmem:[%s7494_s5 + $0xa8] sm:$0xff] }
 0x204   :  { %5706 = vmatprep.subr.mxu1 %v6087_v5 }
 0x206   :  { %5704 = vmatmul.mubr.msk.f32.vlgmr.msra.gmra.mrb[6].mxu1 %vm311_vm11, %v272_v46  ;;  %v970_v51 = vpop.permute.xlu0 %969  ;;  %v1054_v10 = vpop.permute.xlu1 %1053 }
 0x207   :  { %5707 = vmatpush3.msk.msra.mxu1 %vm315_vm10, %v639_v48  ;;  %5708 = vmatprep.mubr.msk.f32.mxu1 %vm6089_vm0, %v6087_v5  ;;  %v975_v9 = vmul.f32 %v6502_v1, %v970_v51  ;;  %v1059_v15 = vmul.f32 %v6525_v7, %v1054_v10  ;;  %v6605_v48 = vld [vmem:[%s7493_s4 + $0x18] sm:$0x7]  ;;  %v294_v10 = vld [vmem:[%s7494_s5 + $0xc8] sm:$0xff]  ;;  %s7543_s4 = smov 123  }
 0x208   :  { %5711 = vmatprep.subr.mxu1 %v6087_v5 }
 0x20a   :  { %5709 = vmatmul.mubr.msk.f32.vlgmr.msra.gmra.mrb[8].mxu1 %vm311_vm11, %v273_v52  ;;  %v1138_v56 = vpop.permute.xlu0 %1137  ;;  %v1222_v29 = vpop.permute.xlu1 %1221  ;;  %v280_v52 = vld [vmem:[%s7494_s5 + $0x58] sm:$0xff] }
 0x20b   :  { %5712 = vmatpush3.msk.msra.mxu1 %vm315_vm10, %v723_v53  ;;  %5713 = vmatprep.mubr.msk.f32.mxu1 %vm6089_vm0, %v6087_v5  ;;  %v1143_v32 = vmul.f32 %v6544_v16, %v1138_v56  ;;  %v1227_v41 = vmul.f32 %v6567_v30, %v1222_v29  ;;  %v6618_v53 = vrot.slane %v6605_v48, %v6382_v22 }
 0x20c   :  { %5716 = vmatprep.subr.mxu1 %v6087_v5  ;;  %v6699_v29 = vrot.slane %v6507_v2, %v6394_v26 }
 0x20e   :  { %5714 = vmatmul.mubr.msk.f32.vlgmr.msra.gmra.mrb[10].mxu1 %vm311_vm11, %v274_v57  ;;  %v6485_v61 = vpop.permute.xlu0 %1305  ;;  %v1472_v46 = vpop.permute.xlu1 %1471  ;;  %v292_v57 = vld [vmem:[%s7494_s5 + $0xb8] sm:$0xff] }
 0x20f   :  { %5717 = vmatpush3.msk.msra.mxu1 %vm315_vm10, %v807_v59  ;;  %5718 = vmatprep.mubr.msk.f32.mxu1 %vm6089_vm0, %v6087_v5  ;;  %v1311_v56 = vmul.f32 %v6594_v42, %v6485_v61  ;;  %v6632_v59 = vrot.slane %v6496_v63, %v6441_v45 }
 0x210   :  { %5721 = vmatprep.subr.mxu1 %v6087_v5 }
 0x212   :  { %5719 = vmatmul.mubr.msk.f32.vlgmr.msra.gmra.mrb[12].mxu1 %vm311_vm11, %v275_v62  ;;  %v6510_v3 = vpop.permute.xlu0 %1555  ;;  %v281_v62 = vld [vmem:[%s7494_s5 + $0x60] sm:$0xff] }
 0x213   :  { %5722 = vmatpush3.msk.msra.mxu1 %vm315_vm10, %v891_v0  ;;  %5723 = vmatprep.mubr.msk.f32.mxu1 %vm6089_vm0, %v6087_v5  ;;  %v1640_v0 = vpop.permute.xlu1 %1639 }
 0x214   :  { %5726 = vmatprep.subr.mxu1 %v6087_v5 }
 0x216   :  { %5724 = vmatmul.mubr.msk.f32.vlgmr.msra.gmra.mrb[14].mxu1 %vm311_vm11, %v276_v4  ;;  %v1724_v11 = vpop.permute.xlu0 %1723  ;;  %v6647_v4 = vrot.slane %v6496_v63, %v6455_v49 }
 0x217   :  { %5727 = vmatpush3.msk.msra.mxu1 %vm315_vm10, %v975_v9  ;;  %v1729_v12 = vmul.f32 %v6520_v6, %v1724_v11  ;;  %5728 = vmatprep.mubr.msk.f32.mxu1 %vm6089_vm0, %v6087_v5  ;;  %v1393_v9 = vmul.f32 %v6632_v59, %v6321_v17  ;;  %v282_v17 = vld [vmem:[%s7494_s5 + $0x68] sm:$0xff] }
 0x218   :  { %5731 = vmatprep.subr.mxu1 %v6087_v5  ;;  %v1477_v11 = vmul.f32 %v6647_v4, %v1472_v46 }
 0x219   :  { %5772 = vmatpush3.msk.msra.mxu0 %vm315_vm10, %v1729_v12  ;;  %v6670_v12 = vrot.slane %v6496_v63, %v6467_v54  ;;  %v6684_v63 = vrot.slane %v6507_v2, %v6388_v24 }
 0x21a   :  { %5729 = vmatmul.mubr.msk.f32.vlgmr.msra.gmra.mrb[16].mxu1 %vm311_vm11, %v277_v13  ;;  %v1892_v20 = vpop.permute.xlu0 %1891  ;;  %5781 = vmatprep.subr.mxu0 %v6087_v5  ;;  %v1808_v13 = vpop.permute.xlu1 %1807 }
 0x21b   :  { %5732 = vmatpush3.msk.msra.mxu1 %vm315_vm10, %v1059_v15  ;;  %v1897_v23 = vmul.f32 %v6538_v14, %v1892_v20  ;;  %5733 = vmatprep.mubr.msk.f32.mxu1 %vm6089_vm0, %v6087_v5  ;;  %v283_v15 = vld [vmem:[%s7494_s5 + $0x70] sm:$0xff]  ;;  %v284_v20 = vld [vmem:[%s7494_s5 + $0x78] sm:$0xff] }
 0x21c   :  { %5736 = vmatprep.subr.mxu1 %v6087_v5  ;;  %5774 = vmatmul.mubr.msk.f32.vlgmr.msra.gmra.mrb[2].mxu0 %vm311_vm11, %v286_v18  ;;  %v1561_v18 = vmul.f32 %v6670_v12, %v6510_v3  ;;  %v285_v3 = vld [vmem:[%s7494_s5 + $0x80] sm:$0xff] }
 0x21d   :  { %5782 = vmatpush3.msk.msra.mxu0 %vm315_vm10, %v1897_v23  ;;  %5783 = vmatprep.mubr.msk.f32.mxu0 %vm6089_vm0, %v6087_v5 }
 0x21e   :  { %5734 = vmatmul.mubr.msk.f32.vlgmr.msra.gmra.mrb[18].mxu1 %vm311_vm11, %v278_v19  ;;  %v2060_v35 = vpop.permute.xlu0 %2059  ;;  %5791 = vmatprep.subr.mxu0 %v6087_v5  ;;  %v1976_v23 = vpop.permute.xlu1 %1975  ;;  %v1645_v19 = vmul.f32 %v6684_v63, %v1640_v0 }
 0x21f   :  { %5737 = vmatpush3.msk.msra.mxu1 %vm315_vm10, %v1143_v32  ;;  %v2065_v36 = vmul.f32 %v6561_v28, %v2060_v35  ;;  %5738 = vmatprep.mubr.msk.f32.mxu1 %vm6089_vm0, %v6087_v5  ;;  %v1813_v32 = vmul.f32 %v6699_v29, %v1808_v13 }
 0x220   :  { %5741 = vmatprep.subr.mxu1 %v6087_v5  ;;  %5784 = vmatmul.mubr.msk.f32.vlgmr.msra.gmra.mrb[4].mxu0 %vm311_vm11, %v288_v34  ;;  %v6712_v34 = vrot.slane %v6507_v2, %v6425_v38 }
 0x221   :  { %5792 = vmatpush3.msk.msra.mxu0 %vm315_vm10, %v2065_v36  ;;  %5793 = vmatprep.mubr.msk.f32.mxu0 %vm6089_vm0, %v6087_v5  ;;  %v287_v36 = vld [vmem:[%s7494_s5 + $0x90] sm:$0xff] }
 0x222   :  { %5739 = vmatmul.mubr.msk.f32.vlgmr.msra.gmra.mrb[20].mxu1 %vm311_vm11, %v279_v39  ;;  %v2228_v50 = vpop.permute.xlu0 %2227  ;;  %5801 = vmatprep.subr.mxu0 %v6087_v5  ;;  %v2144_v35 = vpop.permute.xlu1 %2143  ;;  %v1981_v39 = vmul.f32 %v6712_v34, %v1976_v23 }
 0x223   :  { %5742 = vmatpush3.msk.msra.mxu1 %vm315_vm10, %v1227_v41  ;;  %v2233_v51 = vmul.f32 %v6587_v40, %v2228_v50  ;;  %5743 = vmatprep.mubr.msk.f32.mxu1 %vm6089_vm0, %v6087_v5  ;;  %v6725_v41 = vrot.slane %v6507_v2, %v6455_v49  ;;  %v6738_v2 = vrot.slane %v6605_v48, %v6388_v24 }
 0x224   :  { %5746 = vmatprep.subr.mxu1 %v6087_v5  ;;  %5794 = vmatmul.mubr.msk.f32.vlgmr.msra.gmra.mrb[6].mxu0 %vm311_vm11, %v290_v44  ;;  %v289_v44 = vld [vmem:[%s7494_s5 + $0xa0] sm:$0xff] }
 0x225   :  { %5802 = vmatpush3.msk.msra.mxu0 %vm315_vm10, %v2233_v51  ;;  %5803 = vmatprep.mubr.msk.f32.mxu0 %vm6089_vm0, %v6087_v5  ;;  %v2149_v50 = vmul.f32 %v6725_v41, %v2144_v35  ;;  %v291_v51 = vld [vmem:[%s7494_s5 + $0xb0] sm:$0xff] }
 0x226   :  { %5744 = vmatmul.mubr.msk.f32.vlgmr.msra.gmra.mrb[22].mxu1 %vm311_vm11, %v280_v52  ;;  %v2396_v60 = vpop.permute.xlu0 %2395  ;;  %5811 = vmatprep.subr.mxu0 %v6087_v5  ;;  %v2312_v46 = vpop.permute.xlu1 %2311 }
 0x227   :  { %5747 = vmatpush3.msk.msra.mxu1 %vm315_vm10, %v1311_v56  ;;  %v2401_v61 = vmul.f32 %v6618_v53, %v2396_v60  ;;  %5748 = vmatprep.mubr.msk.f32.mxu1 %vm6089_vm0, %v6087_v5  ;;  %v2317_v52 = vmul.f32 %v6738_v2, %v2312_v46  ;;  %v6751_v56 = vrot.slane %v6605_v48, %v6394_v26  ;;  %v293_v60 = vld [vmem:[%s7494_s5 + $0xc0] sm:$0xff]  ;;  %v295_v48 = vld [vmem:[%s7494_s5 + $0xd0] sm:$0xff]  ;;  %s7546_s5 = smov 112  }
 0x228   :  { %5751 = vmatprep.subr.mxu1 %v6087_v5  ;;  %5804 = vmatmul.mubr.msk.f32.vlgmr.msra.gmra.mrb[8].mxu0 %vm311_vm11, %v292_v57 }
 0x229   :  { %5812 = vmatpush3.msk.msra.mxu0 %vm315_vm10, %v2401_v61  ;;  %5813 = vmatprep.mubr.msk.f32.mxu0 %vm6089_vm0, %v6087_v5 }
 0x22a   :  { %5749 = vmatmul.mubr.msk.f32.vlgmr.msra.gmra.mrb[24].mxu1 %vm311_vm11, %v281_v62  ;;  %5821 = vmatprep.subr.mxu0 %v6087_v5  ;;  %v2480_v57 = vpop.permute.xlu1 %2479 }
 0x22b   :  { %5752 = vmatpush3.msk.msra.mxu1 %vm315_vm10, %v1393_v9  ;;  %5753 = vmatprep.mubr.msk.f32.mxu1 %vm6089_vm0, %v6087_v5  ;;  %v2485_v61 = vmul.f32 %v6751_v56, %v2480_v57 }
 0x22c   :  { %5756 = vmatprep.subr.mxu1 %v6087_v5  ;;  %5814 = vmatmul.mubr.msk.f32.vlgmr.msra.gmra.mrb[10].mxu0 %vm311_vm11, %v294_v10 }
 0x22d   :  { %5823 = vmatprep.mubr.msk.f32.mxu0 %vm6089_vm0, %v6087_v5 }
 0x22e   :  { %5754 = vmatmul.mubr.msk.f32.vlgmr.msra.gmra.mrb[26].mxu1 %vm311_vm11, %v282_v17 }
 0x22f   :  { %5757 = vmatpush3.msk.msra.mxu1 %vm315_vm10, %v1477_v11  ;;  %5758 = vmatprep.mubr.msk.f32.mxu1 %vm6089_vm0, %v6087_v5 }
 0x230   :  { %5761 = vmatprep.subr.mxu1 %v6087_v5 }
 0x232   :  { %5759 = vmatmul.mubr.msk.f32.vlgmr.msra.gmra.mrb[28].mxu1 %vm311_vm11, %v283_v15 }
 0x233   :  { %5762 = vmatpush3.msk.msra.mxu1 %vm315_vm10, %v1561_v18  ;;  %5763 = vmatprep.mubr.msk.f32.mxu1 %vm6089_vm0, %v6087_v5 }
 0x234   :  { %5766 = vmatprep.subr.mxu1 %v6087_v5 }
 0x236   :  { %5764 = vmatmul.mubr.msk.f32.vlgmr.msra.gmra.mrb[30].mxu1 %vm311_vm11, %v284_v20 }
 0x237   :  { %5767 = vmatpush3.msk.msra.mxu1 %vm315_vm10, %v1645_v19  ;;  %5768 = vmatprep.mubr.msk.f32.mxu1 %vm6089_vm0, %v6087_v5 }
 0x238   :  { %5776 = vmatprep.subr.mxu1 %v6087_v5 }
 0x23a   :  { %5769 = vmatmul.mubr.msk.f32.vlgmr.msra.gmra.mrb[32].mxu1 %vm311_vm11, %v285_v3 }
 0x23b   :  { %5777 = vmatpush3.msk.msra.mxu1 %vm315_vm10, %v1813_v32  ;;  %5778 = vmatprep.mubr.msk.f32.mxu1 %vm6089_vm0, %v6087_v5 }
 0x23c   :  { %5786 = vmatprep.subr.mxu1 %v6087_v5 }
 0x23e   :  { %5779 = vmatmul.mubr.msk.f32.vlgmr.msra.gmra.mrb[34].mxu1 %vm311_vm11, %v287_v36 }
 0x23f   :  { %5787 = vmatpush3.msk.msra.mxu1 %vm315_vm10, %v1981_v39  ;;  %5788 = vmatprep.mubr.msk.f32.mxu1 %vm6089_vm0, %v6087_v5 }
 0x240   :  { %5796 = vmatprep.subr.mxu1 %v6087_v5 }
 0x242   :  { %5789 = vmatmul.mubr.msk.f32.vlgmr.msra.gmra.mrb[36].mxu1 %vm311_vm11, %v289_v44 }
 0x243   :  { %5797 = vmatpush3.msk.msra.mxu1 %vm315_vm10, %v2149_v50  ;;  %5798 = vmatprep.mubr.msk.f32.mxu1 %vm6089_vm0, %v6087_v5 }
 0x244   :  { %5806 = vmatprep.subr.mxu1 %v6087_v5 }
 0x246   :  { %5799 = vmatmul.mubr.msk.f32.vlgmr.msra.gmra.mrb[38].mxu1 %vm311_vm11, %v291_v51 }
 0x247   :  { %5807 = vmatpush3.msk.msra.mxu1 %vm315_vm10, %v2317_v52  ;;  %5808 = vmatprep.mubr.msk.f32.mxu1 %vm6089_vm0, %v6087_v5 }
 0x248   :  { %5816 = vmatprep.subr.mxu1 %v6087_v5 }
 0x24a   :  { %5809 = vmatmul.mubr.msk.f32.vlgmr.msra.gmra.mrb[40].mxu1 %vm311_vm11, %v293_v60 }
 0x24b   :  { %5817 = vmatpush3.msk.msra.mxu1 %vm315_vm10, %v2485_v61  ;;  %5818 = vmatprep.mubr.msk.f32.mxu1 %vm6089_vm0, %v6087_v5 }
 0x24c   :  { %5826 = vmatprep.subr.mxu1 %v6087_v5 }
 0x24e   :  { %5819 = vmatmul.mubr.msk.f32.vlgmr.msra.gmra.mrb[42].mxu1 %vm311_vm11, %v295_v48 }
 0x24f   :  { %5828 = vmatprep.mubr.msk.f32.mxu1 %vm6089_vm0, %v6087_v5 }
 0x2cd   :  { %v385_v62 = vpop.f32.mrb[0].mxu1 }
 0x2ce   :  { %v5690_v0 = vpop.f32.mrb[1].mxu1 }
 0x2d1   :  { %v461_v9 = vpop.f32.mrb[2].mxu1 }
 0x2d2   :  { %v462_v10 = vadd.f32 %v461_v9, %v385_v62  ;;  %v5695_v17 = vpop.f32.mrb[3].mxu1 }
 0x2d5   :  { %v544_v11 = vpop.f32.mrb[4].mxu1 }
 0x2d6   :  { %v548_v13 = vadd.f32 %v544_v11, %v462_v10  ;;  %v5700_v15 = vpop.f32.mrb[5].mxu1 }
 0x2d9   :  { %v628_v18 = vpop.f32.mrb[6].mxu1 }
 0x2da   :  { %v632_v20 = vadd.f32 %v628_v18, %v548_v13  ;;  %v5705_v23 = vpop.f32.mrb[7].mxu1 }
 0x2dd   :  { %v712_v19 = vpop.f32.mrb[8].mxu1 }
 0x2de   :  { %v716_v3 = vadd.f32 %v712_v19, %v632_v20  ;;  %v5710_v32 = vpop.f32.mrb[9].mxu1 }
 0x2e1   :  { %v796_v35 = vpop.f32.mrb[10].mxu1 }
 0x2e2   :  { %v800_v36 = vadd.f32 %v796_v35, %v716_v3  ;;  %v5715_v39 = vpop.f32.mrb[11].mxu1 }
 0x2e5   :  { %v880_v44 = vpop.f32.mrb[12].mxu1 }
 0x2e6   :  { %v884_v46 = vadd.f32 %v880_v44, %v800_v36  ;;  %v5720_v50 = vpop.f32.mrb[13].mxu1 }
 0x2e9   :  { %v964_v51 = vpop.f32.mrb[14].mxu1 }
 0x2ea   :  { %v968_v52 = vadd.f32 %v964_v51, %v884_v46  ;;  %v5725_v57 = vpop.f32.mrb[15].mxu1 }
 0x2ed   :  { %v1048_v60 = vpop.f32.mrb[16].mxu1 }
 0x2ee   :  { %v1052_v61 = vadd.f32 %v1048_v60, %v968_v52  ;;  %v5730_v48 = vpop.f32.mrb[17].mxu1 }
 0x2ef   :  { %v1802_v62 = vpop.f32.mrb[2].mxu0 }
 0x2f0   :  { %v5775_v0 = vpop.f32.mrb[3].mxu0 }
 0x2f1   :  { %v1132_v9 = vpop.f32.mrb[18].mxu1 }
 0x2f2   :  { %v1136_v10 = vadd.f32 %v1132_v9, %v1052_v61  ;;  %v5735_v17 = vpop.f32.mrb[19].mxu1 }
 0x2f3   :  { %v1970_v11 = vpop.f32.mrb[4].mxu0 }
 0x2f4   :  { %v5785_v13 = vpop.f32.mrb[5].mxu0 }
 0x2f5   :  { %v1216_v15 = vpop.f32.mrb[20].mxu1 }
 0x2f6   :  { %v1220_v18 = vadd.f32 %v1216_v15, %v1136_v10  ;;  %v5740_v20 = vpop.f32.mrb[21].mxu1 }
 0x2f7   :  { %v2138_v23 = vpop.f32.mrb[6].mxu0 }
 0x2f8   :  { %v5795_v19 = vpop.f32.mrb[7].mxu0 }
 0x2f9   :  { %v1300_v3 = vpop.f32.mrb[22].mxu1 }
 0x2fa   :  { %v1304_v32 = vadd.f32 %v1300_v3, %v1220_v18  ;;  %v5745_v35 = vpop.f32.mrb[23].mxu1 }
 0x2fb   :  { %v2306_v36 = vpop.f32.mrb[8].mxu0 }
 0x2fc   :  { %v5805_v39 = vpop.f32.mrb[9].mxu0 }
 0x2fd   :  { %v1384_v44 = vpop.f32.mrb[24].mxu1 }
 0x2fe   :  { %v1388_v46 = vadd.f32 %v1384_v44, %v1304_v32  ;;  %v5750_v50 = vpop.f32.mrb[25].mxu1 }
 0x2ff   :  { %v2474_v51 = vpop.f32.mrb[10].mxu0 }
 0x300   :  { %v5815_v52 = vpop.f32.mrb[11].mxu0 }
 0x301   :  { %v1466_v57 = vpop.f32.mrb[26].mxu1 }
 0x302   :  { %v1470_v60 = vadd.f32 %v1466_v57, %v1388_v46  ;;  %v5755_v61 = vpop.f32.mrb[27].mxu1 }
 0x305   :  { %v1550_v48 = vpop.f32.mrb[28].mxu1 }
 0x306   :  { %v1554_v0 = vadd.f32 %v1550_v48, %v1470_v60  ;;  %v5760_v9 = vpop.f32.mrb[29].mxu1 }
 0x309   :  { %v1634_v10 = vpop.f32.mrb[30].mxu1 }
 0x30a   :  { %v1638_v17 = vadd.f32 %v1634_v10, %v1554_v0  ;;  %v5765_v13 = vpop.f32.mrb[31].mxu1 }
 0x30d   :  { %v1718_v15 = vpop.f32.mrb[32].mxu1 }
 0x30e   :  { %v1722_v20 = vadd.f32 %v1718_v15, %v1638_v17  ;;  %v5770_v18 = vpop.f32.mrb[33].mxu1 }
 0x310   :  { %v1806_v19 = vadd.f32 %v1802_v62, %v1722_v20  ;;  %v2566_v62 = vpop.permute.xlu0 %2565 }
 0x311   :  { %v1886_v3 = vpop.f32.mrb[34].mxu1 }
 0x312   :  { %v1890_v35 = vadd.f32 %v1886_v3, %v1806_v19  ;;  %v5780_v39 = vpop.f32.mrb[35].mxu1 }
 0x313   :  { %v2569_v39 = vld [vmem:[%s7496_s7] sm:$0xff]  ;;  %s7533_s7 = smov 13  }
 0x314   :  { %v1974_v32 = vadd.f32 %v1970_v11, %v1890_v35  ;;  %v2570_v11 = vld [vmem:[%s7495_s8] sm:$0xff]  ;;  %s7534_s8 = smov 5  }
 0x315   :  { %v2054_v44 = vpop.f32.mrb[36].mxu1 }
 0x316   :  { %v2058_v50 = vadd.f32 %v2054_v44, %v1974_v32  ;;  %v5790_v52 = vpop.f32.mrb[37].mxu1 }
 0x318   :  { %v2142_v8 = vadd.f32 %v2138_v23, %v2058_v50 }
 0x319   :  { %v2222_v46 = vpop.f32.mrb[38].mxu1 }
 0x31a   :  { %v2226_v57 = vadd.f32 %v2222_v46, %v2142_v8  ;;  %v5800_v61 = vpop.f32.mrb[39].mxu1 }
 0x31c   :  { %v2310_v60 = vadd.f32 %v2306_v36, %v2226_v57 }
 0x31d   :  { %v2390_v48 = vpop.f32.mrb[40].mxu1 }
 0x31e   :  { %v2394_v9 = vadd.f32 %v2390_v48, %v2310_v60  ;;  %v5810_v0 = vpop.f32.mrb[41].mxu1 }
 0x320   :  { %v2478_v10 = vadd.f32 %v2474_v51, %v2394_v9  ;;  %v2626_v9 = vld [vmem:[%s7497_s10] sm:$0xff] }
 0x321   :  { %v2558_v13 = vpop.f32.mrb[42].mxu1 }
 0x322   :  { %v2562_v17 = vadd.f32 %v2558_v13, %v2478_v10  ;;  %v5820_v15 = vpop.f32.mrb[43].mxu1 }
 0x323   :  { %v2600_v15 = vld [vmem:[%s7498_s9 + $0x8] sm:$0xff] }
 0x324   :  { %v2568_v20 = vadd.f32 %v2566_v62, %v2562_v17  ;;  %v2599_v62 = vld [vmem:[%s7498_s9] sm:$0xff] }
 0x326   :  { %2571 = vadd.xlane.f32.xlu1 %v2568_v20  ;;  %v2574_v18 = vmul.f32 %v2568_v20, %v2568_v20 }
 0x328   :  { %2575 = vadd.xlane.f32.xlu0 %v2574_v18 }
 0x337   :  { %2592 = vperm.xlu1 %6076, %v2570_v11   ;;  %v2601_v11 = vld [vmem:[%s7498_s9 + $0x10] sm:$0xff] }
 0x3b3   :  { %v2572_v8 = vpop.xlane.xlu1 %2571 }
 0x3b4   :  { %v2573_v23 = vmul.f32 0.0078125, %v2572_v8  ;;  %v2602_v8 = vld [vmem:[%s7498_s9 + $0x18] sm:$0xff] }
 0x3b5   :  { %v2576_v36 = vpop.xlane.xlu0 %2575 }
 0x3b6   :  { %v2578_v19 = vmul.f32 %v2573_v23, %v2573_v23  ;;  %v2577_v3 = vmul.f32 0.0078125, %v2576_v36  ;;  %v2580_v50 = vsub.f32 %v2568_v20, %v2573_v23 }
 0x3b7   :  { %v2593_v57 = vpop.permute.xlu1 %2592 }
 0x3b8   :  { %v2579_v35 = vsub.f32 %v2577_v3, %v2578_v19  ;;  %v2603_v19 = vld [vmem:[%s7498_s9 + $0x20] sm:$0xff]  ;;  %v2604_v3 = vld [vmem:[%s7498_s9 + $0x28] sm:$0xff] }
 0x3ba   :  { %v2581_v51 = vadd.f32 0.0001, %v2579_v35 }
 0x3bc   :  { %6079 = vrsqrt.f32 %v2581_v51 }
 0x3c6   :  { %v6080_v32 = vpop.eup %6079 }
 0x3c7   :  { %v2583_v44 = vmul.f32 %v6080_v32, %v2569_v39  ;;  %v2605_v39 = vld [vmem:[%s7498_s9 + $0x30] sm:$0xff]  ;;  %v2606_v32 = vld [vmem:[%s7498_s9 + $0x38] sm:$0xff] }
 0x3c9   :  { %2586 = vperm.xlu0 %6075, %v2583_v44  }
 0x448   :  { %v2587_v52 = vpop.permute.xlu0 %2586 }
 0x449   :  { %v2589_v46 = vmul.f32 %v2587_v52, %v2580_v50  ;;  %v2607_v52 = vld [vmem:[%s7498_s9 + $0x40] sm:$0xff] }
 0x44b   :  { %v2595_v61 = vadd.f32 %v2593_v57, %v2589_v46  ;;  %v2608_v46 = vld [vmem:[%s7498_s9 + $0x48] sm:$0xff] }
 0x44d   :  { %vm2596_vm12 = vcmp.ge.f32.partialorder %v2595_v61, 0.0  ;;  %v2597_v60 = vmul.f32 0.1, %v2595_v61 }
 0x44f   :  { %v6779_v48 = vsel %vm2596_vm12, %v2595_v61, %v2597_v60  ;;  %v2609_v60 = vld [vmem:[%s7498_s9 + $0x50] sm:$0xff] }
 0x450   :  { %2627 = vrot.lane.b32.xlu0 %v6779_v48, %s6091_s30  ;;  %2630 = vrot.lane.b32.xlu1 %v6779_v48, %s6092_s18  ;;  %s7535_s30 = smov 11   ;;  %s7536_s18 = smov 3  }
 0x454   :  { %2857 = vrot.lane.b32.xlu0 %v6779_v48, %s6093_s19  ;;  %2780 = vrot.lane.b32.xlu1 %v6779_v48, %s6094_s0  ;;  %s7537_s19 = smov 4   ;;  %s7538_s0 = smov 127  }
 0x458   :  { %3011 = vrot.lane.b32.xlu0 %v6779_v48, %s6095_s20  ;;  %2934 = vrot.lane.b32.xlu1 %v6779_v48, %s6096_s21  ;;  %s7539_s20 = smov 1   ;;  %s7540_s21 = smov 124  }
 0x45c   :  { %3165 = vrot.lane.b32.xlu0 %v6779_v48, %s6097_s22  ;;  %3088 = vrot.lane.b32.xlu1 %v6779_v48, %s7533_s7  ;;  %s7541_s22 = smov 125  }
 0x460   :  { %3319 = vrot.lane.b32.xlu0 %v6779_v48, %s7534_s8  ;;  %3242 = vrot.lane.b32.xlu1 %v6779_v48, %s7535_s30 }
 0x464   :  { %3473 = vrot.lane.b32.xlu0 %v6779_v48, %s7536_s18  ;;  %3396 = vrot.lane.b32.xlu1 %v6779_v48, %s7537_s19 }
 0x468   :  { %3702 = vrot.lane.b32.xlu0 %v6779_v48, %s7538_s0  ;;  %3550 = vrot.lane.b32.xlu1 %v6779_v48, %s7539_s20 }
 0x46c   :  { %3856 = vrot.lane.b32.xlu0 %v6779_v48, %s7540_s21  ;;  %3779 = vrot.lane.b32.xlu1 %v6779_v48, %s7541_s22 }
 0x470   :  { %4010 = vrot.lane.b32.xlu0 %v6779_v48, %s7542_s23  ;;  %3933 = vrot.lane.b32.xlu1 %v6779_v48, %s7543_s4 }
 0x474   :  { %4164 = vrot.lane.b32.xlu0 %v6779_v48, %s7544_s24  ;;  %4087 = vrot.lane.b32.xlu1 %v6779_v48, %s7545_s27 }
 0x478   :  { %4318 = vrot.lane.b32.xlu0 %v6779_v48, %s7546_s5  ;;  %4241 = vrot.lane.b32.xlu1 %v6779_v48, %s6112_s25 }
 0x47c   :  { %4472 = vrot.lane.b32.xlu0 %v6779_v48, %s7547_s29  ;;  %4395 = vrot.lane.b32.xlu1 %v6779_v48, %s7548_s28 }
 0x480   :  { %4626 = vrot.lane.b32.xlu0 %v6779_v48, %s6115_s26  ;;  %4549 = vrot.lane.b32.xlu1 %v6779_v48, %s7549_s6 }
 0x484   :  { %4705 = vperm.xlu1 %6076, %v2626_v9  }
 0x4c2   :  { %v2628_v0 = vpop.permute.xlu0 %2627  ;;  %v2631_v10 = vpop.permute.xlu1 %2630 }
 0x4c3   :  { %v2629_v13 = vmul.f32 %v2628_v0, %v6397_v27  ;;  %v2632_v17 = vmul.f32 %v2631_v10, %v6391_v25  ;;  %v3627_v0 = vmul.f32 %v6779_v48, %v6632_v59 }
 0x4c5   :  { %5822 = vmatpush3.msra.mxu0 %v2632_v17  ;;  %5827 = vmatpush3.msra.mxu1 %v2629_v13  ;;  %v2611_v13 = vld [vmem:[%s7498_s9 + $0x60] sm:$0xff]  ;;  %v2612_v17 = vld [vmem:[%s7498_s9 + $0x68] sm:$0xff] }
 0x4c6   :  { %v2858_v20 = vpop.permute.xlu0 %2857  ;;  %5824 = vmatmul.mubr.msk.f32.vlgmr.msra.gmra.mrb[12].mxu0 %vm2633_vm13, %v2600_v15  ;;  %v2781_v18 = vpop.permute.xlu1 %2780  ;;  %5829 = vmatmul.mubr.msk.f32.vlgmr.msra.gmra.mrb[44].mxu1 %vm2633_vm13, %v2599_v62 }
 0x4c7   :  { %v2859_v27 = vmul.f32 %v2858_v20, %v6422_v37  ;;  %v2782_v25 = vmul.f32 %v2781_v18, %v6404_v31  ;;  %5831 = vmatprep.subr.mxu0 %v6087_v5  ;;  %5836 = vmatprep.subr.mxu1 %v6087_v5  ;;  %v2614_v20 = vld [vmem:[%s7498_s9 + $0x78] sm:$0xff] }
 0x4c8   :  { %5833 = vmatprep.mubr.msk.f32.mxu0 %vm6089_vm0, %v6087_v5  ;;  %5838 = vmatprep.mubr.msk.f32.mxu1 %vm6089_vm0, %v6087_v5 }
 0x4c9   :  { %5832 = vmatpush3.msra.mxu0 %v2782_v25  ;;  %5837 = vmatpush3.msra.mxu1 %v2859_v27  ;;  %v2615_v25 = vld [vmem:[%s7498_s9 + $0x80] sm:$0xff] }
 0x4ca   :  { %v3012_v31 = vpop.permute.xlu0 %3011  ;;  %5834 = vmatmul.mubr.msk.f32.vlgmr.msra.gmra.mrb[14].mxu0 %vm2633_vm13, %v2601_v11  ;;  %v2935_v37 = vpop.permute.xlu1 %2934  ;;  %5839 = vmatmul.mubr.msk.f32.vlgmr.msra.gmra.mrb[46].mxu1 %vm2633_vm13, %v2602_v8  ;;  %v2616_v11 = vld [vmem:[%s7498_s9 + $0x88] sm:$0xff] }
 0x4cb   :  { %v3013_v23 = vmul.f32 %v3012_v31, %v6451_v47  ;;  %v2936_v36 = vmul.f32 %v2935_v37, %v6437_v43  ;;  %5841 = vmatprep.subr.mxu0 %v6087_v5  ;;  %5846 = vmatprep.subr.mxu1 %v6087_v5  ;;  %v2617_v37 = vld [vmem:[%s7498_s9 + $0x90] sm:$0xff] }
 0x4cc   :  { %5843 = vmatprep.mubr.msk.f32.mxu0 %vm6089_vm0, %v6087_v5  ;;  %5848 = vmatprep.mubr.msk.f32.mxu1 %vm6089_vm0, %v6087_v5 }
 0x4cd   :  { %5842 = vmatpush3.msra.mxu0 %v2936_v36  ;;  %5847 = vmatpush3.msra.mxu1 %v3013_v23  ;;  %v2618_v23 = vld [vmem:[%s7498_s9 + $0x98] sm:$0xff] }
 0x4ce   :  { %v3166_v43 = vpop.permute.xlu0 %3165  ;;  %5844 = vmatmul.mubr.msk.f32.vlgmr.msra.gmra.mrb[16].mxu0 %vm2633_vm13, %v2603_v19  ;;  %v3089_v47 = vpop.permute.xlu1 %3088  ;;  %5849 = vmatmul.mubr.msk.f32.vlgmr.msra.gmra.mrb[48].mxu1 %vm2633_vm13, %v2604_v3  ;;  %v2619_v3 = vld [vmem:[%s7498_s9 + $0xa0] sm:$0xff] }
 0x4cf   :  { %v3167_v35 = vmul.f32 %v3166_v43, %v6481_v58  ;;  %v3090_v51 = vmul.f32 %v3089_v47, %v6470_v55  ;;  %5851 = vmatprep.subr.mxu0 %v6087_v5  ;;  %5856 = vmatprep.subr.mxu1 %v6087_v5  ;;  %v2620_v43 = vld [vmem:[%s7498_s9 + $0xa8] sm:$0xff] }
 0x4d0   :  { %5853 = vmatprep.mubr.msk.f32.mxu0 %vm6089_vm0, %v6087_v5  ;;  %5858 = vmatprep.mubr.msk.f32.mxu1 %vm6089_vm0, %v6087_v5 }
 0x4d1   :  { %5852 = vmatpush3.msra.mxu0 %v3090_v51  ;;  %5857 = vmatpush3.msra.mxu1 %v3167_v35  ;;  %v2621_v51 = vld [vmem:[%s7498_s9 + $0xb0] sm:$0xff] }
 0x4d2   :  { %v3320_v55 = vpop.permute.xlu0 %3319  ;;  %5854 = vmatmul.mubr.msk.f32.vlgmr.msra.gmra.mrb[18].mxu0 %vm2633_vm13, %v2605_v39  ;;  %v3243_v58 = vpop.permute.xlu1 %3242  ;;  %5859 = vmatmul.mubr.msk.f32.vlgmr.msra.gmra.mrb[50].mxu1 %vm2633_vm13, %v2606_v32  ;;  %v2622_v39 = vld [vmem:[%s7498_s9 + $0xb8] sm:$0xff] }
 0x4d3   :  { %v3321_v44 = vmul.f32 %v3320_v55, %v6525_v7  ;;  %v3244_v50 = vmul.f32 %v3243_v58, %v6502_v1  ;;  %5861 = vmatprep.subr.mxu0 %v6087_v5  ;;  %5866 = vmatprep.subr.mxu1 %v6087_v5  ;;  %v2623_v58 = vld [vmem:[%s7498_s9 + $0xc0] sm:$0xff] }
 0x4d4   :  { %5863 = vmatprep.mubr.msk.f32.mxu0 %vm6089_vm0, %v6087_v5  ;;  %5868 = vmatprep.mubr.msk.f32.mxu1 %vm6089_vm0, %v6087_v5 }
 0x4d5   :  { %5862 = vmatpush3.msra.mxu0 %v3244_v50  ;;  %5867 = vmatpush3.msra.mxu1 %v3321_v44  ;;  %v2624_v44 = vld [vmem:[%s7498_s9 + $0xc8] sm:$0xff]  ;;  %v7550_v50 = vmov 0.0|0.0  }
 0x4d6   :  { %v3474_v1 = vpop.permute.xlu0 %3473  ;;  %5864 = vmatmul.mubr.msk.f32.vlgmr.msra.gmra.mrb[20].mxu0 %vm2633_vm13, %v2607_v52  ;;  %v3397_v7 = vpop.permute.xlu1 %3396  ;;  %5869 = vmatmul.mubr.msk.f32.vlgmr.msra.gmra.mrb[52].mxu1 %vm2633_vm13, %v2608_v46  ;;  %v5206_v52 = vld [vmem:[%s7499_s13] sm:$0xff] }
 0x4d7   :  { %v3475_v57 = vmul.f32 %v3474_v1, %v6567_v30  ;;  %v3398_v61 = vmul.f32 %v3397_v7, %v6544_v16  ;;  %5871 = vmatprep.subr.mxu0 %v6087_v5  ;;  %5876 = vmatprep.subr.mxu1 %v6087_v5  ;;  %v2610_v30 = vld [vmem:[%s7498_s9 + $0x58] sm:$0xff] }
 0x4d8   :  { %5873 = vmatprep.mubr.msk.f32.mxu0 %vm6089_vm0, %v6087_v5  ;;  %5878 = vmatprep.mubr.msk.f32.mxu1 %vm6089_vm0, %v6087_v5 }
 0x4d9   :  { %5872 = vmatpush3.msra.mxu0 %v3398_v61  ;;  %5877 = vmatpush3.msra.mxu1 %v3475_v57 }
 0x4da   :  { %5886 = vmatprep.subr.mxu1 %v6087_v5  ;;  %v3703_v16 = vpop.permute.xlu0 %3702  ;;  %5874 = vmatmul.mubr.msk.f32.vlgmr.msra.gmra.mrb[22].mxu0 %vm2633_vm13, %v2609_v60  ;;  %v3551_v9 = vpop.permute.xlu1 %3550 }
 0x4db   :  { %v3552_v10 = vmul.f32 %v3551_v9, %v6594_v42  ;;  %5879 = vmatmul.mubr.msk.f32.vlgmr.msra.gmra.mrb[54].mxu1 %vm2633_vm13, %v2610_v30  ;;  %5881 = vmatprep.subr.mxu0 %v6087_v5  ;;  %v3704_v59 = vmul.f32 %v3703_v16, %v6647_v4  ;;  %v2613_v4 = vld [vmem:[%s7498_s9 + $0x70] sm:$0xff] }
 0x4dc   :  { %5887 = vmatpush3.msra.mxu1 %v3627_v0  ;;  %5883 = vmatprep.mubr.msk.f32.mxu0 %vm6089_vm0, %v6087_v5 }
 0x4dd   :  { %5882 = vmatpush3.msra.mxu0 %v3552_v10  ;;  %5888 = vmatprep.mubr.msk.f32.mxu1 %vm6089_vm0, %v6087_v5 }
 0x4de   :  { %v3857_v42 = vpop.permute.xlu0 %3856  ;;  %5884 = vmatmul.mubr.msk.f32.vlgmr.msra.gmra.mrb[24].mxu0 %vm2633_vm13, %v2611_v13  ;;  %5891 = vmatprep.subr.mxu0 %v6087_v5  ;;  %v3780_v48 = vpop.permute.xlu1 %3779 }
 0x4df   :  { %v3858_v15 = vmul.f32 %v3857_v42, %v6684_v63  ;;  %v3781_v62 = vmul.f32 %v3780_v48, %v6670_v12  ;;  %5892 = vmatpush3.msra.mxu0 %v3704_v59  ;;  %5889 = vmatmul.mubr.msk.f32.vlgmr.msra.gmra.mrb[56].mxu1 %vm2633_vm13, %v2612_v17 }
 0x4e0   :  { %5896 = vmatprep.subr.mxu1 %v6087_v5  ;;  %5893 = vmatprep.mubr.msk.f32.mxu0 %vm6089_vm0, %v6087_v5 }
 0x4e1   :  { %5897 = vmatpush3.msra.mxu1 %v3781_v62  ;;  %5901 = vmatprep.subr.mxu0 %v6087_v5 }
 0x4e2   :  { %v4011_v12 = vpop.permute.xlu0 %4010  ;;  %5894 = vmatmul.mubr.msk.f32.vlgmr.msra.gmra.mrb[26].mxu0 %vm2633_vm13, %v2613_v4  ;;  %v3934_v63 = vpop.permute.xlu1 %3933  ;;  %5898 = vmatprep.mubr.msk.f32.mxu1 %vm6089_vm0, %v6087_v5 }
 0x4e3   :  { %v4012_v18 = vmul.f32 %v4011_v12, %v6699_v29  ;;  %5902 = vmatpush3.msra.mxu0 %v3858_v15  ;;  %v3935_v27 = vmul.f32 %v3934_v63, %v6520_v6  ;;  %5899 = vmatmul.mubr.msk.f32.vlgmr.msra.gmra.mrb[58].mxu1 %vm2633_vm13, %v2614_v20 }
 0x4e4   :  { %5906 = vmatprep.subr.mxu1 %v6087_v5  ;;  %5903 = vmatprep.mubr.msk.f32.mxu0 %vm6089_vm0, %v6087_v5 }
 0x4e5   :  { %5907 = vmatpush3.msra.mxu1 %v3935_v27  ;;  %5911 = vmatprep.subr.mxu0 %v6087_v5 }
 0x4e6   :  { %v4165_v29 = vpop.permute.xlu0 %4164  ;;  %5904 = vmatmul.mubr.msk.f32.vlgmr.msra.gmra.mrb[28].mxu0 %vm2633_vm13, %v2615_v25  ;;  %v4088_v6 = vpop.permute.xlu1 %4087  ;;  %5908 = vmatprep.mubr.msk.f32.mxu1 %vm6089_vm0, %v6087_v5 }
 0x4e7   :  { %v4166_v8 = vmul.f32 %v4165_v29, %v6712_v34  ;;  %5912 = vmatpush3.msra.mxu0 %v4012_v18  ;;  %v4089_v31 = vmul.f32 %v4088_v6, %v6538_v14  ;;  %5909 = vmatmul.mubr.msk.f32.vlgmr.msra.gmra.mrb[60].mxu1 %vm2633_vm13, %v2616_v11 }
 0x4e8   :  { %5916 = vmatprep.subr.mxu1 %v6087_v5  ;;  %5913 = vmatprep.mubr.msk.f32.mxu0 %vm6089_vm0, %v6087_v5 }
 0x4e9   :  { %5917 = vmatpush3.msra.mxu1 %v4089_v31  ;;  %5921 = vmatprep.subr.mxu0 %v6087_v5 }
 0x4ea   :  { %v4319_v34 = vpop.permute.xlu0 %4318  ;;  %5914 = vmatmul.mubr.msk.f32.vlgmr.msra.gmra.mrb[30].mxu0 %vm2633_vm13, %v2617_v37  ;;  %v4242_v14 = vpop.permute.xlu1 %4241  ;;  %5918 = vmatprep.mubr.msk.f32.mxu1 %vm6089_vm0, %v6087_v5 }
 0x4eb   :  { %v4320_v36 = vmul.f32 %v4319_v34, %v6725_v41  ;;  %5922 = vmatpush3.msra.mxu0 %v4166_v8  ;;  %v4243_v19 = vmul.f32 %v4242_v14, %v6561_v28  ;;  %5919 = vmatmul.mubr.msk.f32.vlgmr.msra.gmra.mrb[62].mxu1 %vm2633_vm13, %v2618_v23 }
 0x4ec   :  { %5926 = vmatprep.subr.mxu1 %v6087_v5  ;;  %5923 = vmatprep.mubr.msk.f32.mxu0 %vm6089_vm0, %v6087_v5 }
 0x4ed   :  { %5927 = vmatpush3.msra.mxu1 %v4243_v19  ;;  %5931 = vmatprep.subr.mxu0 %v6087_v5 }
 0x4ee   :  { %v4473_v41 = vpop.permute.xlu0 %4472  ;;  %5924 = vmatmul.mubr.msk.f32.vlgmr.msra.gmra.mrb[32].mxu0 %vm2633_vm13, %v2619_v3  ;;  %v4396_v28 = vpop.permute.xlu1 %4395  ;;  %5928 = vmatprep.mubr.msk.f32.mxu1 %vm6089_vm0, %v6087_v5 }
 0x4ef   :  { %v4474_v47 = vmul.f32 %v4473_v41, %v6738_v2  ;;  %5932 = vmatpush3.msra.mxu0 %v4320_v36  ;;  %v4397_v35 = vmul.f32 %v4396_v28, %v6587_v40  ;;  %5929 = vmatmul.mubr.msk.f32.vlgmr.msra.gmra.mrb[64].mxu1 %vm2633_vm13, %v2620_v43 }
 0x4f0   :  { %5936 = vmatprep.subr.mxu1 %v6087_v5  ;;  %5933 = vmatprep.mubr.msk.f32.mxu0 %vm6089_vm0, %v6087_v5 }
 0x4f1   :  { %5937 = vmatpush3.msra.mxu1 %v4397_v35  ;;  %5941 = vmatprep.subr.mxu0 %v6087_v5 }
 0x4f2   :  { %v4627_v2 = vpop.permute.xlu0 %4626  ;;  %5934 = vmatmul.mubr.msk.f32.vlgmr.msra.gmra.mrb[34].mxu0 %vm2633_vm13, %v2621_v51  ;;  %v4550_v40 = vpop.permute.xlu1 %4549  ;;  %5938 = vmatprep.mubr.msk.f32.mxu1 %vm6089_vm0, %v6087_v5 }
 0x4f3   :  { %v4628_v32 = vmul.f32 %v4627_v2, %v6751_v56  ;;  %5942 = vmatpush3.msra.mxu0 %v4474_v47  ;;  %v4551_v55 = vmul.f32 %v4550_v40, %v6618_v53  ;;  %5939 = vmatmul.mubr.msk.f32.vlgmr.msra.gmra.mrb[66].mxu1 %vm2633_vm13, %v2622_v39  ;;  %v2625_v53 = vld [vmem:[%s7498_s9 + $0xd0] sm:$0xff]  ;;  %v6085_v56 = vld [vmem:[%s7532_s1] sm:$0xf] }
 0x4f4   :  { %5946 = vmatprep.subr.mxu1 %v6087_v5  ;;  %5943 = vmatprep.mubr.msk.f32.mxu0 %vm6089_vm0, %v6087_v5 }
 0x4f5   :  { %5947 = vmatpush3.msra.mxu1 %v4551_v55  ;;  %5951 = vmatprep.subr.mxu0 %v6087_v5 }
 0x4f6   :  { %5944 = vmatmul.mubr.msk.f32.vlgmr.msra.gmra.mrb[36].mxu0 %vm2633_vm13, %v2623_v58  ;;  %5948 = vmatprep.mubr.msk.f32.mxu1 %vm6089_vm0, %v6087_v5 }
 0x4f7   :  { %5952 = vmatpush3.msra.mxu0 %v4628_v32  ;;  %5949 = vmatmul.mubr.msk.f32.vlgmr.msra.gmra.mrb[68].mxu1 %vm2633_vm13, %v2624_v44 }
 0x4f8   :  { %5953 = vmatprep.mubr.msk.f32.mxu0 %vm6089_vm0, %v6087_v5  ;;  %5956 = vmatprep.subr.mxu1 %v6087_v5 }
 0x4f9   :  { %5957 = vmatpush3.msk.msra.mxu1 %vm315_vm10, %v6085_v56  ;;  %5958 = vmatprep.mubr.msk.f32.mxu1 %vm6089_vm0, %v6087_v5 }
 0x4fa   :  { %5954 = vmatmul.mubr.msk.f32.vlgmr.msra.gmra.mrb[38].mxu0 %vm2633_vm13, %v2625_v53  ;;  %6020 = vmatprep.subr.bf16.mxu0 %v7550_v50 }
 0x4fb   :  { %5993 = vmatprep.mubr.msk.f32.mxu0 %vm6089_vm0, %v6087_v5  ;;  %5959 = vmatmul.mubr.msk.f32.vlgmr.msra.gmra.mrb[70].mxu1 %vm311_vm11, %v5206_v52 }
 0x599   :  { %v2703_v46 = vpop.f32.mrb[12].mxu0  ;;  %v2776_v1 = vpop.f32.mrb[44].mxu1 }
 0x59a   :  { %v2777_v7 = vadd.f32 %v2776_v1, %v2703_v46  ;;  %v5825_v57 = vpop.f32.mrb[13].mxu0  ;;  %v5830_v61 = vpop.f32.mrb[45].mxu1 }
 0x59d   :  { %v2852_v60 = vpop.f32.mrb[14].mxu0  ;;  %v2929_v30 = vpop.f32.mrb[46].mxu1 }
 0x59e   :  { %v2856_v16 = vadd.f32 %v2852_v60, %v2777_v7  ;;  %v5835_v9 = vpop.f32.mrb[15].mxu0  ;;  %v5840_v0 = vpop.f32.mrb[47].mxu1 }
 0x5a0   :  { %v2933_v10 = vadd.f32 %v2929_v30, %v2856_v16 }
 0x5a1   :  { %v3006_v13 = vpop.f32.mrb[16].mxu0  ;;  %v3083_v17 = vpop.f32.mrb[48].mxu1 }
 0x5a2   :  { %v3010_v5 = vadd.f32 %v3006_v13, %v2933_v10  ;;  %v5845_v59 = vpop.f32.mrb[17].mxu0  ;;  %v5850_v42 = vpop.f32.mrb[49].mxu1 }
 0x5a4   :  { %v3087_v48 = vadd.f32 %v3083_v17, %v3010_v5 }
 0x5a5   :  { %v3160_v15 = vpop.f32.mrb[18].mxu0  ;;  %v3237_v62 = vpop.f32.mrb[50].mxu1 }
 0x5a6   :  { %v3164_v4 = vadd.f32 %v3160_v15, %v3087_v48  ;;  %v5855_v20 = vpop.f32.mrb[19].mxu0  ;;  %v5860_v12 = vpop.f32.mrb[51].mxu1 }
 0x5a8   :  { %v3241_v63 = vadd.f32 %v3237_v62, %v3164_v4 }
 0x5a9   :  { %v3314_v18 = vpop.f32.mrb[20].mxu0  ;;  %v3391_v27 = vpop.f32.mrb[52].mxu1 }
 0x5aa   :  { %v3318_v25 = vadd.f32 %v3314_v18, %v3241_v63  ;;  %v5865_v11 = vpop.f32.mrb[21].mxu0  ;;  %v5870_v29 = vpop.f32.mrb[53].mxu1 }
 0x5ab   :  { %v4706_v11 = vpop.permute.xlu1 %4705 }
 0x5ac   :  { %v3395_v6 = vadd.f32 %v3391_v27, %v3318_v25 }
 0x5ad   :  { %v3468_v8 = vpop.f32.mrb[22].mxu0 }
 0x5ae   :  { %v3472_v31 = vadd.f32 %v3468_v8, %v3395_v6  ;;  %v3545_v37 = vpop.f32.mrb[54].mxu1  ;;  %v5875_v23 = vpop.f32.mrb[23].mxu0  ;;  %v4710_v8 = vld [vmem:[%s7500_s12] sm:$0xff] }
 0x5af   :  { %v5880_v34 = vpop.f32.mrb[55].mxu1 }
 0x5b0   :  { %v3549_v14 = vadd.f32 %v3545_v37, %v3472_v31  ;;  %v4739_v31 = vld [vmem:[%s7501_s2] sm:$0xff] }
 0x5b1   :  { %v3622_v36 = vpop.f32.mrb[24].mxu0  ;;  %v4740_v37 = vld [vmem:[%s7502_s3] sm:$0xff]  ;;  %v7076_v23 = vrot.slane %v4739_v31, %v6388_v24 }
 0x5b2   :  { %v3626_v19 = vadd.f32 %v3622_v36, %v3549_v14  ;;  %v3697_v3 = vpop.f32.mrb[56].mxu1  ;;  %v5885_v43 = vpop.f32.mrb[25].mxu0  ;;  %v7079_v34 = vrot.slane %v4740_v37, %v6388_v24  ;;  %v7082_v14 = vrot.slane %v4739_v31, %v6382_v22  ;;  %v7085_v36 = vrot.slane %v4739_v31, %v6394_v26 }
 0x5b3   :  { %v5890_v41 = vpop.f32.mrb[57].mxu1  ;;  %v7094_v43 = vrot.slane %v4740_v37, %v6409_v33  ;;  %v7100_v24 = vrot.slane %v4739_v31, %v6441_v45  ;;  %vm4762_vm0 = vcmp.eq.s32.totalorder %v6379_v21, %v7076_v23 }
 0x5b4   :  { %v3701_v28 = vadd.f32 %v3697_v3, %v3626_v19  ;;  %v7088_v19 = vrot.slane %v4740_v37, %v6382_v22  ;;  %v7091_v3 = vrot.slane %v4739_v31, %v6409_v33  ;;  %v7097_v41 = vrot.slane %v4740_v37, %v6394_v26 }
 0x5b5   :  { %v3774_v47 = vpop.f32.mrb[26].mxu0  ;;  %v7109_v22 = vrot.slane %v4740_v37, %v6425_v38  ;;  %v7115_v33 = vrot.slane %v4740_v37, %v6467_v54  ;;  %v7118_v26 = vrot.slane %v4739_v31, %v6455_v49  ;;  %vm4818_vm14 = vcmp.eq.s32.totalorder %v6379_v21, %v7082_v14 }
 0x5b6   :  { %v3778_v35 = vadd.f32 %v3774_v47, %v3701_v28  ;;  %v3851_v51 = vpop.f32.mrb[58].mxu1  ;;  %v5895_v39 = vpop.f32.mrb[27].mxu0  ;;  %v7103_v28 = vrot.slane %v4740_v37, %v6441_v45  ;;  %v7106_v47 = vrot.slane %v4739_v31, %v6425_v38  ;;  %v4743_v45 = vadd.s32 8, %v6379_v21 }
 0x5b7   :  { %v5900_v2 = vpop.f32.mrb[59].mxu1  ;;  %vm4874_vm15 = vcmp.eq.s32.totalorder %v6379_v21, %v7085_v36  ;;  %v4782_v38 = vsel %vm4762_vm0, %v7079_v34, 0.0  ;;  %vm4930_vm1 = vcmp.eq.s32.totalorder %v6379_v21, %v7091_v3  ;;  %vm5042_vm8 = vcmp.eq.s32.totalorder %v6379_v21, %v7100_v24 }
 0x5b8   :  { %v3855_v40 = vadd.f32 %v3851_v51, %v3778_v35  ;;  %v7112_v35 = vrot.slane %v4739_v31, %v6467_v54  ;;  %v7121_v51 = vrot.slane %v4740_v37, %v6455_v49  ;;  %v4838_v54 = vsel %vm4818_vm14, %v7088_v19, 0.0 }
 0x5b9   :  { %v3928_v32 = vpop.f32.mrb[28].mxu0  ;;  %v4894_v39 = vsel %vm4874_vm15, %v7097_v41, 0.0  ;;  %vm4763_vm2 = vcmp.eq.s32.totalorder %v4743_v45, %v7076_v23  ;;  %vm4819_vm3 = vcmp.eq.s32.totalorder %v4743_v45, %v7082_v14  ;;  %v4854_v49 = vadd.f32 %v4838_v54, %v4782_v38 }
 0x5ba   :  { %v3932_v55 = vadd.f32 %v3928_v32, %v3855_v40  ;;  %v4005_v58 = vpop.f32.mrb[60].mxu1  ;;  %v5905_v44 = vpop.f32.mrb[29].mxu0  ;;  %vm4875_vm4 = vcmp.eq.s32.totalorder %v4743_v45, %v7085_v36  ;;  %v4783_v2 = vsel %vm4763_vm2, %v7079_v34, 0.0  ;;  %v4839_v40 = vsel %vm4819_vm3, %v7088_v19, 0.0 }
 0x5bb   :  { %v5910_v53 = vpop.f32.mrb[61].mxu1  ;;  %v4895_v32 = vsel %vm4875_vm4, %v7097_v41, 0.0  ;;  %vm4931_vm5 = vcmp.eq.s32.totalorder %v4743_v45, %v7091_v3  ;;  %v4950_v44 = vsel %vm4930_vm1, %v7094_v43, 0.0  ;;  %vm4986_vm6 = vcmp.eq.s32.totalorder %v6379_v21, %v7106_v47 }
 0x5bc   :  { %v4009_v56 = vadd.f32 %v4005_v58, %v3932_v55  ;;  %v4855_v55 = vadd.f32 %v4839_v40, %v4783_v2  ;;  %v4910_v58 = vadd.f32 %v4894_v39, %v4854_v49  ;;  %v4951_v53 = vsel %vm4931_vm5, %v7094_v43, 0.0 }
 0x5bd   :  { %v4082_v52 = vpop.f32.mrb[30].mxu0  ;;  %vm4987_vm7 = vcmp.eq.s32.totalorder %v4743_v45, %v7106_v47  ;;  %vm5043_vm9 = vcmp.eq.s32.totalorder %v4743_v45, %v7100_v24  ;;  %vm5098_vm10 = vcmp.eq.s32.totalorder %v6379_v21, %v7118_v26  ;;  %vm5099_vm11 = vcmp.eq.s32.totalorder %v4743_v45, %v7118_v26 }
 0x5be   :  { %v4086_v46 = vadd.f32 %v4082_v52, %v4009_v56  ;;  %v4159_v1 = vpop.f32.mrb[62].mxu1  ;;  %v5915_v7 = vpop.f32.mrb[31].mxu0  ;;  %v4911_v56 = vadd.f32 %v4895_v32, %v4855_v55  ;;  %v4966_v52 = vadd.f32 %v4950_v44, %v4910_v58  ;;  %vm5154_vm12 = vcmp.eq.s32.totalorder %v6379_v21, %v7112_v35 }
 0x5bf   :  { %v5920_v57 = vpop.f32.mrb[63].mxu1  ;;  %v5062_v7 = vsel %vm5042_vm8, %v7103_v28, 0.0  ;;  %vm5155_vm13 = vcmp.eq.s32.totalorder %v4743_v45, %v7112_v35 }
 0x5c0   :  { %v4163_v61 = vadd.f32 %v4159_v1, %v4086_v46  ;;  %v5006_v46 = vsel %vm4986_vm6, %v7109_v22, 0.0  ;;  %v5007_v1 = vsel %vm4987_vm7, %v7109_v22, 0.0  ;;  %v5063_v57 = vsel %vm5043_vm9, %v7103_v28, 0.0 }
 0x5c1   :  { %v4236_v60 = vpop.f32.mrb[32].mxu0 }
 0x5c2   :  { %v4240_v30 = vadd.f32 %v4236_v60, %v4163_v61  ;;  %v4313_v16 = vpop.f32.mrb[64].mxu1  ;;  %v5925_v9 = vpop.f32.mrb[33].mxu0  ;;  %v4967_v61 = vadd.f32 %v4951_v53, %v4911_v56  ;;  %v5022_v60 = vadd.f32 %v5006_v46, %v4966_v52 }
 0x5c3   :  { %v5930_v0 = vpop.f32.mrb[65].mxu1  ;;  %v4744_v9 = vadd.s32 16, %v6379_v21 }
 0x5c4   :  { %v4317_v10 = vadd.f32 %v4313_v16, %v4240_v30  ;;  %v5118_v30 = vsel %vm5098_vm10, %v7121_v51, 0.0  ;;  %v5119_v16 = vsel %vm5099_vm11, %v7121_v51, 0.0  ;;  %v4745_v0 = vadd.s32 24, %v6379_v21 }
 0x5c5   :  { %v4390_v13 = vpop.f32.mrb[34].mxu0  ;;  %vm4764_vm0 = vcmp.eq.s32.totalorder %v4744_v9, %v7076_v23  ;;  %vm4820_vm15 = vcmp.eq.s32.totalorder %v4744_v9, %v7082_v14  ;;  %vm4876_vm2 = vcmp.eq.s32.totalorder %v4744_v9, %v7085_v36  ;;  %vm4932_vm4 = vcmp.eq.s32.totalorder %v4744_v9, %v7091_v3 }
 0x5c6   :  { %v4394_v17 = vadd.f32 %v4390_v13, %v4317_v10  ;;  %v4467_v5 = vpop.f32.mrb[66].mxu1  ;;  %v5935_v59 = vpop.f32.mrb[35].mxu0  ;;  %v5023_v10 = vadd.f32 %v5007_v1, %v4967_v61  ;;  %v5078_v13 = vadd.f32 %v5062_v7, %v5022_v60  ;;  %vm4765_vm14 = vcmp.eq.s32.totalorder %v4745_v0, %v7076_v23 }
 0x5c7   :  { %v5940_v42 = vpop.f32.mrb[67].mxu1  ;;  %vm4821_vm1 = vcmp.eq.s32.totalorder %v4745_v0, %v7082_v14  ;;  %vm4877_vm3 = vcmp.eq.s32.totalorder %v4745_v0, %v7085_v36  ;;  %vm4933_vm5 = vcmp.eq.s32.totalorder %v4745_v0, %v7091_v3  ;;  %v4952_v31 = vsel %vm4932_vm4, %v7094_v43, 0.0 }
 0x5c8   :  { %v4471_v48 = vadd.f32 %v4467_v5, %v4394_v17  ;;  %v5174_v17 = vsel %vm5154_vm12, %v7115_v33, 0.0  ;;  %v5175_v5 = vsel %vm5155_vm13, %v7115_v33, 0.0  ;;  %v5079_v59 = vadd.f32 %v5063_v57, %v5023_v10 }
 0x5c9   :  { %v4544_v15 = vpop.f32.mrb[36].mxu0  ;;  %v5134_v42 = vadd.f32 %v5118_v30, %v5078_v13  ;;  %v4953_v37 = vsel %vm4933_vm5, %v7094_v43, 0.0  ;;  %vm4988_vm6 = vcmp.eq.s32.totalorder %v4744_v9, %v7106_v47  ;;  %vm4989_vm7 = vcmp.eq.s32.totalorder %v4745_v0, %v7106_v47 }
 0x5ca   :  { %v4548_v62 = vadd.f32 %v4544_v15, %v4471_v48  ;;  %v4621_v4 = vpop.f32.mrb[68].mxu1  ;;  %v5945_v20 = vpop.f32.mrb[37].mxu0  ;;  %v4784_v48 = vsel %vm4764_vm0, %v7079_v34, 0.0  ;;  %v4785_v15 = vsel %vm4765_vm14, %v7079_v34, 0.0  ;;  %vm5044_vm8 = vcmp.eq.s32.totalorder %v4744_v9, %v7100_v24 }
 0x5cb   :  { %v5950_v12 = vpop.f32.mrb[69].mxu1  ;;  %v5135_v20 = vadd.f32 %v5119_v16, %v5079_v59  ;;  %v5008_v39 = vsel %vm4988_vm6, %v7109_v22, 0.0  ;;  %v5009_v49 = vsel %vm4989_vm7, %v7109_v22, 0.0  ;;  %vm5045_vm9 = vcmp.eq.s32.totalorder %v4745_v0, %v7100_v24 }
 0x5cc   :  { %v4625_v63 = vadd.f32 %v4621_v4, %v4548_v62  ;;  %v4840_v62 = vsel %vm4820_vm15, %v7088_v19, 0.0  ;;  %v4841_v4 = vsel %vm4821_vm1, %v7088_v19, 0.0  ;;  %v5190_v12 = vadd.f32 %v5174_v17, %v5134_v42 }
 0x5cd   :  { %v4698_v18 = vpop.f32.mrb[38].mxu0  ;;  %v5064_v2 = vsel %vm5044_vm8, %v7103_v28, 0.0  ;;  %vm5100_vm10 = vcmp.eq.s32.totalorder %v4744_v9, %v7118_v26  ;;  %v5065_v55 = vsel %vm5045_vm9, %v7103_v28, 0.0  ;;  %vm5101_vm11 = vcmp.eq.s32.totalorder %v4745_v0, %v7118_v26 }
 0x5ce   :  { %v4702_v27 = vadd.f32 %v4698_v18, %v4625_v63  ;;  %v5955_v25 = vpop.f32.mrb[39].mxu0  ;;  %v4856_v63 = vadd.f32 %v4840_v62, %v4784_v48  ;;  %v4857_v18 = vadd.f32 %v4841_v4, %v4785_v15  ;;  %v5120_v58 = vsel %vm5100_vm10, %v7121_v51, 0.0 }
 0x5cf   :  { %v4897_v25 = vsel %vm4877_vm3, %v7097_v41, 0.0  ;;  %v5121_v44 = vsel %vm5101_vm11, %v7121_v51, 0.0  ;;  %vm5156_vm12 = vcmp.eq.s32.totalorder %v4744_v9, %v7112_v35  ;;  %vm5157_vm13 = vcmp.eq.s32.totalorder %v4745_v0, %v7112_v35 }
 0x5d0   :  { %v7061_v29 = vadd.f32 %v4706_v11, %v4702_v27  ;;  %v4896_v27 = vsel %vm4876_vm2, %v7097_v41, 0.0  ;;  %v5191_v11 = vadd.f32 %v5175_v5, %v5135_v20  ;;  %v5176_v52 = vsel %vm5156_vm12, %v7115_v33, 0.0 }
 0x5d1   :  { %v5177_v46 = vsel %vm5157_vm13, %v7115_v33, 0.0  ;;  %v4746_v1 = vadd.s32 32, %v6379_v21  ;;  %v4747_v7 = vadd.s32 40, %v6379_v21  ;;  %v7202_v57 = vadd.s32 48, %v6379_v21 }
 0x5d2   :  { %4711 = vadd.xlane.f32.xlu0 %v7061_v29  ;;  %v4714_v6 = vmul.f32 %v7061_v29, %v7061_v29  ;;  %v6021_v45 = vpack.c.bf16 %v5191_v11, %v5190_v12  ;;  %v7205_v61 = vadd.s32 56, %v6379_v21  ;;  %v7208_v16 = vadd.s32 64, %v6379_v21 }
 0x5d3   :  { %v7211_v9 = vadd.s32 72, %v6379_v21  ;;  %vm4766_vm0 = vcmp.eq.s32.totalorder %v4746_v1, %v7076_v23  ;;  %vm4767_vm14 = vcmp.eq.s32.totalorder %v4747_v7, %v7076_v23  ;;  %vm4822_vm15 = vcmp.eq.s32.totalorder %v4746_v1, %v7082_v14 }
 0x5d4   :  { %4715 = vadd.xlane.f32.xlu1 %v4714_v6  ;;  %v4912_v6 = vadd.f32 %v4896_v27, %v4856_v63  ;;  %6022 = vmatpush3.bf16.msra.mxu0 %v6021_v45  ;;  %vm4823_vm1 = vcmp.eq.s32.totalorder %v4747_v7, %v7082_v14  ;;  %v4786_v13 = vsel %vm4766_vm0, %v7079_v34, 0.0  ;;  %v4787_v17 = vsel %vm4767_vm14, %v7079_v34, 0.0 }
 0x5d5   :  { %6023 = vmatprep.subr.bf16.mxu0 %v7550_v50  ;;  %v4842_v5 = vsel %vm4822_vm15, %v7088_v19, 0.0  ;;  %v4843_v59 = vsel %vm4823_vm1, %v7088_v19, 0.0  ;;  %vm4878_vm2 = vcmp.eq.s32.totalorder %v4746_v1, %v7085_v36  ;;  %vm4879_vm3 = vcmp.eq.s32.totalorder %v4747_v7, %v7085_v36 }
 0x5d6   :  { %v4968_v38 = vadd.f32 %v4952_v31, %v4912_v6  ;;  %v4858_v48 = vadd.f32 %v4842_v5, %v4786_v13  ;;  %v4859_v15 = vadd.f32 %v4843_v59, %v4787_v17  ;;  %v4898_v62 = vsel %vm4878_vm2, %v7097_v41, 0.0 }
 0x5d7   :  { %v4899_v4 = vsel %vm4879_vm3, %v7097_v41, 0.0  ;;  %vm4934_vm4 = vcmp.eq.s32.totalorder %v4746_v1, %v7091_v3  ;;  %vm4935_vm5 = vcmp.eq.s32.totalorder %v4747_v7, %v7091_v3  ;;  %vm4990_vm6 = vcmp.eq.s32.totalorder %v4746_v1, %v7106_v47 }
 0x5d8   :  { %v5024_v40 = vadd.f32 %v5008_v39, %v4968_v38  ;;  %v4914_v20 = vadd.f32 %v4898_v62, %v4858_v48  ;;  %v4915_v12 = vadd.f32 %v4899_v4, %v4859_v15  ;;  %v4954_v63 = vsel %vm4934_vm4, %v7094_v43, 0.0 }
 0x5d9   :  { %vm4991_vm7 = vcmp.eq.s32.totalorder %v4747_v7, %v7106_v47  ;;  %v5010_v27 = vsel %vm4990_vm6, %v7109_v22, 0.0  ;;  %vm5046_vm8 = vcmp.eq.s32.totalorder %v4746_v1, %v7100_v24  ;;  %vm5047_vm9 = vcmp.eq.s32.totalorder %v4747_v7, %v7100_v24 }
 0x5da   :  { %v5080_v53 = vadd.f32 %v5064_v2, %v5024_v40  ;;  %v5011_v6 = vsel %vm4991_vm7, %v7109_v22, 0.0  ;;  %v5067_v31 = vsel %vm5047_vm9, %v7103_v28, 0.0  ;;  %vm5102_vm10 = vcmp.eq.s32.totalorder %v4746_v1, %v7118_v26 }
 0x5db   :  { %vm5103_vm11 = vcmp.eq.s32.totalorder %v4747_v7, %v7118_v26  ;;  %vm5158_vm12 = vcmp.eq.s32.totalorder %v4746_v1, %v7112_v35  ;;  %v5122_v38 = vsel %vm5102_vm10, %v7121_v51, 0.0  ;;  %vm5159_vm13 = vcmp.eq.s32.totalorder %v4747_v7, %v7112_v35 }
 0x5dc   :  { %v5136_v60 = vadd.f32 %v5120_v58, %v5080_v53  ;;  %v5178_v39 = vsel %vm5158_vm12, %v7115_v33, 0.0  ;;  %vm4768_vm0 = vcmp.eq.s32.totalorder %v7202_v57, %v7076_v23  ;;  %vm4769_vm14 = vcmp.eq.s32.totalorder %v7205_v61, %v7076_v23 }
 0x5dd   :  { %v5179_v40 = vsel %vm5159_vm13, %v7115_v33, 0.0  ;;  %vm4824_vm15 = vcmp.eq.s32.totalorder %v7202_v57, %v7082_v14  ;;  %vm4825_vm1 = vcmp.eq.s32.totalorder %v7205_v61, %v7082_v14  ;;  %vm4880_vm2 = vcmp.eq.s32.totalorder %v7202_v57, %v7085_v36 }
 0x5de   :  { %v5192_v0 = vadd.f32 %v5176_v52, %v5136_v60  ;;  %v4844_v53 = vsel %vm4824_vm15, %v7088_v19, 0.0  ;;  %vm4881_vm3 = vcmp.eq.s32.totalorder %v7205_v61, %v7085_v36  ;;  %v4900_v1 = vsel %vm4880_vm2, %v7097_v41, 0.0 }
 0x5df   :  { %vm4936_vm4 = vcmp.eq.s32.totalorder %v7202_v57, %v7091_v3  ;;  %vm4992_vm6 = vcmp.eq.s32.totalorder %v7202_v57, %v7106_v47  ;;  %vm4993_vm7 = vcmp.eq.s32.totalorder %v7205_v61, %v7106_v47  ;;  %vm5049_vm9 = vcmp.eq.s32.totalorder %v7205_v61, %v7100_v24 }
 0x5e0   :  { %v4956_v13 = vsel %vm4936_vm4, %v7094_v43, 0.0  ;;  %v5012_v48 = vsel %vm4992_vm6, %v7109_v22, 0.0  ;;  %v5013_v15 = vsel %vm4993_vm7, %v7109_v22, 0.0  ;;  %vm5104_vm10 = vcmp.eq.s32.totalorder %v7202_v57, %v7118_v26 }
 0x5e1   :  { %vm5160_vm12 = vcmp.eq.s32.totalorder %v7202_v57, %v7112_v35  ;;  %vm5161_vm13 = vcmp.eq.s32.totalorder %v7205_v61, %v7112_v35  ;;  %vm4826_vm15 = vcmp.eq.s32.totalorder %v7208_v16, %v7082_v14  ;;  %vm4882_vm2 = vcmp.eq.s32.totalorder %v7208_v16, %v7085_v36 }
 0x5e2   :  { %vm4938_vm4 = vcmp.eq.s32.totalorder %v7208_v16, %v7091_v3  ;;  %vm4994_vm6 = vcmp.eq.s32.totalorder %v7208_v16, %v7106_v47  ;;  %vm4995_vm7 = vcmp.eq.s32.totalorder %v7211_v9, %v7106_v47 }
 0x5e5   :  { %4732 = vperm.xlu1 %6076, %v4710_v8   ;;  %v4913_v8 = vadd.f32 %v4897_v25, %v4857_v18  ;;  %v4955_v18 = vsel %vm4935_vm5, %v7094_v43, 0.0  ;;  %v4970_v25 = vadd.f32 %v4954_v63, %v4914_v20  ;;  %vm4937_vm5 = vcmp.eq.s32.totalorder %v7205_v61, %v7091_v3 }
 0x5e6   :  { %v4971_v11 = vadd.f32 %v4955_v18, %v4915_v12  ;;  %v4957_v5 = vsel %vm4937_vm5, %v7094_v43, 0.0  ;;  %v5069_v12 = vsel %vm5049_vm9, %v7103_v28, 0.0  ;;  %v5124_v63 = vsel %vm5104_vm10, %v7121_v51, 0.0 }
 0x5e7   :  { %v4969_v54 = vadd.f32 %v4953_v37, %v4913_v8  ;;  %v5066_v8 = vsel %vm5046_vm8, %v7103_v28, 0.0  ;;  %v5026_v37 = vadd.f32 %v5010_v27, %v4970_v25  ;;  %vm5048_vm8 = vcmp.eq.s32.totalorder %v7202_v57, %v7100_v24 }
 0x5e8   :  { %v5027_v45 = vadd.f32 %v5011_v6, %v4971_v11  ;;  %v5068_v20 = vsel %vm5048_vm8, %v7103_v28, 0.0  ;;  %v5180_v11 = vsel %vm5160_vm12, %v7115_v33, 0.0  ;;  %v5181_v6 = vsel %vm5161_vm13, %v7115_v33, 0.0 }
 0x5e9   :  { %v5025_v32 = vadd.f32 %v5009_v49, %v4969_v54  ;;  %v5123_v54 = vsel %vm5103_vm11, %v7121_v51, 0.0  ;;  %v5082_v49 = vadd.f32 %v5066_v8, %v5026_v37  ;;  %vm5105_vm11 = vcmp.eq.s32.totalorder %v7205_v61, %v7118_v26 }
 0x5ea   :  { %v5083_v2 = vadd.f32 %v5067_v31, %v5027_v45  ;;  %v5125_v18 = vsel %vm5105_vm11, %v7121_v51, 0.0  ;;  %v4846_v37 = vsel %vm4826_vm15, %v7088_v19, 0.0  ;;  %vm4939_vm5 = vcmp.eq.s32.totalorder %v7211_v9, %v7091_v3 }
 0x5eb   :  { %v5081_v56 = vadd.f32 %v5065_v55, %v5025_v32  ;;  %v4788_v32 = vsel %vm4768_vm0, %v7079_v34, 0.0  ;;  %v4789_v55 = vsel %vm4769_vm14, %v7079_v34, 0.0  ;;  %v5138_v58 = vadd.f32 %v5122_v38, %v5082_v49 }
 0x5ec   :  { %v4860_v52 = vadd.f32 %v4844_v53, %v4788_v32  ;;  %vm4770_vm0 = vcmp.eq.s32.totalorder %v7208_v16, %v7076_v23  ;;  %vm4771_vm14 = vcmp.eq.s32.totalorder %v7211_v9, %v7076_v23  ;;  %v4959_v53 = vsel %vm4939_vm5, %v7094_v43, 0.0 }
 0x5ed   :  { %v5137_v30 = vadd.f32 %v5121_v44, %v5081_v56  ;;  %v5139_v44 = vadd.f32 %v5123_v54, %v5083_v2  ;;  %v4845_v56 = vsel %vm4825_vm1, %v7088_v19, 0.0  ;;  %v5194_v7 = vadd.f32 %v5178_v39, %v5138_v58 }
 0x5ee   :  { %vm4827_vm1 = vcmp.eq.s32.totalorder %v7211_v9, %v7082_v14  ;;  %v4790_v8 = vsel %vm4770_vm0, %v7079_v34, 0.0  ;;  %v4791_v31 = vsel %vm4771_vm14, %v7079_v34, 0.0  ;;  %v4902_v2 = vsel %vm4882_vm2, %v7097_v41, 0.0 }
 0x5ef   :  { %v5193_v10 = vadd.f32 %v5177_v46, %v5137_v30  ;;  %v4861_v46 = vadd.f32 %v4845_v56, %v4789_v55  ;;  %v5195_v60 = vadd.f32 %v5179_v40, %v5139_v44  ;;  %v4901_v30 = vsel %vm4881_vm3, %v7097_v41, 0.0 }
 0x5f0   :  { %v4847_v45 = vsel %vm4827_vm1, %v7088_v19, 0.0  ;;  %vm4883_vm3 = vcmp.eq.s32.totalorder %v7211_v9, %v7085_v36  ;;  %v4862_v39 = vadd.f32 %v4846_v37, %v4790_v8  ;;  %v4958_v44 = vsel %vm4938_vm4, %v7094_v43, 0.0 }
 0x5f1   :  { %v6024_v42 = vpack.c.bf16 %v5193_v10, %v5192_v0  ;;  %v4916_v0 = vadd.f32 %v4900_v1, %v4860_v52  ;;  %v4917_v10 = vadd.f32 %v4901_v30, %v4861_v46  ;;  %v6027_v17 = vpack.c.bf16 %v5195_v60, %v5194_v7 }
 0x5f2   :  { %v4863_v49 = vadd.f32 %v4847_v45, %v4791_v31  ;;  %v4903_v40 = vsel %vm4883_vm3, %v7097_v41, 0.0  ;;  %v4918_v55 = vadd.f32 %v4902_v2, %v4862_v39  ;;  %vm5050_vm8 = vcmp.eq.s32.totalorder %v7208_v16, %v7100_v24 }
 0x5f3   :  { %6025 = vmatpush3.bf16.msra.mxu0 %v6024_v42  ;;  %v4972_v59 = vadd.f32 %v4956_v13, %v4916_v0  ;;  %v4973_v42 = vadd.f32 %v4957_v5, %v4917_v10  ;;  %v5014_v46 = vsel %vm4994_vm6, %v7109_v22, 0.0  ;;  %v5015_v1 = vsel %vm4995_vm7, %v7109_v22, 0.0 }
 0x5f4   :  { %6026 = vmatprep.subr.bf16.mxu0 %v7550_v50  ;;  %v4919_v58 = vadd.f32 %v4903_v40, %v4863_v49  ;;  %v4974_v56 = vadd.f32 %v4958_v44, %v4918_v55  ;;  %vm5051_vm9 = vcmp.eq.s32.totalorder %v7211_v9, %v7100_v24  ;;  %v5070_v7 = vsel %vm5050_vm8, %v7103_v28, 0.0 }
 0x5f5   :  { %v5028_v62 = vadd.f32 %v5012_v48, %v4972_v59  ;;  %v5029_v4 = vadd.f32 %v5013_v15, %v4973_v42  ;;  %vm5106_vm10 = vcmp.eq.s32.totalorder %v7208_v16, %v7118_v26  ;;  %vm5107_vm11 = vcmp.eq.s32.totalorder %v7211_v9, %v7118_v26 }
 0x5f6   :  { %v4975_v52 = vadd.f32 %v4959_v53, %v4919_v58  ;;  %v5030_v60 = vadd.f32 %v5014_v46, %v4974_v56  ;;  %v5071_v0 = vsel %vm5051_vm9, %v7103_v28, 0.0  ;;  %v5126_v10 = vsel %vm5106_vm10, %v7121_v51, 0.0 }
 0x5f7   :  { %6028 = vmatpush3.bf16.msra.mxu0 %v6027_v17  ;;  %v5084_v27 = vadd.f32 %v5068_v20, %v5028_v62  ;;  %v5085_v25 = vadd.f32 %v5069_v12, %v5029_v4  ;;  %v5127_v13 = vsel %vm5107_vm11, %v7121_v51, 0.0  ;;  %vm5162_vm12 = vcmp.eq.s32.totalorder %v7208_v16, %v7112_v35 }
 0x5f8   :  { %6029 = vmatprep.subr.bf16.mxu0 %v7550_v50  ;;  %v5031_v30 = vadd.f32 %v5015_v1, %v4975_v52  ;;  %vm5163_vm13 = vcmp.eq.s32.totalorder %v7211_v9, %v7112_v35  ;;  %v4752_v17 = vadd.s32 80, %v6379_v21  ;;  %v5086_v5 = vadd.f32 %v5070_v7, %v5030_v60 }
 0x5f9   :  { %v5140_v57 = vadd.f32 %v5124_v63, %v5084_v27  ;;  %v5141_v61 = vadd.f32 %v5125_v18, %v5085_v25  ;;  %v5182_v42 = vsel %vm5162_vm12, %v7115_v33, 0.0  ;;  %v5183_v48 = vsel %vm5163_vm13, %v7115_v33, 0.0 }
 0x5fa   :  { %v5087_v59 = vadd.f32 %v5071_v0, %v5031_v30  ;;  %v4753_v15 = vadd.s32 88, %v6379_v21  ;;  %vm4772_vm0 = vcmp.eq.s32.totalorder %v4752_v17, %v7076_v23  ;;  %vm4828_vm14 = vcmp.eq.s32.totalorder %v4752_v17, %v7082_v14 }
 0x5fb   :  { %v5196_v38 = vadd.f32 %v5180_v11, %v5140_v57  ;;  %v5197_v54 = vadd.f32 %v5181_v6, %v5141_v61  ;;  %vm4884_vm15 = vcmp.eq.s32.totalorder %v4752_v17, %v7085_v36  ;;  %v5142_v16 = vadd.f32 %v5126_v10, %v5086_v5 }
 0x5fc   :  { %v5143_v62 = vadd.f32 %v5127_v13, %v5087_v59  ;;  %v4792_v9 = vsel %vm4772_vm0, %v7079_v34, 0.0  ;;  %v4848_v4 = vsel %vm4828_vm14, %v7088_v19, 0.0  ;;  %vm4773_vm1 = vcmp.eq.s32.totalorder %v4753_v15, %v7076_v23 }
 0x5fd   :  { %v6030_v32 = vpack.c.bf16 %v5197_v54, %v5196_v38  ;;  %vm4829_vm2 = vcmp.eq.s32.totalorder %v4753_v15, %v7082_v14  ;;  %v4864_v20 = vadd.f32 %v4848_v4, %v4792_v9  ;;  %vm4885_vm3 = vcmp.eq.s32.totalorder %v4753_v15, %v7085_v36 }
 0x5fe   :  { %v5198_v12 = vadd.f32 %v5182_v42, %v5142_v16  ;;  %v5199_v63 = vadd.f32 %v5183_v48, %v5143_v62  ;;  %v4793_v18 = vsel %vm4773_vm1, %v7079_v34, 0.0  ;;  %v4849_v27 = vsel %vm4829_vm2, %v7088_v19, 0.0 }
 0x5ff   :  { %6031 = vmatpush3.bf16.msra.mxu0 %v6030_v32  ;;  %v4865_v25 = vadd.f32 %v4849_v27, %v4793_v18  ;;  %v4904_v11 = vsel %vm4884_vm15, %v7097_v41, 0.0  ;;  %v4905_v6 = vsel %vm4885_vm3, %v7097_v41, 0.0  ;;  %vm4940_vm4 = vcmp.eq.s32.totalorder %v4752_v17, %v7091_v3 }
 0x600   :  { %6032 = vmatprep.subr.bf16.mxu0 %v7550_v50  ;;  %v6033_v57 = vpack.c.bf16 %v5199_v63, %v5198_v12  ;;  %v4920_v61 = vadd.f32 %v4904_v11, %v4864_v20  ;;  %vm4941_vm5 = vcmp.eq.s32.totalorder %v4753_v15, %v7091_v3  ;;  %v4960_v8 = vsel %vm4940_vm4, %v7094_v43, 0.0 }
 0x601   :  { %v4921_v31 = vadd.f32 %v4905_v6, %v4865_v25  ;;  %v4961_v37 = vsel %vm4941_vm5, %v7094_v43, 0.0  ;;  %vm4996_vm6 = vcmp.eq.s32.totalorder %v4752_v17, %v7106_v47  ;;  %vm4997_vm7 = vcmp.eq.s32.totalorder %v4753_v15, %v7106_v47 }
 0x602   :  { %v4976_v45 = vadd.f32 %v4960_v8, %v4920_v61  ;;  %v5016_v38 = vsel %vm4996_vm6, %v7109_v22, 0.0  ;;  %v5017_v54 = vsel %vm4997_vm7, %v7109_v22, 0.0  ;;  %vm5052_vm8 = vcmp.eq.s32.totalorder %v4752_v17, %v7100_v24 }
 0x603   :  { %6034 = vmatpush3.bf16.msra.mxu0 %v6033_v57  ;;  %v4977_v39 = vadd.f32 %v4961_v37, %v4921_v31  ;;  %vm5053_vm9 = vcmp.eq.s32.totalorder %v4753_v15, %v7100_v24  ;;  %v5072_v49 = vsel %vm5052_vm8, %v7103_v28, 0.0  ;;  %vm5108_vm10 = vcmp.eq.s32.totalorder %v4752_v17, %v7118_v26 }
 0x604   :  { %6035 = vmatprep.subr.bf16.mxu0 %v7550_v50  ;;  %v5032_v2 = vadd.f32 %v5016_v38, %v4976_v45  ;;  %v5073_v40 = vsel %vm5053_vm9, %v7103_v28, 0.0  ;;  %vm5109_vm11 = vcmp.eq.s32.totalorder %v4753_v15, %v7118_v26  ;;  %v5128_v55 = vsel %vm5108_vm10, %v7121_v51, 0.0 }
 0x605   :  { %v5033_v32 = vadd.f32 %v5017_v54, %v4977_v39  ;;  %vm5164_vm12 = vcmp.eq.s32.totalorder %v4752_v17, %v7112_v35  ;;  %vm5165_vm13 = vcmp.eq.s32.totalorder %v4753_v15, %v7112_v35  ;;  %v5129_v44 = vsel %vm5109_vm11, %v7121_v51, 0.0 }
 0x606   :  { %v5088_v58 = vadd.f32 %v5072_v49, %v5032_v2  ;;  %v5184_v56 = vsel %vm5164_vm12, %v7115_v33, 0.0  ;;  %v5185_v46 = vsel %vm5165_vm13, %v7115_v33, 0.0  ;;  %v4754_v59 = vadd.s32 96, %v6379_v21 }
 0x607   :  { %v5089_v53 = vadd.f32 %v5073_v40, %v5033_v32  ;;  %v4755_v42 = vadd.s32 104, %v6379_v21  ;;  %v7397_v63 = vadd.s32 112, %v6379_v21  ;;  %v7408_v61 = vadd.s32 120, %v6379_v21 }
 0x608   :  { %v5144_v52 = vadd.f32 %v5128_v55, %v5088_v58  ;;  %vm4774_vm0 = vcmp.eq.s32.totalorder %v4754_v59, %v7076_v23  ;;  %vm4830_vm14 = vcmp.eq.s32.totalorder %v4754_v59, %v7082_v14  ;;  %vm4886_vm2 = vcmp.eq.s32.totalorder %v4754_v59, %v7085_v36  ;;  %v4709_v58 = vld [vmem:[%s7503_s11] sm:$0xff] }
 0x609   :  { %v5145_v1 = vadd.f32 %v5129_v44, %v5089_v53  ;;  %vm4775_vm15 = vcmp.eq.s32.totalorder %v4755_v42, %v7076_v23  ;;  %v4794_v15 = vsel %vm4774_vm0, %v7079_v34, 0.0  ;;  %vm4831_vm1 = vcmp.eq.s32.totalorder %v4755_v42, %v7082_v14 }
 0x60a   :  { %v5200_v7 = vadd.f32 %v5184_v56, %v5144_v52  ;;  %v4850_v16 = vsel %vm4830_vm14, %v7088_v19, 0.0  ;;  %v4795_v9 = vsel %vm4775_vm15, %v7079_v34, 0.0  ;;  %v4851_v4 = vsel %vm4831_vm1, %v7088_v19, 0.0 }
 0x60b   :  { %v5201_v60 = vadd.f32 %v5185_v46, %v5145_v1  ;;  %v4866_v20 = vadd.f32 %v4850_v16, %v4794_v15  ;;  %v4867_v12 = vadd.f32 %v4851_v4, %v4795_v9  ;;  %vm4887_vm3 = vcmp.eq.s32.totalorder %v4755_v42, %v7085_v36  ;;  %v5285_v16 = vpop.f32.mrb[70].mxu1 }
 0x60c   :  { %v4906_v18 = vsel %vm4886_vm2, %v7097_v41, 0.0  ;;  %v4907_v27 = vsel %vm4887_vm3, %v7097_v41, 0.0  ;;  %vm4942_vm4 = vcmp.eq.s32.totalorder %v4754_v59, %v7091_v3  ;;  %vm4943_vm5 = vcmp.eq.s32.totalorder %v4755_v42, %v7091_v3 }
 0x60d   :  { %v6036_v30 = vpack.c.bf16 %v5201_v60, %v5200_v7  ;;  %v4922_v25 = vadd.f32 %v4906_v18, %v4866_v20  ;;  %v4923_v11 = vadd.f32 %v4907_v27, %v4867_v12  ;;  %v4962_v6 = vsel %vm4942_vm4, %v7094_v43, 0.0 }
 0x60e   :  { %v4963_v57 = vsel %vm4943_vm5, %v7094_v43, 0.0  ;;  %vm4998_vm6 = vcmp.eq.s32.totalorder %v4754_v59, %v7106_v47  ;;  %vm4999_vm7 = vcmp.eq.s32.totalorder %v4755_v42, %v7106_v47  ;;  %vm5054_vm8 = vcmp.eq.s32.totalorder %v4754_v59, %v7100_v24 }
 0x60f   :  { %6037 = vmatpush3.bf16.msra.mxu0 %v6036_v30  ;;  %v4978_v8 = vadd.f32 %v4962_v6, %v4922_v25  ;;  %v4979_v31 = vadd.f32 %v4963_v57, %v4923_v11  ;;  %v5018_v37 = vsel %vm4998_vm6, %v7109_v22, 0.0  ;;  %v5019_v45 = vsel %vm4999_vm7, %v7109_v22, 0.0 }
 0x610   :  { %6038 = vmatprep.subr.bf16.mxu0 %v7550_v50  ;;  %vm5055_vm9 = vcmp.eq.s32.totalorder %v4755_v42, %v7100_v24  ;;  %vm4776_vm10 = vcmp.eq.s32.totalorder %v7397_v63, %v7076_v23  ;;  %vm4777_vm11 = vcmp.eq.s32.totalorder %v7408_v61, %v7076_v23  ;;  %v5074_v21 = vsel %vm5054_vm8, %v7103_v28, 0.0 }
 0x611   :  { %v5034_v38 = vadd.f32 %v5018_v37, %v4978_v8  ;;  %v5035_v54 = vadd.f32 %v5019_v45, %v4979_v31  ;;  %v5075_v39 = vsel %vm5055_vm9, %v7103_v28, 0.0  ;;  %vm5110_vm12 = vcmp.eq.s32.totalorder %v4754_v59, %v7118_v26 }
 0x612   :  { %vm5111_vm13 = vcmp.eq.s32.totalorder %v4755_v42, %v7118_v26  ;;  %v4796_v49 = vsel %vm4776_vm10, %v7079_v34, 0.0  ;;  %v4797_v2 = vsel %vm4777_vm11, %v7079_v34, 0.0  ;;  %v5130_v55 = vsel %vm5110_vm12, %v7121_v51, 0.0 }
 0x613   :  { %v5090_v40 = vadd.f32 %v5074_v21, %v5034_v38  ;;  %v5091_v32 = vadd.f32 %v5075_v39, %v5035_v54  ;;  %v5131_v23 = vsel %vm5111_vm13, %v7121_v51, 0.0  ;;  %vm5166_vm0 = vcmp.eq.s32.totalorder %v4754_v59, %v7112_v35  ;;  %v5207_v59 = vld [vmem:[%s7504_s14] sm:$0xff] }
 0x614   :  { %vm5167_vm14 = vcmp.eq.s32.totalorder %v4755_v42, %v7112_v35  ;;  %vm4832_vm15 = vcmp.eq.s32.totalorder %v7397_v63, %v7082_v14  ;;  %vm4833_vm1 = vcmp.eq.s32.totalorder %v7408_v61, %v7082_v14  ;;  %v5186_v53 = vsel %vm5166_vm0, %v7115_v33, 0.0 }
 0x615   :  { %v5146_v34 = vadd.f32 %v5130_v55, %v5090_v40  ;;  %v5147_v44 = vadd.f32 %v5131_v23, %v5091_v32  ;;  %v5187_v56 = vsel %vm5167_vm14, %v7115_v33, 0.0  ;;  %v4852_v46 = vsel %vm4832_vm15, %v7088_v19, 0.0  ;;  %v5289_v40 = vld [vmem:[%s7506_s15] sm:$0xff] }
 0x616   :  { %v4853_v1 = vsel %vm4833_vm1, %v7088_v19, 0.0  ;;  %vm4888_vm2 = vcmp.eq.s32.totalorder %v7397_v63, %v7085_v36  ;;  %vm4889_vm3 = vcmp.eq.s32.totalorder %v7408_v61, %v7085_v36  ;;  %v4868_v30 = vadd.f32 %v4852_v46, %v4796_v49 }
 0x617   :  { %v5202_v60 = vadd.f32 %v5186_v53, %v5146_v34  ;;  %v5203_v14 = vadd.f32 %v5187_v56, %v5147_v44  ;;  %vm4944_vm4 = vcmp.eq.s32.totalorder %v7397_v63, %v7091_v3  ;;  %vm4945_vm5 = vcmp.eq.s32.totalorder %v7408_v61, %v7091_v3 }
 0x618   :  { %v4964_v36 = vsel %vm4944_vm4, %v7094_v43, 0.0  ;;  %vm5000_vm6 = vcmp.eq.s32.totalorder %v7397_v63, %v7106_v47  ;;  %vm5001_vm7 = vcmp.eq.s32.totalorder %v7408_v61, %v7106_v47  ;;  %vm5056_vm8 = vcmp.eq.s32.totalorder %v7397_v63, %v7100_v24 }
 0x619   :  { %v6039_v19 = vpack.c.bf16 %v5203_v14, %v5202_v60  ;;  %v5020_v15 = vsel %vm5000_vm6, %v7109_v22, 0.0  ;;  %v5021_v3 = vsel %vm5001_vm7, %v7109_v22, 0.0  ;;  %vm5057_vm9 = vcmp.eq.s32.totalorder %v7408_v61, %v7100_v24  ;;  %v5960_v22 = vpop.f32.mrb[71].mxu1 }
 0x61a   :  { %vm5112_vm10 = vcmp.eq.s32.totalorder %v7397_v63, %v7118_v26  ;;  %v5077_v9 = vsel %vm5057_vm9, %v7103_v28, 0.0  ;;  %vm5113_vm11 = vcmp.eq.s32.totalorder %v7408_v61, %v7118_v26  ;;  %vm5168_vm12 = vcmp.eq.s32.totalorder %v7397_v63, %v7112_v35 }
 0x61b   :  { %6040 = vmatpush3.bf16.msra.mxu0 %v6039_v19  ;;  %vm5169_vm13 = vcmp.eq.s32.totalorder %v7408_v61, %v7112_v35  ;;  %v5133_v20 = vsel %vm5113_vm11, %v7121_v51, 0.0  ;;  %v5188_v18 = vsel %vm5168_vm12, %v7115_v33, 0.0 }
 0x61c   :  { %6041 = vmatprep.subr.bf16.mxu0 %v7550_v50  ;;  %v5132_v50 = vsel %vm5112_vm10, %v7121_v51, 0.0  ;;  %v5189_v27 = vsel %vm5169_vm13, %v7115_v33, 0.0  ;;  %v5290_v33 = vld [vmem:[%s7505_s16] sm:$0xff] }
 0x65f   :  { %v4712_v0 = vpop.xlane.xlu0 %4711 }
 0x660   :  { %v7380_v10 = vmul.f32 0.0078125, %v4712_v0  ;;  %v4869_v0 = vadd.f32 %v4853_v1, %v4797_v2 }
 0x661   :  { %v4716_v13 = vpop.xlane.xlu1 %4715 }
 0x662   :  { %v4718_v17 = vmul.f32 %v7380_v10, %v7380_v10  ;;  %v4717_v5 = vmul.f32 0.0078125, %v4716_v13  ;;  %v4908_v13 = vsel %vm4888_vm2, %v7097_v41, 0.0  ;;  %v4720_v63 = vsub.f32 %v7061_v29, %v7380_v10 }
 0x664   :  { %v4719_v48 = vsub.f32 %v4717_v5, %v4718_v17  ;;  %v4909_v17 = vsel %vm4889_vm3, %v7097_v41, 0.0  ;;  %v4924_v5 = vadd.f32 %v4908_v13, %v4868_v30 }
 0x665   :  { %v4925_v42 = vadd.f32 %v4909_v17, %v4869_v0  ;;  %v4733_v35 = vpop.permute.xlu1 %4732 }
 0x666   :  { %v4721_v62 = vadd.f32 0.0001, %v4719_v48  ;;  %v4965_v48 = vsel %vm4945_vm5, %v7094_v43, 0.0  ;;  %v4980_v41 = vadd.f32 %v4964_v36, %v4924_v5  ;;  %v5076_v43 = vsel %vm5056_vm8, %v7103_v28, 0.0 }
 0x668   :  { %6081 = vrsqrt.f32 %v4721_v62  ;;  %v4981_v62 = vadd.f32 %v4965_v48, %v4925_v42  ;;  %v5036_v47 = vadd.f32 %v5020_v15, %v4980_v41 }
 0x66a   :  { %v5037_v4 = vadd.f32 %v5021_v3, %v4981_v62  ;;  %v5092_v24 = vadd.f32 %v5076_v43, %v5036_v47 }
 0x66c   :  { %v5093_v12 = vadd.f32 %v5077_v9, %v5037_v4  ;;  %v5148_v28 = vadd.f32 %v5132_v50, %v5092_v24 }
 0x66e   :  { %v5149_v26 = vadd.f32 %v5133_v20, %v5093_v12  ;;  %v5204_v25 = vadd.f32 %v5188_v18, %v5148_v28 }
 0x670   :  { %v5205_v11 = vadd.f32 %v5189_v27, %v5149_v26 }
 0x672   :  { %v6082_v52 = vpop.eup %6081  ;;  %v6042_v6 = vpack.c.bf16 %v5205_v11, %v5204_v25 }
 0x673   :  { %v4723_v7 = vmul.f32 %v6082_v52, %v4709_v58 }
 0x674   :  { %6043 = vmatpush3.bf16.msra.mxu0 %v6042_v6 }
 0x675   :  { %4726 = vperm.xlu0 %6075, %v4723_v7  }
 0x679   :  { %5210 = vperm.xlu0 %6075, %v5207_v59  }
 0x6f4   :  { %v4727_v57 = vpop.permute.xlu0 %4726 }
 0x6f5   :  { %v4729_v8 = vmul.f32 %v4727_v57, %v4720_v63 }
 0x6f7   :  { %v4735_v61 = vadd.f32 %v4733_v35, %v4729_v8 }
 0x6f8   :  { %v5211_v31 = vpop.permute.xlu0 %5210 }
 0x6f9   :  { %v4737_v51 = vmul.f32 0.1, %v4735_v61  ;;  %v5286_v37 = vadd.f32 %v5285_v16, %v5211_v31  ;;  %vm4736_vm0 = vcmp.ge.f32.partialorder %v4735_v61, 0.0 }
 0x6fb   :  { %5291 = vadd.xlane.f32.xlu1 %v5286_v37  ;;  %v4738_v45 = vsel %vm4736_vm0, %v4735_v61, %v4737_v51  ;;  %v5294_v38 = vmul.f32 %v5286_v37, %v5286_v37 }
 0x6fc   :  { %5994 = vmatmul.mubr.f32.vlgmr.msra.gmra.mrb[40].mxu0 %v4738_v45 }
 0x6fd   :  { %5295 = vadd.xlane.f32.xlu0 %v5294_v38 }
 0x70c   :  { %5312 = vperm.xlu1 %6076, %v5290_v33  }
 0x788   :  { %v5292_v54 = vpop.xlane.xlu1 %5291 }
 0x789   :  { %v5293_v29 = vmul.f32 0.0078125, %v5292_v54 }
 0x78a   :  { %v5296_v10 = vpop.xlane.xlu0 %5295 }
 0x78b   :  { %v5298_v21 = vmul.f32 %v5293_v29, %v5293_v29  ;;  %v5297_v39 = vmul.f32 0.0078125, %v5296_v10  ;;  %v5300_v34 = vsub.f32 %v5286_v37, %v5293_v29 }
 0x78c   :  { %v5313_v56 = vpop.permute.xlu1 %5312 }
 0x78d   :  { %v5299_v49 = vsub.f32 %v5297_v39, %v5298_v21 }
 0x78f   :  { %v5301_v2 = vadd.f32 1e-05, %v5299_v49 }
 0x791   :  { %6083 = vrsqrt.f32 %v5301_v2 }
 0x79b   :  { %v6084_v32 = vpop.eup %6083 }
 0x79c   :  { %v5303_v55 = vmul.f32 %v6084_v32, %v5289_v40 }
 0x79e   :  { %5306 = vperm.xlu0 %6075, %v5303_v55  }
 0x7cf   :  { %v5383_v23 = vpop.f32.mrb[40].mxu0 }
 0x7d0   :  { %v5995_v58 = vpop.f32.mrb[41].mxu0 }
 0x81d   :  { %v5307_v44 = vpop.permute.xlu0 %5306 }
 0x81e   :  { %v5309_v53 = vmul.f32 %v5307_v44, %v5300_v34 }
 0x820   :  { %v5315_v52 = vadd.f32 %v5313_v56, %v5309_v53 }
 0x822   :  { %v5316_v46 = vmax.f32 %v5315_v52, 0.0 }
 0x824   :  { %v5384_v1 = vadd.f32 %v5383_v23, %v5316_v46 }
 0x826   :  { %5387 = vst [vmem:[%s7507_s17] sm:$0xff] %v5384_v1 }

</bundles_post_ra>
